<compile_context>
chip_gen: v7x
topology: tpu7x:2x2x1
jax: 0.10.0
libtpu: 0.0.40
codegen_flags: <defaults>
</compile_context>

<pallas_src>
import functools
import math

import jax
import jax.numpy as jnp
from jax.experimental import pallas as pl
from jax.experimental.pallas import tpu as pltpu

LN_EPS = 1e-5  # PyTorch nn.LayerNorm default eps


def _layernorm(x, g, b):
    mu = jnp.mean(x, axis=-1, keepdims=True)
    var = jnp.mean((x - mu) ** 2, axis=-1, keepdims=True)
    return (x - mu) * jax.lax.rsqrt(var + LN_EPS) * g + b


def _erf_poly(x):
    """Abramowitz & Stegun 7.1.26 erf approximation (|err| < 1.5e-7).
    Uses only exp / mul / add / where so it lowers cleanly in Mosaic."""
    p = 0.3275911
    a1, a2, a3, a4, a5 = (0.254829592, -0.284496736, 1.421413741,
                          -1.453152027, 1.061405429)
    ax = jnp.abs(x)
    t = 1.0 / (1.0 + p * ax)
    poly = ((((a5 * t + a4) * t + a3) * t + a2) * t + a1) * t
    y = 1.0 - poly * jnp.exp(-ax * ax)
    return jnp.where(x >= 0.0, y, -y)


def _gelu_kernel(x):
    # PyTorch nn.GELU default (erf-based), with in-kernel erf approximation.
    return 0.5 * x * (1.0 + _erf_poly(x * (1.0 / math.sqrt(2.0))))


def _gelu_exact(x):
    # Reference (outside kernel): exact erf-based GELU, matches nn.GELU().
    return 0.5 * x * (1.0 + jax.lax.erf(x * (1.0 / math.sqrt(2.0))))


def _transpose_nt(x, eye_d):
    """(n, d) -> (d, n) on the MXU via eye(D,D) contracted with x's last dim
    (NT matmul form -- the best-supported dot_general layout on TPU)."""
    # result[i, j] = sum_k eye[i, k] * x[j, k] = x[j, i]
    return jax.lax.dot_general(eye_d, x, (((1,), (1,)), ((), ())),
                               preferred_element_type=jnp.float32)


def _lit3d_kernel(T, scale,
                  patches_ref, conv_w_ref, conv_b_ref,
                  ln_in_g_ref, ln_in_b_ref, wkv_ref,
                  tmpl_ref, ln_t_g_ref, ln_t_b_ref, wq_ref,
                  ln_m_g_ref, ln_m_b_ref, w1_ref, b1_ref, w2_ref, b2_ref,
                  templates_out_ref, attn_out_ref):
    """One grid step == `bt` batch elements.  Everything runs in VMEM."""
    bt, _, L = attn_out_ref.shape                  # attn block: (bt, N, L)
    D = wq_ref.shape[0]

    # ---- shared (batched) part: Conv3d(k=3,s=2,p=0) as im2col matmul + ReLU,
    #      LayerNorm, fused K/V projection -- one big MXU slab of bt*L rows ----
    patches = patches_ref[...]                     # (bt*L, K)
    h = jnp.dot(patches, conv_w_ref[...], preferred_element_type=jnp.float32)
    h = jnp.maximum(h + conv_b_ref[...], 0.0)      # (bt*L, H)
    xn = _layernorm(h, ln_in_g_ref[...], ln_in_b_ref[...])
    kv = jnp.dot(xn, wkv_ref[...], preferred_element_type=jnp.float32)  # (bt*L, 2D)

    # Identity for the final (N, D) -> (D, N) MXU transpose (hoisted out of
    # the per-batch loop; JAX does not CSE broadcast_in_dim).
    row = jax.lax.broadcasted_iota(jnp.int32, (D, D), 0)
    col = jax.lax.broadcasted_iota(jnp.int32, (D, D), 1)
    eye_d = (row == col).astype(jnp.float32)

    # ---- per-batch-element attention recurrence (tiny; static loops) ----
    for bi in range(bt):
        kvb = kv[bi * L:(bi + 1) * L]              # (L, 2D)
        kb = kvb[:, :D]                            # (L, D)
        vb = kvb[:, D:]                            # (L, D)

        templates = tmpl_ref[...]                  # (N, D)
        attn = None
        for _ in range(T):                         # T is small & static -> unrolled
            t_prev = templates
            t = _layernorm(templates, ln_t_g_ref[...], ln_t_b_ref[...])
            q = jnp.dot(t, wq_ref[...], preferred_element_type=jnp.float32) * scale

            # logits kept transposed as (N, L): lane-dense along L.
            # q (N,D) contracted with k (L,D) on the D axis (NT matmul form).
            logits = jax.lax.dot_general(q, kb, (((1,), (1,)), ((), ())),
                                         preferred_element_type=jnp.float32)
            logits = logits - jnp.max(logits, axis=0, keepdims=True)
            e = jnp.exp(logits)
            # softmax over N (axis 0); then "+1e-8, normalize over L (axis 1)"
            attn = e * pl.reciprocal(jnp.sum(e, axis=0, keepdims=True), approx=True)
            attn = attn + 1e-8
            attn = attn * pl.reciprocal(jnp.sum(attn, axis=1, keepdims=True),
                                        approx=True)

            # einsum('bld,bln->bnd', v, attn) == attn_(N,L) @ v_(L,D)
            templates = t_prev + jnp.dot(attn, vb,
                                         preferred_element_type=jnp.float32)

            tm = _layernorm(templates, ln_m_g_ref[...], ln_m_b_ref[...])
            hid = _gelu_kernel(
                jnp.dot(tm, w1_ref[...], preferred_element_type=jnp.float32)
                + b1_ref[...])
            templates = templates + (
                jnp.dot(hid, w2_ref[...], preferred_element_type=jnp.float32)
                + b2_ref[...])

        templates_out_ref[bi] = _transpose_nt(templates, eye_d)  # (D, N)
        attn_out_ref[bi] = attn                                   # (N, L)


def _im2col_3d(x, ks=3, st=2):
    """x: (B, C, X, Y, Z) -> patches (B, L, C*ks^3), plus output spatial dims."""
    B, C, X, Y, Z = x.shape
    Xo = (X - ks) // st + 1
    Yo = (Y - ks) // st + 1
    Zo = (Z - ks) // st + 1
    pats = []
    for dx in range(ks):
        for dy in range(ks):
            for dz in range(ks):
                pats.append(x[:, :,
                              dx: dx + st * (Xo - 1) + 1: st,
                              dy: dy + st * (Yo - 1) + 1: st,
                              dz: dz + st * (Zo - 1) + 1: st])
    pats = jnp.stack(pats, axis=2)                       # (B, C, 27, Xo, Yo, Zo)
    patches = jnp.transpose(pats, (0, 3, 4, 5, 1, 2)).reshape(
        B, Xo * Yo * Zo, C * ks ** 3)
    return patches, (Xo, Yo, Zo)


_PARAM_ORDER = ['conv_w', 'conv_b', 'ln_in_g', 'ln_in_b', 'wkv', 'tmpl',
                'ln_t_g', 'ln_t_b', 'wq', 'ln_m_g', 'ln_m_b', 'w1', 'b1', 'w2', 'b2']


def lit3d_forward(x, params, T, N, batch_block=1):
    """x: (B, C_in, X, Y, Z) float32.
    Returns (templates (B, D, N), attn (B, N, Xo, Yo, Zo))."""
    assert T >= 1, "T >= 1 required (attn is undefined for T == 0)"
    B = x.shape[0]
    bt = batch_block
    assert B % bt == 0, (B, bt)

    patches, (Xo, Yo, Zo) = _im2col_3d(x)
    L, K = patches.shape[1], patches.shape[2]
    patches = patches.reshape(B * L, K)                  # free reshape
    D = params['wq'].shape[0]
    scale = float(D) ** (-0.5)

    # Fuse the (bias-free) K and V projection weights into one matmul weight.
    p = dict(params)
    p['wkv'] = jnp.concatenate([params['wk'], params['wv']], axis=1)   # (H, 2D)

    kernel = functools.partial(_lit3d_kernel, T, scale)

    in_specs = [pl.BlockSpec((bt * L, K), lambda b: (b, 0))]
    args = [patches]
    for name in _PARAM_ORDER:
        w = p[name]
        in_specs.append(pl.BlockSpec(w.shape, lambda b, r=w.ndim: (0,) * r))
        args.append(w)

    out_shapes = (jax.ShapeDtypeStruct((B, D, N), jnp.float32),
                  jax.ShapeDtypeStruct((B, N, L), jnp.float32))
    out_specs = (pl.BlockSpec((bt, D, N), lambda b: (b, 0, 0)),
                 pl.BlockSpec((bt, N, L), lambda b: (b, 0, 0)))

    templates, attn = pl.pallas_call(
        kernel,
        out_shape=out_shapes,
        grid=(B // bt,),
        in_specs=in_specs,
        out_specs=out_specs,
        compiler_params=pltpu.CompilerParams(
            dimension_semantics=("parallel",),
            vmem_limit_bytes=32 * 1024 * 1024),
    )(*args)

    # attn already lives in the module's (B, N, L) layout -> pure reshape.
    attn = attn.reshape(B, N, Xo, Yo, Zo)
    return templates, attn


def lit3d_reference(x, params, T, N):
    """Pure-JAX mirror of the PyTorch forward, for verification."""
    B = x.shape[0]
    patches, (Xo, Yo, Zo) = _im2col_3d(x)
    D = params['wq'].shape[0]
    scale = float(D) ** (-0.5)

    h = jnp.maximum(patches @ params['conv_w'] + params['conv_b'], 0.0)
    xn = _layernorm(h, params['ln_in_g'], params['ln_in_b'])
    k = xn @ params['wk']
    v = xn @ params['wv']
    templates = jnp.broadcast_to(params['tmpl'][None], (B, N, D))
    attn = None
    for _ in range(T):
        tp = templates
        t = _layernorm(templates, params['ln_t_g'], params['ln_t_b'])
        q = (t @ params['wq']) * scale
        logits = jnp.einsum('bnd,bld->bln', q, k)
        attn = jax.nn.softmax(logits, axis=-1)
        attn = attn + 1e-8
        attn = attn / attn.sum(axis=-2, keepdims=True)
        templates = tp + jnp.einsum('bld,bln->bnd', v, attn)
        tm = _layernorm(templates, params['ln_m_g'], params['ln_m_b'])
        templates = templates + (
            _gelu_exact(tm @ params['w1'] + params['b1']) @ params['w2'] + params['b2'])
    templates = jnp.transpose(templates, (0, 2, 1))                     # (B, D, N)
    attn = jnp.transpose(attn, (0, 2, 1)).reshape(B, N, Xo, Yo, Zo)
    return templates, attn


def make_params(key, input_dim, dim, N):
    hidden_dim = input_dim * 2
    mlp_dim = dim * 2
    K = input_dim * 27
    keys = jax.random.split(key, 10)
    f32 = jnp.float32
    params = {
        'conv_w':  0.1 * jax.random.normal(keys[0], (K, hidden_dim), f32),
        'conv_b':  0.1 * jax.random.normal(keys[1], (1, hidden_dim), f32),
        'ln_in_g': jnp.ones((1, hidden_dim), f32),
        'ln_in_b': jnp.zeros((1, hidden_dim), f32),
        'wk':      0.1 * jax.random.normal(keys[2], (hidden_dim, dim), f32),
        'wv':      0.1 * jax.random.normal(keys[3], (hidden_dim, dim), f32),
        'tmpl':    jax.random.normal(keys[4], (N, dim), f32),
        'ln_t_g':  jnp.ones((1, dim), f32),
        'ln_t_b':  jnp.zeros((1, dim), f32),
        'wq':      0.1 * jax.random.normal(keys[5], (dim, dim), f32),
        'ln_m_g':  jnp.ones((1, dim), f32),
        'ln_m_b':  jnp.zeros((1, dim), f32),
        'w1':      0.1 * jax.random.normal(keys[6], (dim, mlp_dim), f32),
        'b1':      0.1 * jax.random.normal(keys[7], (1, mlp_dim), f32),
        'w2':      0.1 * jax.random.normal(keys[8], (mlp_dim, dim), f32),
        'b2':      0.1 * jax.random.normal(keys[9], (1, dim), f32),
    }
    return params


if __name__ == "__main__":
    # Module config: T iters, N superfeatures, input_dim local-feature channels,
    # feat_dim (dim) superfeature width.
    T, N, input_dim, feat_dim, out_dim = 2, 8, 4, 32, 16
    B, X, Y, Z = 4, 9, 9, 9          # conv(3, stride 2, pad 0) -> 4x4x4, L = 64

    key = jax.random.PRNGKey(0)
    kx, kp = jax.random.split(key)
    x = jax.random.normal(kx, (B, input_dim, X, Y, Z), jnp.float32)
    params = make_params(kp, input_dim, feat_dim, N)

    # batch_block=2 -> 2 batch elements fused per grid step, grid=(2,) so both
    # the batch-blocking path and grid iteration are exercised.
    templates, attn = lit3d_forward(x, params, T, N, batch_block=2)
    jax.block_until_ready((templates, attn))

    assert templates.shape == (B, feat_dim, N), templates.shape
    assert attn.shape == (B, N, 4, 4, 4), attn.shape

    t_ref, a_ref = lit3d_reference(x, params, T, N)
    # Tolerance accounts for the approx-reciprocal (EUP vrcp) softmax
    # normalization and the polynomial erf inside the kernel; everything else
    # is exact f32.
    assert jnp.allclose(templates, t_ref, atol=1e-2, rtol=1e-2), \
        float(jnp.max(jnp.abs(templates - t_ref)))
    assert jnp.allclose(attn, a_ref, atol=1e-2, rtol=1e-2), \
        float(jnp.max(jnp.abs(attn - a_ref)))

    print("KERNEL_OK")
</pallas_src>

<mosaic_0001>
module attributes {stable_mosaic.version = 11 : i64} {
  func.func @_lit3d_kernel(%arg0: i32, %arg1: memref<128x108xf32, #tpu.memory_space<vmem>>, %arg2: memref<108x8xf32, #tpu.memory_space<vmem>>, %arg3: memref<1x8xf32, #tpu.memory_space<vmem>>, %arg4: memref<1x8xf32, #tpu.memory_space<vmem>>, %arg5: memref<1x8xf32, #tpu.memory_space<vmem>>, %arg6: memref<8x64xf32, #tpu.memory_space<vmem>>, %arg7: memref<8x32xf32, #tpu.memory_space<vmem>>, %arg8: memref<1x32xf32, #tpu.memory_space<vmem>>, %arg9: memref<1x32xf32, #tpu.memory_space<vmem>>, %arg10: memref<32x32xf32, #tpu.memory_space<vmem>>, %arg11: memref<1x32xf32, #tpu.memory_space<vmem>>, %arg12: memref<1x32xf32, #tpu.memory_space<vmem>>, %arg13: memref<32x64xf32, #tpu.memory_space<vmem>>, %arg14: memref<1x64xf32, #tpu.memory_space<vmem>>, %arg15: memref<64x32xf32, #tpu.memory_space<vmem>>, %arg16: memref<1x32xf32, #tpu.memory_space<vmem>>, %arg17: memref<2x32x8xf32, #tpu.memory_space<vmem>>, %arg18: memref<2x8x64xf32, #tpu.memory_space<vmem>>) attributes {dimension_semantics = [#tpu.dimension_semantics<parallel>], iteration_bounds = array<i64: 2>, scalar_prefetch = 0 : i64, scratch_operands = 0 : i64, tpu.core_type = #tpu.core_type<tc>, window_params = [{transform_indices = @transform_0, window_bounds = array<i64: 128, 108>}, {pipeline_mode = #tpu.pipeline_mode<synchronous>, transform_indices = @transform_1, window_bounds = array<i64: 108, 8>}, {pipeline_mode = #tpu.pipeline_mode<synchronous>, transform_indices = @transform_2, window_bounds = array<i64: 1, 8>}, {pipeline_mode = #tpu.pipeline_mode<synchronous>, transform_indices = @transform_3, window_bounds = array<i64: 1, 8>}, {pipeline_mode = #tpu.pipeline_mode<synchronous>, transform_indices = @transform_4, window_bounds = array<i64: 1, 8>}, {pipeline_mode = #tpu.pipeline_mode<synchronous>, transform_indices = @transform_5, window_bounds = array<i64: 8, 64>}, {pipeline_mode = #tpu.pipeline_mode<synchronous>, transform_indices = @transform_6, window_bounds = array<i64: 8, 32>}, {pipeline_mode = #tpu.pipeline_mode<synchronous>, transform_indices = @transform_7, window_bounds = array<i64: 1, 32>}, {pipeline_mode = #tpu.pipeline_mode<synchronous>, transform_indices = @transform_8, window_bounds = array<i64: 1, 32>}, {pipeline_mode = #tpu.pipeline_mode<synchronous>, transform_indices = @transform_9, window_bounds = array<i64: 32, 32>}, {pipeline_mode = #tpu.pipeline_mode<synchronous>, transform_indices = @transform_10, window_bounds = array<i64: 1, 32>}, {pipeline_mode = #tpu.pipeline_mode<synchronous>, transform_indices = @transform_11, window_bounds = array<i64: 1, 32>}, {pipeline_mode = #tpu.pipeline_mode<synchronous>, transform_indices = @transform_12, window_bounds = array<i64: 32, 64>}, {pipeline_mode = #tpu.pipeline_mode<synchronous>, transform_indices = @transform_13, window_bounds = array<i64: 1, 64>}, {pipeline_mode = #tpu.pipeline_mode<synchronous>, transform_indices = @transform_14, window_bounds = array<i64: 64, 32>}, {pipeline_mode = #tpu.pipeline_mode<synchronous>, transform_indices = @transform_15, window_bounds = array<i64: 1, 32>}, {transform_indices = @transform_16, window_bounds = array<i64: 2, 32, 8>}, {transform_indices = @transform_17, window_bounds = array<i64: 2, 8, 64>}]} {
    %c0 = arith.constant 0 : index
    %c0_0 = arith.constant 0 : index
    %0 = vector.load %arg1[%c0, %c0_0] : memref<128x108xf32, #tpu.memory_space<vmem>>, vector<128x108xf32>
    %c0_1 = arith.constant 0 : index
    %c0_2 = arith.constant 0 : index
    %1 = vector.load %arg2[%c0_1, %c0_2] : memref<108x8xf32, #tpu.memory_space<vmem>>, vector<108x8xf32>
    %cst = arith.constant dense<0.000000e+00> : vector<128x8xf32>
    %2 = tpu.matmul %0, %1, %cst {dimension_numbers = #tpu.dot_dimension_numbers<[1], [0], [0], [1], [0, 0, 1, 1], [], []>} : vector<128x108xf32>, vector<108x8xf32>, vector<128x8xf32> -> vector<128x8xf32>
    %c0_3 = arith.constant 0 : index
    %c0_4 = arith.constant 0 : index
    %3 = vector.load %arg3[%c0_3, %c0_4] : memref<1x8xf32, #tpu.memory_space<vmem>>, vector<1x8xf32>
    %4 = vector.broadcast %3 : vector<1x8xf32> to vector<128x8xf32>
    %5 = arith.addf %2, %4 : vector<128x8xf32>
    %cst_5 = arith.constant 0.000000e+00 : f32
    %6 = vector.broadcast %cst_5 : f32 to vector<128x8xf32>
    %7 = arith.maximumf %5, %6 : vector<128x8xf32>
    %c0_6 = arith.constant 0 : index
    %c0_7 = arith.constant 0 : index
    %8 = vector.load %arg4[%c0_6, %c0_7] : memref<1x8xf32, #tpu.memory_space<vmem>>, vector<1x8xf32>
    %c0_8 = arith.constant 0 : index
    %c0_9 = arith.constant 0 : index
    %9 = vector.load %arg5[%c0_8, %c0_9] : memref<1x8xf32, #tpu.memory_space<vmem>>, vector<1x8xf32>
    %cst_10 = arith.constant dense<0.000000e+00> : vector<128xf32>
    %10 = vector.multi_reduction <add>, %7, %cst_10 [1] : vector<128x8xf32> to vector<128xf32>
    %11 = vector.shape_cast %10 : vector<128xf32> to vector<128x1xf32>
    %cst_11 = arith.constant 8.000000e+00 : f32
    %12 = vector.broadcast %cst_11 : f32 to vector<128x1xf32>
    %13 = arith.divf %11, %12 : vector<128x1xf32>
    %14 = vector.broadcast %13 : vector<128x1xf32> to vector<128x8xf32>
    %15 = arith.subf %7, %14 : vector<128x8xf32>
    %16 = arith.mulf %15, %15 : vector<128x8xf32>
    %cst_12 = arith.constant dense<0.000000e+00> : vector<128xf32>
    %17 = vector.multi_reduction <add>, %16, %cst_12 [1] : vector<128x8xf32> to vector<128xf32>
    %18 = vector.shape_cast %17 : vector<128xf32> to vector<128x1xf32>
    %cst_13 = arith.constant 8.000000e+00 : f32
    %19 = vector.broadcast %cst_13 : f32 to vector<128x1xf32>
    %20 = arith.divf %18, %19 : vector<128x1xf32>
    %21 = vector.broadcast %13 : vector<128x1xf32> to vector<128x8xf32>
    %22 = arith.subf %7, %21 : vector<128x8xf32>
    %cst_14 = arith.constant 9.99999974E-6 : f32
    %23 = vector.broadcast %cst_14 : f32 to vector<128x1xf32>
    %24 = arith.addf %20, %23 : vector<128x1xf32>
    %25 = math.rsqrt %24 : vector<128x1xf32>
    %26 = vector.broadcast %25 : vector<128x1xf32> to vector<128x8xf32>
    %27 = arith.mulf %22, %26 : vector<128x8xf32>
    %28 = vector.broadcast %8 : vector<1x8xf32> to vector<128x8xf32>
    %29 = arith.mulf %27, %28 : vector<128x8xf32>
    %30 = vector.broadcast %9 : vector<1x8xf32> to vector<128x8xf32>
    %31 = arith.addf %29, %30 : vector<128x8xf32>
    %c0_15 = arith.constant 0 : index
    %c0_16 = arith.constant 0 : index
    %32 = vector.load %arg6[%c0_15, %c0_16] : memref<8x64xf32, #tpu.memory_space<vmem>>, vector<8x64xf32>
    %cst_17 = arith.constant dense<0.000000e+00> : vector<128x64xf32>
    %33 = tpu.matmul %31, %32, %cst_17 {dimension_numbers = #tpu.dot_dimension_numbers<[1], [0], [0], [1], [0, 0, 1, 1], [], []>} : vector<128x8xf32>, vector<8x64xf32>, vector<128x64xf32> -> vector<128x64xf32>
    %34 = tpu.iota {dimensions = array<i32: 0>} : vector<32x32xi32>
    %35 = tpu.iota {dimensions = array<i32: 1>} : vector<32x32xi32>
    %36 = arith.cmpi eq, %34, %35 : vector<32x32xi32>
    %37 = arith.extui %36 : vector<32x32xi1> to vector<32x32xi32>
    %38 = arith.sitofp %37 : vector<32x32xi32> to vector<32x32xf32>
    %39 = vector.extract_strided_slice %33 {offsets = [0, 0], sizes = [64, 64], strides = [1, 1]} : vector<128x64xf32> to vector<64x64xf32>
    %40 = vector.extract_strided_slice %39 {offsets = [0, 0], sizes = [64, 32], strides = [1, 1]} : vector<64x64xf32> to vector<64x32xf32>
    %41 = vector.extract_strided_slice %39 {offsets = [0, 32], sizes = [64, 32], strides = [1, 1]} : vector<64x64xf32> to vector<64x32xf32>
    %c0_18 = arith.constant 0 : index
    %c0_19 = arith.constant 0 : index
    %42 = vector.load %arg7[%c0_18, %c0_19] : memref<8x32xf32, #tpu.memory_space<vmem>>, vector<8x32xf32>
    %c0_20 = arith.constant 0 : index
    %c0_21 = arith.constant 0 : index
    %43 = vector.load %arg8[%c0_20, %c0_21] : memref<1x32xf32, #tpu.memory_space<vmem>>, vector<1x32xf32>
    %c0_22 = arith.constant 0 : index
    %c0_23 = arith.constant 0 : index
    %44 = vector.load %arg9[%c0_22, %c0_23] : memref<1x32xf32, #tpu.memory_space<vmem>>, vector<1x32xf32>
    %cst_24 = arith.constant dense<0.000000e+00> : vector<8xf32>
    %45 = vector.multi_reduction <add>, %42, %cst_24 [1] : vector<8x32xf32> to vector<8xf32>
    %46 = vector.shape_cast %45 : vector<8xf32> to vector<8x1xf32>
    %cst_25 = arith.constant 3.200000e+01 : f32
    %47 = vector.broadcast %cst_25 : f32 to vector<8x1xf32>
    %48 = arith.divf %46, %47 : vector<8x1xf32>
    %49 = vector.broadcast %48 : vector<8x1xf32> to vector<8x32xf32>
    %50 = arith.subf %42, %49 : vector<8x32xf32>
    %51 = arith.mulf %50, %50 : vector<8x32xf32>
    %cst_26 = arith.constant dense<0.000000e+00> : vector<8xf32>
    %52 = vector.multi_reduction <add>, %51, %cst_26 [1] : vector<8x32xf32> to vector<8xf32>
    %53 = vector.shape_cast %52 : vector<8xf32> to vector<8x1xf32>
    %cst_27 = arith.constant 3.200000e+01 : f32
    %54 = vector.broadcast %cst_27 : f32 to vector<8x1xf32>
    %55 = arith.divf %53, %54 : vector<8x1xf32>
    %56 = vector.broadcast %48 : vector<8x1xf32> to vector<8x32xf32>
    %57 = arith.subf %42, %56 : vector<8x32xf32>
    %cst_28 = arith.constant 9.99999974E-6 : f32
    %58 = vector.broadcast %cst_28 : f32 to vector<8x1xf32>
    %59 = arith.addf %55, %58 : vector<8x1xf32>
    %60 = math.rsqrt %59 : vector<8x1xf32>
    %61 = vector.broadcast %60 : vector<8x1xf32> to vector<8x32xf32>
    %62 = arith.mulf %57, %61 : vector<8x32xf32>
    %63 = vector.broadcast %43 : vector<1x32xf32> to vector<8x32xf32>
    %64 = arith.mulf %62, %63 : vector<8x32xf32>
    %65 = vector.broadcast %44 : vector<1x32xf32> to vector<8x32xf32>
    %66 = arith.addf %64, %65 : vector<8x32xf32>
    %c0_29 = arith.constant 0 : index
    %c0_30 = arith.constant 0 : index
    %67 = vector.load %arg10[%c0_29, %c0_30] : memref<32x32xf32, #tpu.memory_space<vmem>>, vector<32x32xf32>
    %cst_31 = arith.constant dense<0.000000e+00> : vector<8x32xf32>
    %68 = tpu.matmul %66, %67, %cst_31 {dimension_numbers = #tpu.dot_dimension_numbers<[1], [0], [0], [1], [0, 0, 1, 1], [], []>} : vector<8x32xf32>, vector<32x32xf32>, vector<8x32xf32> -> vector<8x32xf32>
    %cst_32 = arith.constant 0.176776692 : f32
    %69 = vector.broadcast %cst_32 : f32 to vector<8x32xf32>
    %70 = arith.mulf %68, %69 : vector<8x32xf32>
    %cst_33 = arith.constant dense<0.000000e+00> : vector<8x64xf32>
    %71 = tpu.matmul %70, %40, %cst_33 {dimension_numbers = #tpu.dot_dimension_numbers<[1], [1], [0], [0], [0, 0, 1, 0], [], []>} : vector<8x32xf32>, vector<64x32xf32>, vector<8x64xf32> -> vector<8x64xf32>
    %cst_34 = arith.constant dense<0xFF800000> : vector<64xf32>
    %72 = vector.multi_reduction <maximumf>, %71, %cst_34 [0] : vector<8x64xf32> to vector<64xf32>
    %73 = vector.shape_cast %72 : vector<64xf32> to vector<1x64xf32>
    %74 = vector.broadcast %73 : vector<1x64xf32> to vector<8x64xf32>
    %75 = arith.subf %71, %74 : vector<8x64xf32>
    %76 = math.exp %75 : vector<8x64xf32>
    %cst_35 = arith.constant dense<0.000000e+00> : vector<64xf32>
    %77 = vector.multi_reduction <add>, %76, %cst_35 [0] : vector<8x64xf32> to vector<64xf32>
    %78 = vector.shape_cast %77 : vector<64xf32> to vector<1x64xf32>
    %79 = tpu.reciprocal %78 {approx = true} : vector<1x64xf32> -> vector<1x64xf32>
    %80 = vector.broadcast %79 : vector<1x64xf32> to vector<8x64xf32>
    %81 = arith.mulf %76, %80 : vector<8x64xf32>
    %cst_36 = arith.constant 9.99999993E-9 : f32
    %82 = vector.broadcast %cst_36 : f32 to vector<8x64xf32>
    %83 = arith.addf %81, %82 : vector<8x64xf32>
    %cst_37 = arith.constant dense<0.000000e+00> : vector<8xf32>
    %84 = vector.multi_reduction <add>, %83, %cst_37 [1] : vector<8x64xf32> to vector<8xf32>
    %85 = vector.shape_cast %84 : vector<8xf32> to vector<8x1xf32>
    %86 = tpu.reciprocal %85 {approx = true} : vector<8x1xf32> -> vector<8x1xf32>
    %87 = vector.broadcast %86 : vector<8x1xf32> to vector<8x64xf32>
    %88 = arith.mulf %83, %87 : vector<8x64xf32>
    %cst_38 = arith.constant dense<0.000000e+00> : vector<8x32xf32>
    %89 = tpu.matmul %88, %41, %cst_38 {dimension_numbers = #tpu.dot_dimension_numbers<[1], [0], [0], [1], [0, 0, 1, 1], [], []>} : vector<8x64xf32>, vector<64x32xf32>, vector<8x32xf32> -> vector<8x32xf32>
    %90 = arith.addf %42, %89 : vector<8x32xf32>
    %c0_39 = arith.constant 0 : index
    %c0_40 = arith.constant 0 : index
    %91 = vector.load %arg11[%c0_39, %c0_40] : memref<1x32xf32, #tpu.memory_space<vmem>>, vector<1x32xf32>
    %c0_41 = arith.constant 0 : index
    %c0_42 = arith.constant 0 : index
    %92 = vector.load %arg12[%c0_41, %c0_42] : memref<1x32xf32, #tpu.memory_space<vmem>>, vector<1x32xf32>
    %cst_43 = arith.constant dense<0.000000e+00> : vector<8xf32>
    %93 = vector.multi_reduction <add>, %90, %cst_43 [1] : vector<8x32xf32> to vector<8xf32>
    %94 = vector.shape_cast %93 : vector<8xf32> to vector<8x1xf32>
    %cst_44 = arith.constant 3.200000e+01 : f32
    %95 = vector.broadcast %cst_44 : f32 to vector<8x1xf32>
    %96 = arith.divf %94, %95 : vector<8x1xf32>
    %97 = vector.broadcast %96 : vector<8x1xf32> to vector<8x32xf32>
    %98 = arith.subf %90, %97 : vector<8x32xf32>
    %99 = arith.mulf %98, %98 : vector<8x32xf32>
    %cst_45 = arith.constant dense<0.000000e+00> : vector<8xf32>
    %100 = vector.multi_reduction <add>, %99, %cst_45 [1] : vector<8x32xf32> to vector<8xf32>
    %101 = vector.shape_cast %100 : vector<8xf32> to vector<8x1xf32>
    %cst_46 = arith.constant 3.200000e+01 : f32
    %102 = vector.broadcast %cst_46 : f32 to vector<8x1xf32>
    %103 = arith.divf %101, %102 : vector<8x1xf32>
    %104 = vector.broadcast %96 : vector<8x1xf32> to vector<8x32xf32>
    %105 = arith.subf %90, %104 : vector<8x32xf32>
    %cst_47 = arith.constant 9.99999974E-6 : f32
    %106 = vector.broadcast %cst_47 : f32 to vector<8x1xf32>
    %107 = arith.addf %103, %106 : vector<8x1xf32>
    %108 = math.rsqrt %107 : vector<8x1xf32>
    %109 = vector.broadcast %108 : vector<8x1xf32> to vector<8x32xf32>
    %110 = arith.mulf %105, %109 : vector<8x32xf32>
    %111 = vector.broadcast %91 : vector<1x32xf32> to vector<8x32xf32>
    %112 = arith.mulf %110, %111 : vector<8x32xf32>
    %113 = vector.broadcast %92 : vector<1x32xf32> to vector<8x32xf32>
    %114 = arith.addf %112, %113 : vector<8x32xf32>
    %c0_48 = arith.constant 0 : index
    %c0_49 = arith.constant 0 : index
    %115 = vector.load %arg13[%c0_48, %c0_49] : memref<32x64xf32, #tpu.memory_space<vmem>>, vector<32x64xf32>
    %cst_50 = arith.constant dense<0.000000e+00> : vector<8x64xf32>
    %116 = tpu.matmul %114, %115, %cst_50 {dimension_numbers = #tpu.dot_dimension_numbers<[1], [0], [0], [1], [0, 0, 1, 1], [], []>} : vector<8x32xf32>, vector<32x64xf32>, vector<8x64xf32> -> vector<8x64xf32>
    %c0_51 = arith.constant 0 : index
    %c0_52 = arith.constant 0 : index
    %117 = vector.load %arg14[%c0_51, %c0_52] : memref<1x64xf32, #tpu.memory_space<vmem>>, vector<1x64xf32>
    %118 = vector.broadcast %117 : vector<1x64xf32> to vector<8x64xf32>
    %119 = arith.addf %116, %118 : vector<8x64xf32>
    %cst_53 = arith.constant 5.000000e-01 : f32
    %120 = vector.broadcast %cst_53 : f32 to vector<8x64xf32>
    %121 = arith.mulf %120, %119 : vector<8x64xf32>
    %cst_54 = arith.constant 0.707106769 : f32
    %122 = vector.broadcast %cst_54 : f32 to vector<8x64xf32>
    %123 = arith.mulf %119, %122 : vector<8x64xf32>
    %124 = math.absf %123 : vector<8x64xf32>
    %cst_55 = arith.constant 0.327591091 : f32
    %125 = vector.broadcast %cst_55 : f32 to vector<8x64xf32>
    %126 = arith.mulf %125, %124 : vector<8x64xf32>
    %cst_56 = arith.constant 1.000000e+00 : f32
    %127 = vector.broadcast %cst_56 : f32 to vector<8x64xf32>
    %128 = arith.addf %127, %126 : vector<8x64xf32>
    %cst_57 = arith.constant 1.000000e+00 : f32
    %129 = vector.broadcast %cst_57 : f32 to vector<8x64xf32>
    %130 = arith.divf %129, %128 : vector<8x64xf32>
    %cst_58 = arith.constant 1.06140542 : f32
    %131 = vector.broadcast %cst_58 : f32 to vector<8x64xf32>
    %132 = arith.mulf %131, %130 : vector<8x64xf32>
    %cst_59 = arith.constant -1.45315206 : f32
    %133 = vector.broadcast %cst_59 : f32 to vector<8x64xf32>
    %134 = arith.addf %132, %133 : vector<8x64xf32>
    %135 = arith.mulf %134, %130 : vector<8x64xf32>
    %cst_60 = arith.constant 1.42141378 : f32
    %136 = vector.broadcast %cst_60 : f32 to vector<8x64xf32>
    %137 = arith.addf %135, %136 : vector<8x64xf32>
    %138 = arith.mulf %137, %130 : vector<8x64xf32>
    %cst_61 = arith.constant -0.284496725 : f32
    %139 = vector.broadcast %cst_61 : f32 to vector<8x64xf32>
    %140 = arith.addf %138, %139 : vector<8x64xf32>
    %141 = arith.mulf %140, %130 : vector<8x64xf32>
    %cst_62 = arith.constant 0.254829586 : f32
    %142 = vector.broadcast %cst_62 : f32 to vector<8x64xf32>
    %143 = arith.addf %141, %142 : vector<8x64xf32>
    %144 = arith.mulf %143, %130 : vector<8x64xf32>
    %cst_63 = arith.constant 0.000000e+00 : f32
    %145 = vector.broadcast %cst_63 : f32 to vector<8x64xf32>
    %146 = arith.subf %145, %124 : vector<8x64xf32>
    %147 = arith.mulf %146, %124 : vector<8x64xf32>
    %148 = math.exp %147 : vector<8x64xf32>
    %149 = arith.mulf %144, %148 : vector<8x64xf32>
    %cst_64 = arith.constant 1.000000e+00 : f32
    %150 = vector.broadcast %cst_64 : f32 to vector<8x64xf32>
    %151 = arith.subf %150, %149 : vector<8x64xf32>
    %cst_65 = arith.constant 0.000000e+00 : f32
    %152 = vector.broadcast %cst_65 : f32 to vector<8x64xf32>
    %153 = arith.cmpf oge, %123, %152 : vector<8x64xf32>
    %cst_66 = arith.constant 0.000000e+00 : f32
    %154 = vector.broadcast %cst_66 : f32 to vector<8x64xf32>
    %155 = arith.subf %154, %151 : vector<8x64xf32>
    %156 = arith.select %153, %151, %155 : vector<8x64xi1>, vector<8x64xf32>
    %cst_67 = arith.constant 1.000000e+00 : f32
    %157 = vector.broadcast %cst_67 : f32 to vector<8x64xf32>
    %158 = arith.addf %157, %156 : vector<8x64xf32>
    %159 = arith.mulf %121, %158 : vector<8x64xf32>
    %c0_68 = arith.constant 0 : index
    %c0_69 = arith.constant 0 : index
    %160 = vector.load %arg15[%c0_68, %c0_69] : memref<64x32xf32, #tpu.memory_space<vmem>>, vector<64x32xf32>
    %cst_70 = arith.constant dense<0.000000e+00> : vector<8x32xf32>
    %161 = tpu.matmul %159, %160, %cst_70 {dimension_numbers = #tpu.dot_dimension_numbers<[1], [0], [0], [1], [0, 0, 1, 1], [], []>} : vector<8x64xf32>, vector<64x32xf32>, vector<8x32xf32> -> vector<8x32xf32>
    %c0_71 = arith.constant 0 : index
    %c0_72 = arith.constant 0 : index
    %162 = vector.load %arg16[%c0_71, %c0_72] : memref<1x32xf32, #tpu.memory_space<vmem>>, vector<1x32xf32>
    %163 = vector.broadcast %162 : vector<1x32xf32> to vector<8x32xf32>
    %164 = arith.addf %161, %163 : vector<8x32xf32>
    %165 = arith.addf %90, %164 : vector<8x32xf32>
    %c0_73 = arith.constant 0 : index
    %c0_74 = arith.constant 0 : index
    %166 = vector.load %arg8[%c0_73, %c0_74] : memref<1x32xf32, #tpu.memory_space<vmem>>, vector<1x32xf32>
    %c0_75 = arith.constant 0 : index
    %c0_76 = arith.constant 0 : index
    %167 = vector.load %arg9[%c0_75, %c0_76] : memref<1x32xf32, #tpu.memory_space<vmem>>, vector<1x32xf32>
    %cst_77 = arith.constant dense<0.000000e+00> : vector<8xf32>
    %168 = vector.multi_reduction <add>, %165, %cst_77 [1] : vector<8x32xf32> to vector<8xf32>
    %169 = vector.shape_cast %168 : vector<8xf32> to vector<8x1xf32>
    %cst_78 = arith.constant 3.200000e+01 : f32
    %170 = vector.broadcast %cst_78 : f32 to vector<8x1xf32>
    %171 = arith.divf %169, %170 : vector<8x1xf32>
    %172 = vector.broadcast %171 : vector<8x1xf32> to vector<8x32xf32>
    %173 = arith.subf %165, %172 : vector<8x32xf32>
    %174 = arith.mulf %173, %173 : vector<8x32xf32>
    %cst_79 = arith.constant dense<0.000000e+00> : vector<8xf32>
    %175 = vector.multi_reduction <add>, %174, %cst_79 [1] : vector<8x32xf32> to vector<8xf32>
    %176 = vector.shape_cast %175 : vector<8xf32> to vector<8x1xf32>
    %cst_80 = arith.constant 3.200000e+01 : f32
    %177 = vector.broadcast %cst_80 : f32 to vector<8x1xf32>
    %178 = arith.divf %176, %177 : vector<8x1xf32>
    %179 = vector.broadcast %171 : vector<8x1xf32> to vector<8x32xf32>
    %180 = arith.subf %165, %179 : vector<8x32xf32>
    %cst_81 = arith.constant 9.99999974E-6 : f32
    %181 = vector.broadcast %cst_81 : f32 to vector<8x1xf32>
    %182 = arith.addf %178, %181 : vector<8x1xf32>
    %183 = math.rsqrt %182 : vector<8x1xf32>
    %184 = vector.broadcast %183 : vector<8x1xf32> to vector<8x32xf32>
    %185 = arith.mulf %180, %184 : vector<8x32xf32>
    %186 = vector.broadcast %166 : vector<1x32xf32> to vector<8x32xf32>
    %187 = arith.mulf %185, %186 : vector<8x32xf32>
    %188 = vector.broadcast %167 : vector<1x32xf32> to vector<8x32xf32>
    %189 = arith.addf %187, %188 : vector<8x32xf32>
    %c0_82 = arith.constant 0 : index
    %c0_83 = arith.constant 0 : index
    %190 = vector.load %arg10[%c0_82, %c0_83] : memref<32x32xf32, #tpu.memory_space<vmem>>, vector<32x32xf32>
    %cst_84 = arith.constant dense<0.000000e+00> : vector<8x32xf32>
    %191 = tpu.matmul %189, %190, %cst_84 {dimension_numbers = #tpu.dot_dimension_numbers<[1], [0], [0], [1], [0, 0, 1, 1], [], []>} : vector<8x32xf32>, vector<32x32xf32>, vector<8x32xf32> -> vector<8x32xf32>
    %cst_85 = arith.constant 0.176776692 : f32
    %192 = vector.broadcast %cst_85 : f32 to vector<8x32xf32>
    %193 = arith.mulf %191, %192 : vector<8x32xf32>
    %cst_86 = arith.constant dense<0.000000e+00> : vector<8x64xf32>
    %194 = tpu.matmul %193, %40, %cst_86 {dimension_numbers = #tpu.dot_dimension_numbers<[1], [1], [0], [0], [0, 0, 1, 0], [], []>} : vector<8x32xf32>, vector<64x32xf32>, vector<8x64xf32> -> vector<8x64xf32>
    %cst_87 = arith.constant dense<0xFF800000> : vector<64xf32>
    %195 = vector.multi_reduction <maximumf>, %194, %cst_87 [0] : vector<8x64xf32> to vector<64xf32>
    %196 = vector.shape_cast %195 : vector<64xf32> to vector<1x64xf32>
    %197 = vector.broadcast %196 : vector<1x64xf32> to vector<8x64xf32>
    %198 = arith.subf %194, %197 : vector<8x64xf32>
    %199 = math.exp %198 : vector<8x64xf32>
    %cst_88 = arith.constant dense<0.000000e+00> : vector<64xf32>
    %200 = vector.multi_reduction <add>, %199, %cst_88 [0] : vector<8x64xf32> to vector<64xf32>
    %201 = vector.shape_cast %200 : vector<64xf32> to vector<1x64xf32>
    %202 = tpu.reciprocal %201 {approx = true} : vector<1x64xf32> -> vector<1x64xf32>
    %203 = vector.broadcast %202 : vector<1x64xf32> to vector<8x64xf32>
    %204 = arith.mulf %199, %203 : vector<8x64xf32>
    %cst_89 = arith.constant 9.99999993E-9 : f32
    %205 = vector.broadcast %cst_89 : f32 to vector<8x64xf32>
    %206 = arith.addf %204, %205 : vector<8x64xf32>
    %cst_90 = arith.constant dense<0.000000e+00> : vector<8xf32>
    %207 = vector.multi_reduction <add>, %206, %cst_90 [1] : vector<8x64xf32> to vector<8xf32>
    %208 = vector.shape_cast %207 : vector<8xf32> to vector<8x1xf32>
    %209 = tpu.reciprocal %208 {approx = true} : vector<8x1xf32> -> vector<8x1xf32>
    %210 = vector.broadcast %209 : vector<8x1xf32> to vector<8x64xf32>
    %211 = arith.mulf %206, %210 : vector<8x64xf32>
    %cst_91 = arith.constant dense<0.000000e+00> : vector<8x32xf32>
    %212 = tpu.matmul %211, %41, %cst_91 {dimension_numbers = #tpu.dot_dimension_numbers<[1], [0], [0], [1], [0, 0, 1, 1], [], []>} : vector<8x64xf32>, vector<64x32xf32>, vector<8x32xf32> -> vector<8x32xf32>
    %213 = arith.addf %165, %212 : vector<8x32xf32>
    %c0_92 = arith.constant 0 : index
    %c0_93 = arith.constant 0 : index
    %214 = vector.load %arg11[%c0_92, %c0_93] : memref<1x32xf32, #tpu.memory_space<vmem>>, vector<1x32xf32>
    %c0_94 = arith.constant 0 : index
    %c0_95 = arith.constant 0 : index
    %215 = vector.load %arg12[%c0_94, %c0_95] : memref<1x32xf32, #tpu.memory_space<vmem>>, vector<1x32xf32>
    %cst_96 = arith.constant dense<0.000000e+00> : vector<8xf32>
    %216 = vector.multi_reduction <add>, %213, %cst_96 [1] : vector<8x32xf32> to vector<8xf32>
    %217 = vector.shape_cast %216 : vector<8xf32> to vector<8x1xf32>
    %cst_97 = arith.constant 3.200000e+01 : f32
    %218 = vector.broadcast %cst_97 : f32 to vector<8x1xf32>
    %219 = arith.divf %217, %218 : vector<8x1xf32>
    %220 = vector.broadcast %219 : vector<8x1xf32> to vector<8x32xf32>
    %221 = arith.subf %213, %220 : vector<8x32xf32>
    %222 = arith.mulf %221, %221 : vector<8x32xf32>
    %cst_98 = arith.constant dense<0.000000e+00> : vector<8xf32>
    %223 = vector.multi_reduction <add>, %222, %cst_98 [1] : vector<8x32xf32> to vector<8xf32>
    %224 = vector.shape_cast %223 : vector<8xf32> to vector<8x1xf32>
    %cst_99 = arith.constant 3.200000e+01 : f32
    %225 = vector.broadcast %cst_99 : f32 to vector<8x1xf32>
    %226 = arith.divf %224, %225 : vector<8x1xf32>
    %227 = vector.broadcast %219 : vector<8x1xf32> to vector<8x32xf32>
    %228 = arith.subf %213, %227 : vector<8x32xf32>
    %cst_100 = arith.constant 9.99999974E-6 : f32
    %229 = vector.broadcast %cst_100 : f32 to vector<8x1xf32>
    %230 = arith.addf %226, %229 : vector<8x1xf32>
    %231 = math.rsqrt %230 : vector<8x1xf32>
    %232 = vector.broadcast %231 : vector<8x1xf32> to vector<8x32xf32>
    %233 = arith.mulf %228, %232 : vector<8x32xf32>
    %234 = vector.broadcast %214 : vector<1x32xf32> to vector<8x32xf32>
    %235 = arith.mulf %233, %234 : vector<8x32xf32>
    %236 = vector.broadcast %215 : vector<1x32xf32> to vector<8x32xf32>
    %237 = arith.addf %235, %236 : vector<8x32xf32>
    %c0_101 = arith.constant 0 : index
    %c0_102 = arith.constant 0 : index
    %238 = vector.load %arg13[%c0_101, %c0_102] : memref<32x64xf32, #tpu.memory_space<vmem>>, vector<32x64xf32>
    %cst_103 = arith.constant dense<0.000000e+00> : vector<8x64xf32>
    %239 = tpu.matmul %237, %238, %cst_103 {dimension_numbers = #tpu.dot_dimension_numbers<[1], [0], [0], [1], [0, 0, 1, 1], [], []>} : vector<8x32xf32>, vector<32x64xf32>, vector<8x64xf32> -> vector<8x64xf32>
    %c0_104 = arith.constant 0 : index
    %c0_105 = arith.constant 0 : index
    %240 = vector.load %arg14[%c0_104, %c0_105] : memref<1x64xf32, #tpu.memory_space<vmem>>, vector<1x64xf32>
    %241 = vector.broadcast %240 : vector<1x64xf32> to vector<8x64xf32>
    %242 = arith.addf %239, %241 : vector<8x64xf32>
    %cst_106 = arith.constant 5.000000e-01 : f32
    %243 = vector.broadcast %cst_106 : f32 to vector<8x64xf32>
    %244 = arith.mulf %243, %242 : vector<8x64xf32>
    %cst_107 = arith.constant 0.707106769 : f32
    %245 = vector.broadcast %cst_107 : f32 to vector<8x64xf32>
    %246 = arith.mulf %242, %245 : vector<8x64xf32>
    %247 = math.absf %246 : vector<8x64xf32>
    %cst_108 = arith.constant 0.327591091 : f32
    %248 = vector.broadcast %cst_108 : f32 to vector<8x64xf32>
    %249 = arith.mulf %248, %247 : vector<8x64xf32>
    %cst_109 = arith.constant 1.000000e+00 : f32
    %250 = vector.broadcast %cst_109 : f32 to vector<8x64xf32>
    %251 = arith.addf %250, %249 : vector<8x64xf32>
    %cst_110 = arith.constant 1.000000e+00 : f32
    %252 = vector.broadcast %cst_110 : f32 to vector<8x64xf32>
    %253 = arith.divf %252, %251 : vector<8x64xf32>
    %cst_111 = arith.constant 1.06140542 : f32
    %254 = vector.broadcast %cst_111 : f32 to vector<8x64xf32>
    %255 = arith.mulf %254, %253 : vector<8x64xf32>
    %cst_112 = arith.constant -1.45315206 : f32
    %256 = vector.broadcast %cst_112 : f32 to vector<8x64xf32>
    %257 = arith.addf %255, %256 : vector<8x64xf32>
    %258 = arith.mulf %257, %253 : vector<8x64xf32>
    %cst_113 = arith.constant 1.42141378 : f32
    %259 = vector.broadcast %cst_113 : f32 to vector<8x64xf32>
    %260 = arith.addf %258, %259 : vector<8x64xf32>
    %261 = arith.mulf %260, %253 : vector<8x64xf32>
    %cst_114 = arith.constant -0.284496725 : f32
    %262 = vector.broadcast %cst_114 : f32 to vector<8x64xf32>
    %263 = arith.addf %261, %262 : vector<8x64xf32>
    %264 = arith.mulf %263, %253 : vector<8x64xf32>
    %cst_115 = arith.constant 0.254829586 : f32
    %265 = vector.broadcast %cst_115 : f32 to vector<8x64xf32>
    %266 = arith.addf %264, %265 : vector<8x64xf32>
    %267 = arith.mulf %266, %253 : vector<8x64xf32>
    %cst_116 = arith.constant 0.000000e+00 : f32
    %268 = vector.broadcast %cst_116 : f32 to vector<8x64xf32>
    %269 = arith.subf %268, %247 : vector<8x64xf32>
    %270 = arith.mulf %269, %247 : vector<8x64xf32>
    %271 = math.exp %270 : vector<8x64xf32>
    %272 = arith.mulf %267, %271 : vector<8x64xf32>
    %cst_117 = arith.constant 1.000000e+00 : f32
    %273 = vector.broadcast %cst_117 : f32 to vector<8x64xf32>
    %274 = arith.subf %273, %272 : vector<8x64xf32>
    %cst_118 = arith.constant 0.000000e+00 : f32
    %275 = vector.broadcast %cst_118 : f32 to vector<8x64xf32>
    %276 = arith.cmpf oge, %246, %275 : vector<8x64xf32>
    %cst_119 = arith.constant 0.000000e+00 : f32
    %277 = vector.broadcast %cst_119 : f32 to vector<8x64xf32>
    %278 = arith.subf %277, %274 : vector<8x64xf32>
    %279 = arith.select %276, %274, %278 : vector<8x64xi1>, vector<8x64xf32>
    %cst_120 = arith.constant 1.000000e+00 : f32
    %280 = vector.broadcast %cst_120 : f32 to vector<8x64xf32>
    %281 = arith.addf %280, %279 : vector<8x64xf32>
    %282 = arith.mulf %244, %281 : vector<8x64xf32>
    %c0_121 = arith.constant 0 : index
    %c0_122 = arith.constant 0 : index
    %283 = vector.load %arg15[%c0_121, %c0_122] : memref<64x32xf32, #tpu.memory_space<vmem>>, vector<64x32xf32>
    %cst_123 = arith.constant dense<0.000000e+00> : vector<8x32xf32>
    %284 = tpu.matmul %282, %283, %cst_123 {dimension_numbers = #tpu.dot_dimension_numbers<[1], [0], [0], [1], [0, 0, 1, 1], [], []>} : vector<8x64xf32>, vector<64x32xf32>, vector<8x32xf32> -> vector<8x32xf32>
    %c0_124 = arith.constant 0 : index
    %c0_125 = arith.constant 0 : index
    %285 = vector.load %arg16[%c0_124, %c0_125] : memref<1x32xf32, #tpu.memory_space<vmem>>, vector<1x32xf32>
    %286 = vector.broadcast %285 : vector<1x32xf32> to vector<8x32xf32>
    %287 = arith.addf %284, %286 : vector<8x32xf32>
    %288 = arith.addf %213, %287 : vector<8x32xf32>
    %cst_126 = arith.constant dense<0.000000e+00> : vector<32x8xf32>
    %289 = tpu.matmul %38, %288, %cst_126 {dimension_numbers = #tpu.dot_dimension_numbers<[1], [1], [0], [0], [0, 0, 1, 0], [], []>} : vector<32x32xf32>, vector<8x32xf32>, vector<32x8xf32> -> vector<32x8xf32>
    %c0_127 = arith.constant 0 : index
    %c0_128 = arith.constant 0 : index
    %c0_129 = arith.constant 0 : index
    %290 = vector.load %arg17[%c0_127, %c0_128, %c0_129] : memref<2x32x8xf32, #tpu.memory_space<vmem>>, vector<1x32x8xf32>
    %291 = vector.shape_cast %290 : vector<1x32x8xf32> to vector<32x8xf32>
    %292 = vector.shape_cast %289 : vector<32x8xf32> to vector<1x32x8xf32>
    tpu.vector_store %arg17[%c0_127, %c0_128, %c0_129], %292 {strides = array<i32>} : memref<2x32x8xf32, #tpu.memory_space<vmem>>, vector<1x32x8xf32>,
    %c0_130 = arith.constant 0 : index
    %c0_131 = arith.constant 0 : index
    %c0_132 = arith.constant 0 : index
    %293 = vector.load %arg18[%c0_130, %c0_131, %c0_132] : memref<2x8x64xf32, #tpu.memory_space<vmem>>, vector<1x8x64xf32>
    %294 = vector.shape_cast %293 : vector<1x8x64xf32> to vector<8x64xf32>
    %295 = vector.shape_cast %211 : vector<8x64xf32> to vector<1x8x64xf32>
    tpu.vector_store %arg18[%c0_130, %c0_131, %c0_132], %295 {strides = array<i32>} : memref<2x8x64xf32, #tpu.memory_space<vmem>>, vector<1x8x64xf32>,
    %296 = vector.extract_strided_slice %33 {offsets = [64, 0], sizes = [64, 64], strides = [1, 1]} : vector<128x64xf32> to vector<64x64xf32>
    %297 = vector.extract_strided_slice %296 {offsets = [0, 0], sizes = [64, 32], strides = [1, 1]} : vector<64x64xf32> to vector<64x32xf32>
    %298 = vector.extract_strided_slice %296 {offsets = [0, 32], sizes = [64, 32], strides = [1, 1]} : vector<64x64xf32> to vector<64x32xf32>
    %c0_133 = arith.constant 0 : index
    %c0_134 = arith.constant 0 : index
    %299 = vector.load %arg7[%c0_133, %c0_134] : memref<8x32xf32, #tpu.memory_space<vmem>>, vector<8x32xf32>
    %c0_135 = arith.constant 0 : index
    %c0_136 = arith.constant 0 : index
    %300 = vector.load %arg8[%c0_135, %c0_136] : memref<1x32xf32, #tpu.memory_space<vmem>>, vector<1x32xf32>
    %c0_137 = arith.constant 0 : index
    %c0_138 = arith.constant 0 : index
    %301 = vector.load %arg9[%c0_137, %c0_138] : memref<1x32xf32, #tpu.memory_space<vmem>>, vector<1x32xf32>
    %cst_139 = arith.constant dense<0.000000e+00> : vector<8xf32>
    %302 = vector.multi_reduction <add>, %299, %cst_139 [1] : vector<8x32xf32> to vector<8xf32>
    %303 = vector.shape_cast %302 : vector<8xf32> to vector<8x1xf32>
    %cst_140 = arith.constant 3.200000e+01 : f32
    %304 = vector.broadcast %cst_140 : f32 to vector<8x1xf32>
    %305 = arith.divf %303, %304 : vector<8x1xf32>
    %306 = vector.broadcast %305 : vector<8x1xf32> to vector<8x32xf32>
    %307 = arith.subf %299, %306 : vector<8x32xf32>
    %308 = arith.mulf %307, %307 : vector<8x32xf32>
    %cst_141 = arith.constant dense<0.000000e+00> : vector<8xf32>
    %309 = vector.multi_reduction <add>, %308, %cst_141 [1] : vector<8x32xf32> to vector<8xf32>
    %310 = vector.shape_cast %309 : vector<8xf32> to vector<8x1xf32>
    %cst_142 = arith.constant 3.200000e+01 : f32
    %311 = vector.broadcast %cst_142 : f32 to vector<8x1xf32>
    %312 = arith.divf %310, %311 : vector<8x1xf32>
    %313 = vector.broadcast %305 : vector<8x1xf32> to vector<8x32xf32>
    %314 = arith.subf %299, %313 : vector<8x32xf32>
    %cst_143 = arith.constant 9.99999974E-6 : f32
    %315 = vector.broadcast %cst_143 : f32 to vector<8x1xf32>
    %316 = arith.addf %312, %315 : vector<8x1xf32>
    %317 = math.rsqrt %316 : vector<8x1xf32>
    %318 = vector.broadcast %317 : vector<8x1xf32> to vector<8x32xf32>
    %319 = arith.mulf %314, %318 : vector<8x32xf32>
    %320 = vector.broadcast %300 : vector<1x32xf32> to vector<8x32xf32>
    %321 = arith.mulf %319, %320 : vector<8x32xf32>
    %322 = vector.broadcast %301 : vector<1x32xf32> to vector<8x32xf32>
    %323 = arith.addf %321, %322 : vector<8x32xf32>
    %c0_144 = arith.constant 0 : index
    %c0_145 = arith.constant 0 : index
    %324 = vector.load %arg10[%c0_144, %c0_145] : memref<32x32xf32, #tpu.memory_space<vmem>>, vector<32x32xf32>
    %cst_146 = arith.constant dense<0.000000e+00> : vector<8x32xf32>
    %325 = tpu.matmul %323, %324, %cst_146 {dimension_numbers = #tpu.dot_dimension_numbers<[1], [0], [0], [1], [0, 0, 1, 1], [], []>} : vector<8x32xf32>, vector<32x32xf32>, vector<8x32xf32> -> vector<8x32xf32>
    %cst_147 = arith.constant 0.176776692 : f32
    %326 = vector.broadcast %cst_147 : f32 to vector<8x32xf32>
    %327 = arith.mulf %325, %326 : vector<8x32xf32>
    %cst_148 = arith.constant dense<0.000000e+00> : vector<8x64xf32>
    %328 = tpu.matmul %327, %297, %cst_148 {dimension_numbers = #tpu.dot_dimension_numbers<[1], [1], [0], [0], [0, 0, 1, 0], [], []>} : vector<8x32xf32>, vector<64x32xf32>, vector<8x64xf32> -> vector<8x64xf32>
    %cst_149 = arith.constant dense<0xFF800000> : vector<64xf32>
    %329 = vector.multi_reduction <maximumf>, %328, %cst_149 [0] : vector<8x64xf32> to vector<64xf32>
    %330 = vector.shape_cast %329 : vector<64xf32> to vector<1x64xf32>
    %331 = vector.broadcast %330 : vector<1x64xf32> to vector<8x64xf32>
    %332 = arith.subf %328, %331 : vector<8x64xf32>
    %333 = math.exp %332 : vector<8x64xf32>
    %cst_150 = arith.constant dense<0.000000e+00> : vector<64xf32>
    %334 = vector.multi_reduction <add>, %333, %cst_150 [0] : vector<8x64xf32> to vector<64xf32>
    %335 = vector.shape_cast %334 : vector<64xf32> to vector<1x64xf32>
    %336 = tpu.reciprocal %335 {approx = true} : vector<1x64xf32> -> vector<1x64xf32>
    %337 = vector.broadcast %336 : vector<1x64xf32> to vector<8x64xf32>
    %338 = arith.mulf %333, %337 : vector<8x64xf32>
    %cst_151 = arith.constant 9.99999993E-9 : f32
    %339 = vector.broadcast %cst_151 : f32 to vector<8x64xf32>
    %340 = arith.addf %338, %339 : vector<8x64xf32>
    %cst_152 = arith.constant dense<0.000000e+00> : vector<8xf32>
    %341 = vector.multi_reduction <add>, %340, %cst_152 [1] : vector<8x64xf32> to vector<8xf32>
    %342 = vector.shape_cast %341 : vector<8xf32> to vector<8x1xf32>
    %343 = tpu.reciprocal %342 {approx = true} : vector<8x1xf32> -> vector<8x1xf32>
    %344 = vector.broadcast %343 : vector<8x1xf32> to vector<8x64xf32>
    %345 = arith.mulf %340, %344 : vector<8x64xf32>
    %cst_153 = arith.constant dense<0.000000e+00> : vector<8x32xf32>
    %346 = tpu.matmul %345, %298, %cst_153 {dimension_numbers = #tpu.dot_dimension_numbers<[1], [0], [0], [1], [0, 0, 1, 1], [], []>} : vector<8x64xf32>, vector<64x32xf32>, vector<8x32xf32> -> vector<8x32xf32>
    %347 = arith.addf %299, %346 : vector<8x32xf32>
    %c0_154 = arith.constant 0 : index
    %c0_155 = arith.constant 0 : index
    %348 = vector.load %arg11[%c0_154, %c0_155] : memref<1x32xf32, #tpu.memory_space<vmem>>, vector<1x32xf32>
    %c0_156 = arith.constant 0 : index
    %c0_157 = arith.constant 0 : index
    %349 = vector.load %arg12[%c0_156, %c0_157] : memref<1x32xf32, #tpu.memory_space<vmem>>, vector<1x32xf32>
    %cst_158 = arith.constant dense<0.000000e+00> : vector<8xf32>
    %350 = vector.multi_reduction <add>, %347, %cst_158 [1] : vector<8x32xf32> to vector<8xf32>
    %351 = vector.shape_cast %350 : vector<8xf32> to vector<8x1xf32>
    %cst_159 = arith.constant 3.200000e+01 : f32
    %352 = vector.broadcast %cst_159 : f32 to vector<8x1xf32>
    %353 = arith.divf %351, %352 : vector<8x1xf32>
    %354 = vector.broadcast %353 : vector<8x1xf32> to vector<8x32xf32>
    %355 = arith.subf %347, %354 : vector<8x32xf32>
    %356 = arith.mulf %355, %355 : vector<8x32xf32>
    %cst_160 = arith.constant dense<0.000000e+00> : vector<8xf32>
    %357 = vector.multi_reduction <add>, %356, %cst_160 [1] : vector<8x32xf32> to vector<8xf32>
    %358 = vector.shape_cast %357 : vector<8xf32> to vector<8x1xf32>
    %cst_161 = arith.constant 3.200000e+01 : f32
    %359 = vector.broadcast %cst_161 : f32 to vector<8x1xf32>
    %360 = arith.divf %358, %359 : vector<8x1xf32>
    %361 = vector.broadcast %353 : vector<8x1xf32> to vector<8x32xf32>
    %362 = arith.subf %347, %361 : vector<8x32xf32>
    %cst_162 = arith.constant 9.99999974E-6 : f32
    %363 = vector.broadcast %cst_162 : f32 to vector<8x1xf32>
    %364 = arith.addf %360, %363 : vector<8x1xf32>
    %365 = math.rsqrt %364 : vector<8x1xf32>
    %366 = vector.broadcast %365 : vector<8x1xf32> to vector<8x32xf32>
    %367 = arith.mulf %362, %366 : vector<8x32xf32>
    %368 = vector.broadcast %348 : vector<1x32xf32> to vector<8x32xf32>
    %369 = arith.mulf %367, %368 : vector<8x32xf32>
    %370 = vector.broadcast %349 : vector<1x32xf32> to vector<8x32xf32>
    %371 = arith.addf %369, %370 : vector<8x32xf32>
    %c0_163 = arith.constant 0 : index
    %c0_164 = arith.constant 0 : index
    %372 = vector.load %arg13[%c0_163, %c0_164] : memref<32x64xf32, #tpu.memory_space<vmem>>, vector<32x64xf32>
    %cst_165 = arith.constant dense<0.000000e+00> : vector<8x64xf32>
    %373 = tpu.matmul %371, %372, %cst_165 {dimension_numbers = #tpu.dot_dimension_numbers<[1], [0], [0], [1], [0, 0, 1, 1], [], []>} : vector<8x32xf32>, vector<32x64xf32>, vector<8x64xf32> -> vector<8x64xf32>
    %c0_166 = arith.constant 0 : index
    %c0_167 = arith.constant 0 : index
    %374 = vector.load %arg14[%c0_166, %c0_167] : memref<1x64xf32, #tpu.memory_space<vmem>>, vector<1x64xf32>
    %375 = vector.broadcast %374 : vector<1x64xf32> to vector<8x64xf32>
    %376 = arith.addf %373, %375 : vector<8x64xf32>
    %cst_168 = arith.constant 5.000000e-01 : f32
    %377 = vector.broadcast %cst_168 : f32 to vector<8x64xf32>
    %378 = arith.mulf %377, %376 : vector<8x64xf32>
    %cst_169 = arith.constant 0.707106769 : f32
    %379 = vector.broadcast %cst_169 : f32 to vector<8x64xf32>
    %380 = arith.mulf %376, %379 : vector<8x64xf32>
    %381 = math.absf %380 : vector<8x64xf32>
    %cst_170 = arith.constant 0.327591091 : f32
    %382 = vector.broadcast %cst_170 : f32 to vector<8x64xf32>
    %383 = arith.mulf %382, %381 : vector<8x64xf32>
    %cst_171 = arith.constant 1.000000e+00 : f32
    %384 = vector.broadcast %cst_171 : f32 to vector<8x64xf32>
    %385 = arith.addf %384, %383 : vector<8x64xf32>
    %cst_172 = arith.constant 1.000000e+00 : f32
    %386 = vector.broadcast %cst_172 : f32 to vector<8x64xf32>
    %387 = arith.divf %386, %385 : vector<8x64xf32>
    %cst_173 = arith.constant 1.06140542 : f32
    %388 = vector.broadcast %cst_173 : f32 to vector<8x64xf32>
    %389 = arith.mulf %388, %387 : vector<8x64xf32>
    %cst_174 = arith.constant -1.45315206 : f32
    %390 = vector.broadcast %cst_174 : f32 to vector<8x64xf32>
    %391 = arith.addf %389, %390 : vector<8x64xf32>
    %392 = arith.mulf %391, %387 : vector<8x64xf32>
    %cst_175 = arith.constant 1.42141378 : f32
    %393 = vector.broadcast %cst_175 : f32 to vector<8x64xf32>
    %394 = arith.addf %392, %393 : vector<8x64xf32>
    %395 = arith.mulf %394, %387 : vector<8x64xf32>
    %cst_176 = arith.constant -0.284496725 : f32
    %396 = vector.broadcast %cst_176 : f32 to vector<8x64xf32>
    %397 = arith.addf %395, %396 : vector<8x64xf32>
    %398 = arith.mulf %397, %387 : vector<8x64xf32>
    %cst_177 = arith.constant 0.254829586 : f32
    %399 = vector.broadcast %cst_177 : f32 to vector<8x64xf32>
    %400 = arith.addf %398, %399 : vector<8x64xf32>
    %401 = arith.mulf %400, %387 : vector<8x64xf32>
    %cst_178 = arith.constant 0.000000e+00 : f32
    %402 = vector.broadcast %cst_178 : f32 to vector<8x64xf32>
    %403 = arith.subf %402, %381 : vector<8x64xf32>
    %404 = arith.mulf %403, %381 : vector<8x64xf32>
    %405 = math.exp %404 : vector<8x64xf32>
    %406 = arith.mulf %401, %405 : vector<8x64xf32>
    %cst_179 = arith.constant 1.000000e+00 : f32
    %407 = vector.broadcast %cst_179 : f32 to vector<8x64xf32>
    %408 = arith.subf %407, %406 : vector<8x64xf32>
    %cst_180 = arith.constant 0.000000e+00 : f32
    %409 = vector.broadcast %cst_180 : f32 to vector<8x64xf32>
    %410 = arith.cmpf oge, %380, %409 : vector<8x64xf32>
    %cst_181 = arith.constant 0.000000e+00 : f32
    %411 = vector.broadcast %cst_181 : f32 to vector<8x64xf32>
    %412 = arith.subf %411, %408 : vector<8x64xf32>
    %413 = arith.select %410, %408, %412 : vector<8x64xi1>, vector<8x64xf32>
    %cst_182 = arith.constant 1.000000e+00 : f32
    %414 = vector.broadcast %cst_182 : f32 to vector<8x64xf32>
    %415 = arith.addf %414, %413 : vector<8x64xf32>
    %416 = arith.mulf %378, %415 : vector<8x64xf32>
    %c0_183 = arith.constant 0 : index
    %c0_184 = arith.constant 0 : index
    %417 = vector.load %arg15[%c0_183, %c0_184] : memref<64x32xf32, #tpu.memory_space<vmem>>, vector<64x32xf32>
    %cst_185 = arith.constant dense<0.000000e+00> : vector<8x32xf32>
    %418 = tpu.matmul %416, %417, %cst_185 {dimension_numbers = #tpu.dot_dimension_numbers<[1], [0], [0], [1], [0, 0, 1, 1], [], []>} : vector<8x64xf32>, vector<64x32xf32>, vector<8x32xf32> -> vector<8x32xf32>
    %c0_186 = arith.constant 0 : index
    %c0_187 = arith.constant 0 : index
    %419 = vector.load %arg16[%c0_186, %c0_187] : memref<1x32xf32, #tpu.memory_space<vmem>>, vector<1x32xf32>
    %420 = vector.broadcast %419 : vector<1x32xf32> to vector<8x32xf32>
    %421 = arith.addf %418, %420 : vector<8x32xf32>
    %422 = arith.addf %347, %421 : vector<8x32xf32>
    %c0_188 = arith.constant 0 : index
    %c0_189 = arith.constant 0 : index
    %423 = vector.load %arg8[%c0_188, %c0_189] : memref<1x32xf32, #tpu.memory_space<vmem>>, vector<1x32xf32>
    %c0_190 = arith.constant 0 : index
    %c0_191 = arith.constant 0 : index
    %424 = vector.load %arg9[%c0_190, %c0_191] : memref<1x32xf32, #tpu.memory_space<vmem>>, vector<1x32xf32>
    %cst_192 = arith.constant dense<0.000000e+00> : vector<8xf32>
    %425 = vector.multi_reduction <add>, %422, %cst_192 [1] : vector<8x32xf32> to vector<8xf32>
    %426 = vector.shape_cast %425 : vector<8xf32> to vector<8x1xf32>
    %cst_193 = arith.constant 3.200000e+01 : f32
    %427 = vector.broadcast %cst_193 : f32 to vector<8x1xf32>
    %428 = arith.divf %426, %427 : vector<8x1xf32>
    %429 = vector.broadcast %428 : vector<8x1xf32> to vector<8x32xf32>
    %430 = arith.subf %422, %429 : vector<8x32xf32>
    %431 = arith.mulf %430, %430 : vector<8x32xf32>
    %cst_194 = arith.constant dense<0.000000e+00> : vector<8xf32>
    %432 = vector.multi_reduction <add>, %431, %cst_194 [1] : vector<8x32xf32> to vector<8xf32>
    %433 = vector.shape_cast %432 : vector<8xf32> to vector<8x1xf32>
    %cst_195 = arith.constant 3.200000e+01 : f32
    %434 = vector.broadcast %cst_195 : f32 to vector<8x1xf32>
    %435 = arith.divf %433, %434 : vector<8x1xf32>
    %436 = vector.broadcast %428 : vector<8x1xf32> to vector<8x32xf32>
    %437 = arith.subf %422, %436 : vector<8x32xf32>
    %cst_196 = arith.constant 9.99999974E-6 : f32
    %438 = vector.broadcast %cst_196 : f32 to vector<8x1xf32>
    %439 = arith.addf %435, %438 : vector<8x1xf32>
    %440 = math.rsqrt %439 : vector<8x1xf32>
    %441 = vector.broadcast %440 : vector<8x1xf32> to vector<8x32xf32>
    %442 = arith.mulf %437, %441 : vector<8x32xf32>
    %443 = vector.broadcast %423 : vector<1x32xf32> to vector<8x32xf32>
    %444 = arith.mulf %442, %443 : vector<8x32xf32>
    %445 = vector.broadcast %424 : vector<1x32xf32> to vector<8x32xf32>
    %446 = arith.addf %444, %445 : vector<8x32xf32>
    %c0_197 = arith.constant 0 : index
    %c0_198 = arith.constant 0 : index
    %447 = vector.load %arg10[%c0_197, %c0_198] : memref<32x32xf32, #tpu.memory_space<vmem>>, vector<32x32xf32>
    %cst_199 = arith.constant dense<0.000000e+00> : vector<8x32xf32>
    %448 = tpu.matmul %446, %447, %cst_199 {dimension_numbers = #tpu.dot_dimension_numbers<[1], [0], [0], [1], [0, 0, 1, 1], [], []>} : vector<8x32xf32>, vector<32x32xf32>, vector<8x32xf32> -> vector<8x32xf32>
    %cst_200 = arith.constant 0.176776692 : f32
    %449 = vector.broadcast %cst_200 : f32 to vector<8x32xf32>
    %450 = arith.mulf %448, %449 : vector<8x32xf32>
    %cst_201 = arith.constant dense<0.000000e+00> : vector<8x64xf32>
    %451 = tpu.matmul %450, %297, %cst_201 {dimension_numbers = #tpu.dot_dimension_numbers<[1], [1], [0], [0], [0, 0, 1, 0], [], []>} : vector<8x32xf32>, vector<64x32xf32>, vector<8x64xf32> -> vector<8x64xf32>
    %cst_202 = arith.constant dense<0xFF800000> : vector<64xf32>
    %452 = vector.multi_reduction <maximumf>, %451, %cst_202 [0] : vector<8x64xf32> to vector<64xf32>
    %453 = vector.shape_cast %452 : vector<64xf32> to vector<1x64xf32>
    %454 = vector.broadcast %453 : vector<1x64xf32> to vector<8x64xf32>
    %455 = arith.subf %451, %454 : vector<8x64xf32>
    %456 = math.exp %455 : vector<8x64xf32>
    %cst_203 = arith.constant dense<0.000000e+00> : vector<64xf32>
    %457 = vector.multi_reduction <add>, %456, %cst_203 [0] : vector<8x64xf32> to vector<64xf32>
    %458 = vector.shape_cast %457 : vector<64xf32> to vector<1x64xf32>
    %459 = tpu.reciprocal %458 {approx = true} : vector<1x64xf32> -> vector<1x64xf32>
    %460 = vector.broadcast %459 : vector<1x64xf32> to vector<8x64xf32>
    %461 = arith.mulf %456, %460 : vector<8x64xf32>
    %cst_204 = arith.constant 9.99999993E-9 : f32
    %462 = vector.broadcast %cst_204 : f32 to vector<8x64xf32>
    %463 = arith.addf %461, %462 : vector<8x64xf32>
    %cst_205 = arith.constant dense<0.000000e+00> : vector<8xf32>
    %464 = vector.multi_reduction <add>, %463, %cst_205 [1] : vector<8x64xf32> to vector<8xf32>
    %465 = vector.shape_cast %464 : vector<8xf32> to vector<8x1xf32>
    %466 = tpu.reciprocal %465 {approx = true} : vector<8x1xf32> -> vector<8x1xf32>
    %467 = vector.broadcast %466 : vector<8x1xf32> to vector<8x64xf32>
    %468 = arith.mulf %463, %467 : vector<8x64xf32>
    %cst_206 = arith.constant dense<0.000000e+00> : vector<8x32xf32>
    %469 = tpu.matmul %468, %298, %cst_206 {dimension_numbers = #tpu.dot_dimension_numbers<[1], [0], [0], [1], [0, 0, 1, 1], [], []>} : vector<8x64xf32>, vector<64x32xf32>, vector<8x32xf32> -> vector<8x32xf32>
    %470 = arith.addf %422, %469 : vector<8x32xf32>
    %c0_207 = arith.constant 0 : index
    %c0_208 = arith.constant 0 : index
    %471 = vector.load %arg11[%c0_207, %c0_208] : memref<1x32xf32, #tpu.memory_space<vmem>>, vector<1x32xf32>
    %c0_209 = arith.constant 0 : index
    %c0_210 = arith.constant 0 : index
    %472 = vector.load %arg12[%c0_209, %c0_210] : memref<1x32xf32, #tpu.memory_space<vmem>>, vector<1x32xf32>
    %cst_211 = arith.constant dense<0.000000e+00> : vector<8xf32>
    %473 = vector.multi_reduction <add>, %470, %cst_211 [1] : vector<8x32xf32> to vector<8xf32>
    %474 = vector.shape_cast %473 : vector<8xf32> to vector<8x1xf32>
    %cst_212 = arith.constant 3.200000e+01 : f32
    %475 = vector.broadcast %cst_212 : f32 to vector<8x1xf32>
    %476 = arith.divf %474, %475 : vector<8x1xf32>
    %477 = vector.broadcast %476 : vector<8x1xf32> to vector<8x32xf32>
    %478 = arith.subf %470, %477 : vector<8x32xf32>
    %479 = arith.mulf %478, %478 : vector<8x32xf32>
    %cst_213 = arith.constant dense<0.000000e+00> : vector<8xf32>
    %480 = vector.multi_reduction <add>, %479, %cst_213 [1] : vector<8x32xf32> to vector<8xf32>
    %481 = vector.shape_cast %480 : vector<8xf32> to vector<8x1xf32>
    %cst_214 = arith.constant 3.200000e+01 : f32
    %482 = vector.broadcast %cst_214 : f32 to vector<8x1xf32>
    %483 = arith.divf %481, %482 : vector<8x1xf32>
    %484 = vector.broadcast %476 : vector<8x1xf32> to vector<8x32xf32>
    %485 = arith.subf %470, %484 : vector<8x32xf32>
    %cst_215 = arith.constant 9.99999974E-6 : f32
    %486 = vector.broadcast %cst_215 : f32 to vector<8x1xf32>
    %487 = arith.addf %483, %486 : vector<8x1xf32>
    %488 = math.rsqrt %487 : vector<8x1xf32>
    %489 = vector.broadcast %488 : vector<8x1xf32> to vector<8x32xf32>
    %490 = arith.mulf %485, %489 : vector<8x32xf32>
    %491 = vector.broadcast %471 : vector<1x32xf32> to vector<8x32xf32>
    %492 = arith.mulf %490, %491 : vector<8x32xf32>
    %493 = vector.broadcast %472 : vector<1x32xf32> to vector<8x32xf32>
    %494 = arith.addf %492, %493 : vector<8x32xf32>
    %c0_216 = arith.constant 0 : index
    %c0_217 = arith.constant 0 : index
    %495 = vector.load %arg13[%c0_216, %c0_217] : memref<32x64xf32, #tpu.memory_space<vmem>>, vector<32x64xf32>
    %cst_218 = arith.constant dense<0.000000e+00> : vector<8x64xf32>
    %496 = tpu.matmul %494, %495, %cst_218 {dimension_numbers = #tpu.dot_dimension_numbers<[1], [0], [0], [1], [0, 0, 1, 1], [], []>} : vector<8x32xf32>, vector<32x64xf32>, vector<8x64xf32> -> vector<8x64xf32>
    %c0_219 = arith.constant 0 : index
    %c0_220 = arith.constant 0 : index
    %497 = vector.load %arg14[%c0_219, %c0_220] : memref<1x64xf32, #tpu.memory_space<vmem>>, vector<1x64xf32>
    %498 = vector.broadcast %497 : vector<1x64xf32> to vector<8x64xf32>
    %499 = arith.addf %496, %498 : vector<8x64xf32>
    %cst_221 = arith.constant 5.000000e-01 : f32
    %500 = vector.broadcast %cst_221 : f32 to vector<8x64xf32>
    %501 = arith.mulf %500, %499 : vector<8x64xf32>
    %cst_222 = arith.constant 0.707106769 : f32
    %502 = vector.broadcast %cst_222 : f32 to vector<8x64xf32>
    %503 = arith.mulf %499, %502 : vector<8x64xf32>
    %504 = math.absf %503 : vector<8x64xf32>
    %cst_223 = arith.constant 0.327591091 : f32
    %505 = vector.broadcast %cst_223 : f32 to vector<8x64xf32>
    %506 = arith.mulf %505, %504 : vector<8x64xf32>
    %cst_224 = arith.constant 1.000000e+00 : f32
    %507 = vector.broadcast %cst_224 : f32 to vector<8x64xf32>
    %508 = arith.addf %507, %506 : vector<8x64xf32>
    %cst_225 = arith.constant 1.000000e+00 : f32
    %509 = vector.broadcast %cst_225 : f32 to vector<8x64xf32>
    %510 = arith.divf %509, %508 : vector<8x64xf32>
    %cst_226 = arith.constant 1.06140542 : f32
    %511 = vector.broadcast %cst_226 : f32 to vector<8x64xf32>
    %512 = arith.mulf %511, %510 : vector<8x64xf32>
    %cst_227 = arith.constant -1.45315206 : f32
    %513 = vector.broadcast %cst_227 : f32 to vector<8x64xf32>
    %514 = arith.addf %512, %513 : vector<8x64xf32>
    %515 = arith.mulf %514, %510 : vector<8x64xf32>
    %cst_228 = arith.constant 1.42141378 : f32
    %516 = vector.broadcast %cst_228 : f32 to vector<8x64xf32>
    %517 = arith.addf %515, %516 : vector<8x64xf32>
    %518 = arith.mulf %517, %510 : vector<8x64xf32>
    %cst_229 = arith.constant -0.284496725 : f32
    %519 = vector.broadcast %cst_229 : f32 to vector<8x64xf32>
    %520 = arith.addf %518, %519 : vector<8x64xf32>
    %521 = arith.mulf %520, %510 : vector<8x64xf32>
    %cst_230 = arith.constant 0.254829586 : f32
    %522 = vector.broadcast %cst_230 : f32 to vector<8x64xf32>
    %523 = arith.addf %521, %522 : vector<8x64xf32>
    %524 = arith.mulf %523, %510 : vector<8x64xf32>
    %cst_231 = arith.constant 0.000000e+00 : f32
    %525 = vector.broadcast %cst_231 : f32 to vector<8x64xf32>
    %526 = arith.subf %525, %504 : vector<8x64xf32>
    %527 = arith.mulf %526, %504 : vector<8x64xf32>
    %528 = math.exp %527 : vector<8x64xf32>
    %529 = arith.mulf %524, %528 : vector<8x64xf32>
    %cst_232 = arith.constant 1.000000e+00 : f32
    %530 = vector.broadcast %cst_232 : f32 to vector<8x64xf32>
    %531 = arith.subf %530, %529 : vector<8x64xf32>
    %cst_233 = arith.constant 0.000000e+00 : f32
    %532 = vector.broadcast %cst_233 : f32 to vector<8x64xf32>
    %533 = arith.cmpf oge, %503, %532 : vector<8x64xf32>
    %cst_234 = arith.constant 0.000000e+00 : f32
    %534 = vector.broadcast %cst_234 : f32 to vector<8x64xf32>
    %535 = arith.subf %534, %531 : vector<8x64xf32>
    %536 = arith.select %533, %531, %535 : vector<8x64xi1>, vector<8x64xf32>
    %cst_235 = arith.constant 1.000000e+00 : f32
    %537 = vector.broadcast %cst_235 : f32 to vector<8x64xf32>
    %538 = arith.addf %537, %536 : vector<8x64xf32>
    %539 = arith.mulf %501, %538 : vector<8x64xf32>
    %c0_236 = arith.constant 0 : index
    %c0_237 = arith.constant 0 : index
    %540 = vector.load %arg15[%c0_236, %c0_237] : memref<64x32xf32, #tpu.memory_space<vmem>>, vector<64x32xf32>
    %cst_238 = arith.constant dense<0.000000e+00> : vector<8x32xf32>
    %541 = tpu.matmul %539, %540, %cst_238 {dimension_numbers = #tpu.dot_dimension_numbers<[1], [0], [0], [1], [0, 0, 1, 1], [], []>} : vector<8x64xf32>, vector<64x32xf32>, vector<8x32xf32> -> vector<8x32xf32>
    %c0_239 = arith.constant 0 : index
    %c0_240 = arith.constant 0 : index
    %542 = vector.load %arg16[%c0_239, %c0_240] : memref<1x32xf32, #tpu.memory_space<vmem>>, vector<1x32xf32>
    %543 = vector.broadcast %542 : vector<1x32xf32> to vector<8x32xf32>
    %544 = arith.addf %541, %543 : vector<8x32xf32>
    %545 = arith.addf %470, %544 : vector<8x32xf32>
    %cst_241 = arith.constant dense<0.000000e+00> : vector<32x8xf32>
    %546 = tpu.matmul %38, %545, %cst_241 {dimension_numbers = #tpu.dot_dimension_numbers<[1], [1], [0], [0], [0, 0, 1, 0], [], []>} : vector<32x32xf32>, vector<8x32xf32>, vector<32x8xf32> -> vector<32x8xf32>
    %c1 = arith.constant 1 : index
    %c0_242 = arith.constant 0 : index
    %c0_243 = arith.constant 0 : index
    %547 = vector.load %arg17[%c1, %c0_242, %c0_243] : memref<2x32x8xf32, #tpu.memory_space<vmem>>, vector<1x32x8xf32>
    %548 = vector.shape_cast %547 : vector<1x32x8xf32> to vector<32x8xf32>
    %549 = vector.shape_cast %546 : vector<32x8xf32> to vector<1x32x8xf32>
    tpu.vector_store %arg17[%c1, %c0_242, %c0_243], %549 {strides = array<i32>} : memref<2x32x8xf32, #tpu.memory_space<vmem>>, vector<1x32x8xf32>,
    %c1_244 = arith.constant 1 : index
    %c0_245 = arith.constant 0 : index
    %c0_246 = arith.constant 0 : index
    %550 = vector.load %arg18[%c1_244, %c0_245, %c0_246] : memref<2x8x64xf32, #tpu.memory_space<vmem>>, vector<1x8x64xf32>
    %551 = vector.shape_cast %550 : vector<1x8x64xf32> to vector<8x64xf32>
    %552 = vector.shape_cast %468 : vector<8x64xf32> to vector<1x8x64xf32>
    tpu.vector_store %arg18[%c1_244, %c0_245, %c0_246], %552 {strides = array<i32>} : memref<2x8x64xf32, #tpu.memory_space<vmem>>, vector<1x8x64xf32>,
    return
  }
  func.func @transform_0(%arg0: i32) -> (i32, i32) {
    %c0_i32 = arith.constant 0 : i32
    %c0_i32_0 = arith.constant 0 : i32
    return %arg0, %c0_i32 : i32, i32
  }
  func.func @transform_1(%arg0: i32) -> (i32, i32) {
    %c0_i32 = arith.constant 0 : i32
    %c0_i32_0 = arith.constant 0 : i32
    %c0_i32_1 = arith.constant 0 : i32
    return %c0_i32, %c0_i32_0 : i32, i32
  }
  func.func @transform_2(%arg0: i32) -> (i32, i32) {
    %c0_i32 = arith.constant 0 : i32
    %c0_i32_0 = arith.constant 0 : i32
    %c0_i32_1 = arith.constant 0 : i32
    return %c0_i32, %c0_i32_0 : i32, i32
  }
  func.func @transform_3(%arg0: i32) -> (i32, i32) {
    %c0_i32 = arith.constant 0 : i32
    %c0_i32_0 = arith.constant 0 : i32
    %c0_i32_1 = arith.constant 0 : i32
    return %c0_i32, %c0_i32_0 : i32, i32
  }
  func.func @transform_4(%arg0: i32) -> (i32, i32) {
    %c0_i32 = arith.constant 0 : i32
    %c0_i32_0 = arith.constant 0 : i32
    %c0_i32_1 = arith.constant 0 : i32
    return %c0_i32, %c0_i32_0 : i32, i32
  }
  func.func @transform_5(%arg0: i32) -> (i32, i32) {
    %c0_i32 = arith.constant 0 : i32
    %c0_i32_0 = arith.constant 0 : i32
    %c0_i32_1 = arith.constant 0 : i32
    return %c0_i32, %c0_i32_0 : i32, i32
  }
  func.func @transform_6(%arg0: i32) -> (i32, i32) {
    %c0_i32 = arith.constant 0 : i32
    %c0_i32_0 = arith.constant 0 : i32
    %c0_i32_1 = arith.constant 0 : i32
    return %c0_i32, %c0_i32_0 : i32, i32
  }
  func.func @transform_7(%arg0: i32) -> (i32, i32) {
    %c0_i32 = arith.constant 0 : i32
    %c0_i32_0 = arith.constant 0 : i32
    %c0_i32_1 = arith.constant 0 : i32
    return %c0_i32, %c0_i32_0 : i32, i32
  }
  func.func @transform_8(%arg0: i32) -> (i32, i32) {
    %c0_i32 = arith.constant 0 : i32
    %c0_i32_0 = arith.constant 0 : i32
    %c0_i32_1 = arith.constant 0 : i32
    return %c0_i32, %c0_i32_0 : i32, i32
  }
  func.func @transform_9(%arg0: i32) -> (i32, i32) {
    %c0_i32 = arith.constant 0 : i32
    %c0_i32_0 = arith.constant 0 : i32
    %c0_i32_1 = arith.constant 0 : i32
    return %c0_i32, %c0_i32_0 : i32, i32
  }
  func.func @transform_10(%arg0: i32) -> (i32, i32) {
    %c0_i32 = arith.constant 0 : i32
    %c0_i32_0 = arith.constant 0 : i32
    %c0_i32_1 = arith.constant 0 : i32
    return %c0_i32, %c0_i32_0 : i32, i32
  }
  func.func @transform_11(%arg0: i32) -> (i32, i32) {
    %c0_i32 = arith.constant 0 : i32
    %c0_i32_0 = arith.constant 0 : i32
    %c0_i32_1 = arith.constant 0 : i32
    return %c0_i32, %c0_i32_0 : i32, i32
  }
  func.func @transform_12(%arg0: i32) -> (i32, i32) {
    %c0_i32 = arith.constant 0 : i32
    %c0_i32_0 = arith.constant 0 : i32
    %c0_i32_1 = arith.constant 0 : i32
    return %c0_i32, %c0_i32_0 : i32, i32
  }
  func.func @transform_13(%arg0: i32) -> (i32, i32) {
    %c0_i32 = arith.constant 0 : i32
    %c0_i32_0 = arith.constant 0 : i32
    %c0_i32_1 = arith.constant 0 : i32
    return %c0_i32, %c0_i32_0 : i32, i32
  }
  func.func @transform_14(%arg0: i32) -> (i32, i32) {
    %c0_i32 = arith.constant 0 : i32
    %c0_i32_0 = arith.constant 0 : i32
    %c0_i32_1 = arith.constant 0 : i32
    return %c0_i32, %c0_i32_0 : i32, i32
  }
  func.func @transform_15(%arg0: i32) -> (i32, i32) {
    %c0_i32 = arith.constant 0 : i32
    %c0_i32_0 = arith.constant 0 : i32
    %c0_i32_1 = arith.constant 0 : i32
    return %c0_i32, %c0_i32_0 : i32, i32
  }
  func.func @transform_16(%arg0: i32) -> (i32, i32, i32) {
    %c0_i32 = arith.constant 0 : i32
    %c0_i32_0 = arith.constant 0 : i32
    %c0_i32_1 = arith.constant 0 : i32
    return %arg0, %c0_i32, %c0_i32_0 : i32, i32, i32
  }
  func.func @transform_17(%arg0: i32) -> (i32, i32, i32) {
    %c0_i32 = arith.constant 0 : i32
    %c0_i32_0 = arith.constant 0 : i32
    %c0_i32_1 = arith.constant 0 : i32
    return %arg0, %c0_i32, %c0_i32_0 : i32, i32, i32
  }
}

</mosaic_0001>

<bundles_post_ra>
// kernel: tpu_custom_call.1
= control target key start
LH: loop header
LB: loop body
LE: loop exit
PB: predicated region body
PF: predicated region fallthrough
CT: control target
= control target key end

     0   :  { %s6015_s0 = inlined_call_operand.vmem [shape: f32[256,108], index: 0, kind: input, shape index: {}]   ;;  %s6016_s1 = inlined_call_operand.vmem [shape: f32[108,8], index: 1, kind: input, shape index: {}]   ;;  %s6017_s2 = inlined_call_operand.vmem [shape: f32[1,8], index: 2, kind: input, shape index: {}]   ;;  %s6018_s3 = inlined_call_operand.vmem [shape: f32[1,8], index: 3, kind: input, shape index: {}]   ;;  %s6019_s4 = inlined_call_operand.vmem [shape: f32[1,8], index: 4, kind: input, shape index: {}]   ;;  %s6020_s5 = inlined_call_operand.vmem [shape: f32[8,64], index: 5, kind: input, shape index: {}]   ;;  %s6021_s6 = inlined_call_operand.vmem [shape: f32[8,32], index: 6, kind: input, shape index: {}]   ;;  %s6022_s7 = inlined_call_operand.vmem [shape: f32[1,32], index: 7, kind: input, shape index: {}]   ;;  %s6023_s8 = inlined_call_operand.vmem [shape: f32[1,32], index: 8, kind: input, shape index: {}]   ;;  %s6024_s9 = inlined_call_operand.vmem [shape: f32[32,32], index: 9, kind: input, shape index: {}]   ;;  %s6025_s10 = inlined_call_operand.vmem [shape: f32[1,32], index: 10, kind: input, shape index: {}]   ;;  %s6026_s11 = inlined_call_operand.vmem [shape: f32[1,32], index: 11, kind: input, shape index: {}]   ;;  %s6027_s12 = inlined_call_operand.vmem [shape: f32[32,64], index: 12, kind: input, shape index: {}]   ;;  %s6028_s13 = inlined_call_operand.vmem [shape: f32[1,64], index: 13, kind: input, shape index: {}]   ;;  %s6029_s14 = inlined_call_operand.vmem [shape: f32[64,32], index: 14, kind: input, shape index: {}]   ;;  %s6030_s15 = inlined_call_operand.vmem [shape: f32[1,32], index: 15, kind: input, shape index: {}]   ;;  %s6031_s16 = inlined_call_operand.vmem [shape: f32[4,32,8], index: 16, kind: output, shape index: {0}]   ;;  %s6032_s17 = inlined_call_operand.hbm [shape: f32[4,8,64], index: 17, kind: output, shape index: {1}]  }
   0x1   :  { %6040 = sst [smem:[#allocation11_spill]] %s6015_s0 }
   0x2   :  { %6041 = sst [smem:[#allocation12_spill]] %s6016_s1 }
   0x3   :  { %23 = vsyncpa [#allocation3], 0 }
   0x4   :  { %25 = vsyncpa [#allocation3 + $0x1], 0  ;;  %s4942_s24 = smov 0   ;;  %s4944_s25 = smov 0  }
   0x5   :  { %s4946_s26 = smov 0   ;;  %s4948_s27 = smov 0  }
   0x6 LB: > { %6042 = sst [smem:[#allocation5_spill]] %s4830_s24  ;;  %s4963_s28 = sadd.s32 4294967295, %s4842_s27   ;;  %s4842_s27 = sphi %s4948_s27, %s6057_s27   ;;  %s4838_s26 = sphi %s4946_s26, %s6062_s26   ;;  %s4834_s25 = sphi %s4944_s25, %s6061_s25   ;;  %s4830_s24 = sphi %s4942_s24, %s6060_s24  }
   0x7   : > { %6043 = sst [smem:[#allocation6_spill]] %s4838_s26  ;;  %s3615_s29 = sadd.s32 4294967294, %s4842_s27  }
   0x8   : > { %6044 = sst [smem:[#allocation7_spill]] %s4842_s27  ;;  %s4967_s0 = sadd.s32 1, %s4842_s27  }
   0x9   : > { %6045 = sst [smem:[#allocation8_spill]] %s4967_s0  ;;  %s405_s30 = sadd.s32 1, %s4838_s26 }
   0xa   : > { %s402_s18 = ssub.s32 %s4842_s27, %s4967_s0  ;;  %p415_p0 = scmp.ne.s32.totalorder %s4838_s26, %s4834_s25 }
   0xb   : > { %p403_p1 = scmp.eq.s32.totalorder %s402_s18, 0  ;;  %p416_p2 = scmp.eq.s32.totalorder %s4963_s28, 1 }
   0xc   : > { %p421_p3 = scmp.ne.s32.totalorder %s4834_s25, %s4830_s24  ;;  %p422_p4 = scmp.eq.s32.totalorder %s3615_s29, 1 }
   0xd   : > { %s4978_s19 = scalar_select %p403_p1, %s4838_s26, %s405_s30  }
   0xe   : > { %p4980_p5 = por %p416_p2, %p415_p0  ;;  %p4984_p6 = por %p422_p4, %p421_p3 }
   0xf   : > { %6046 = sst [smem:[#allocation9_spill]] %s4978_s19  ;;  %p3618_p7 = scmp.ge.s32.totalorder %s4842_s27, 1 }
  0x10   : > { %s6048_s20 = scalar_select %p4984_p6, 1, 0 }
  0x11   : > { %p494_p8 = scmp.lt.s32.totalorder %s4842_s27, 3 }
  0x12   : > { %6049 = sst [smem:[#allocation10_spill]] %s6048_s20 }
  0x13   : > { %p495_p9 = pnand %p3618_p7, %p494_p8 }
  0x14   : > { %s6050_s23 = sld [smem:[#allocation12_spill]] (!%p495_p9)  ;;  %s3620_s26 = sshll.u32 (!%p495_p9), %s4963_s28, 4  ;;  %vm603_vm0 = vcmask (!%p495_p9), 883712   ;;  %vm652_vm1 = vcmask (!%p495_p9), 1043456   ;;  %vm4844_vm2 = vmmov (!%p495_p9), 1   ;;  %vm819_vm4 = vcmask (!%p495_p9), 64512  }
  0x15   : > { %498 = sbr.rel (%p495_p9) target bundleno = 8068 (0x1f84), region = 84  ;;  %p553_p10 = scmp.lt.s32.totalorder (!%p495_p9), %s3620_s26, 31  ;;  %vm4391_vm3 = vmpackc.low (!%p495_p9), %vm652_vm1, %vm4844_vm2  ;;  %v5073_v37 = vld [vmem:[%s6017_s2] ss:$0 sm:$0xff] (!%p495_p9)  ;;  %vm1289_vm5 = vcmask (!%p495_p9), 261120   ;;  %vm4846_vm6 = vmmov (!%p495_p9), 0  }
  0x16   : > { %s6051_s21 = sld [smem:[#allocation11_spill]] (!%p495_p9)  ;;  %vm5433_vm7 = vmpackc.low (!%p495_p9), %vm1289_vm5, %vm1289_vm5  ;;  %s4848_s29 = smov (!%p495_p9), 96   ;;  %vm1493_vm8 = vcmask (!%p495_p9), 523264  }
  0x1a   : > { %v582_v0 = vld [vmem:[%s6050_s23] sm:$0xff] (!%p495_p9)  ;;  %v583_v1 = vld [vmem:[%s6050_s23 + $0x8] sm:$0xff] (!%p495_p9)  ;;  %v584_v2 = vld [vmem:[%s6050_s23 + $0x10] sm:$0xff] (!%p495_p9) }
  0x1b   : > { %v4366_v3 = vpack.c.bf16 (!%p495_p9), %v583_v1, %v582_v0  ;;  %v585_v4 = vld [vmem:[%s6050_s23 + $0x18] sm:$0xff] (!%p495_p9)  ;;  %v586_v6 = vld [vmem:[%s6050_s23 + $0x20] sm:$0xff] (!%p495_p9)  ;;  %v587_v7 = vld [vmem:[%s6050_s23 + $0x28] sm:$0xff] (!%p495_p9) }
  0x1c   : > { %v4370_v5 = vpack.c.bf16 %v585_v4, %v584_v2  ;;  %s6064_s26 = smov (!%p553_p10, %s3620_s26), 31  ;;  %v4374_v8 = vpack.c.bf16 %v587_v7, %v586_v6  ;;  %v588_v9 = vld [vmem:[%s6050_s23 + $0x30] sm:$0xff]  ;;  %v589_v10 = vld [vmem:[%s6050_s23 + $0x38] sm:$0xff]  ;;  %v590_v13 = vld [vmem:[%s6050_s23 + $0x40] sm:$0xff] }
  0x1d   : > { %4367 = vmatprep.subr.bf16.mxu0 %v4366_v3  ;;  %s3621_s19 = sshll.u32 %s6064_s26, 3  ;;  %v4378_v12 = vpack.c.bf16 %v589_v10, %v588_v9  ;;  %v591_v14 = vld [vmem:[%s6050_s23 + $0x48] sm:$0xff]  ;;  %v592_v16 = vld [vmem:[%s6050_s23 + $0x50] sm:$0xff]  ;;  %v593_v17 = vld [vmem:[%s6050_s23 + $0x58] sm:$0xff] }
  0x1e   : > { %4369 = vmatpush3.bf16.msra.mxu0 %v4366_v3  ;;  %s5018_s27 = scalar_lea.vmem %s6051_s21, %s3621_s19  ;;  %v4382_v15 = vpack.c.bf16 %v591_v14, %v590_v13  ;;  %v4386_v18 = vpack.c.bf16 %v593_v17, %v592_v16  ;;  %v594_v19 = vld [vmem:[%s6050_s23 + $0x60] sm:$0xff]  ;;  %v595_v20 = vld [vmem:[%s6050_s23 + $0x68] sm:$0xf]  ;;  %s549_s19 = sand.u32 1, %s4834_s25  }
  0x1f   : > { %4371 = vmatprep.subr.bf16.mxu0 %v4370_v5  ;;  %v566_v11 = vld [vmem:[%s5018_s27] sm:$0xff]  ;;  %v4390_v21 = vpack.c.bf16 %v595_v20, %v594_v19  ;;  %v567_v22 = vld [vmem:[%s5018_s27 + $0x8] sm:$0xff]  ;;  %v568_v23 = vld [vmem:[%s5018_s27 + $0x10] sm:$0xff]  ;;  %s3619_s20 = sshll.u32 %s549_s19, 4  ;;  %s3622_s21 = sshll.u32 %s4963_s28, 1 }
  0x20   : > { %3984 = vmatprep.mubr.msk.f32.mxu0 %vm603_vm0, %v566_v11  ;;  %v569_v24 = vld [vmem:[%s5018_s27 + $0x18] sm:$0xff]  ;;  %v570_v25 = vld [vmem:[%s5018_s27 + $0x20] sm:$0xff]  ;;  %v571_v26 = vld [vmem:[%s5018_s27 + $0x28] sm:$0xff]  ;;  %s5685_s30 = scalar_lea.vmem [#allocation2], %s3619_s20  ;;  %p559_p11 = scmp.lt.s32.totalorder %s3622_s21, 3 }
  0x21   : > { %v572_v27 = vld [vmem:[%s5018_s27 + $0x30] sm:$0xff]  ;;  %v573_v28 = vld [vmem:[%s5018_s27 + $0x38] sm:$0xff]  ;;  %v574_v29 = vld [vmem:[%s5018_s27 + $0x40] sm:$0xff]  ;;  %s5966_s20 = scalar_lea.sflag [#allocation3], %s549_s19 }
  0x22   : > { %4373 = vmatpush3.bf16.msra.mxu0 %v4370_v5  ;;  %v575_v30 = vld [vmem:[%s5018_s27 + $0x48] sm:$0xff]  ;;  %v576_v31 = vld [vmem:[%s5018_s27 + $0x50] sm:$0xff]  ;;  %v577_v32 = vld [vmem:[%s5018_s27 + $0x58] sm:$0xff]  ;;  %s6066_s21 = smov (!%p559_p11, %s3622_s21), 3 }
  0x23   : > { %4375 = vmatprep.subr.bf16.mxu0 %v4374_v8  ;;  %v578_v33 = vld [vmem:[%s5018_s27 + $0x60] sm:$0xff]  ;;  %v579_v34 = vld [vmem:[%s5018_s27 + $0x68] sm:$0xff]  ;;  %v580_v35 = vld [vmem:[%s5018_s27 + $0x70] sm:$0xff]  ;;  %s3749_s26 = sshll.u32 %s6066_s21, 5  ;;  %s3750_s21 = sshll.u32 %s4963_s28, 8 }
  0x24   : > { %v581_v36 = vld [vmem:[%s5018_s27 + $0x78] sm:$0xff]  ;;  %s5807_s27 = scalar_lea.vmem %s6031_s16, %s3749_s26  ;;  %s3527_s26 = sshll.u32 %s5685_s30, 4  ;;  %s5962_s26 = int_to_ptr.vmem [resolvable:$true] %s3527_s26 }
  0x25   : > { %s4780_s24 = scalar_lea.vmem %s5962_s26, 256  ;;  %s4849_s28 = smov [#allocation2]  }
  0x26   : > { %4377 = vmatpush3.bf16.msra.mxu0 %v4374_v8  ;;  %p4781_p12 = scmp.ne.s32.totalorder %s5962_s26, %s4780_s24 }
  0x27   : > { %4379 = vmatprep.subr.bf16.mxu0 %v4378_v12 }
  0x28   : > { %p4782_p13 = pnand %p4781_p12, %p4980_p5 }
  0x2a   : > { %4381 = vmatpush3.bf16.msra.mxu0 %v4378_v12  ;;  %p4783_p0 = pneg %p4782_p13 }
  0x2b   : > { %4383 = vmatprep.subr.bf16.mxu0 %v4382_v15 }
  0x2e   : > { %4385 = vmatpush3.bf16.msra.mxu0 %v4382_v15 }
  0x2f   : > { %4387 = vmatprep.subr.bf16.mxu0 %v4386_v18 }
  0x32   : > { %4389 = vmatpush3.bf16.msra.mxu0 %v4386_v18 }
  0x33   : > { %4392 = vmatprep.subr.msk.bf16.mxu0 %vm4391_vm3, %v4390_v21 }
  0x36   : > { %4395 = vmatpush3.bf16.msk.msra.mxu0 %vm4391_vm3, %v4390_v21 }
  0x39   : > { %3985 = vmatmul.mubr.msk.f32.vlgmr.msra.gmra.mrb[0].mxu0 %vm603_vm0, %v567_v22 }
  0x3a   : > { %3987 = vmatprep.mubr.msk.f32.mxu0 %vm603_vm0, %v568_v23 }
  0x3d   : > { %3988 = vmatmul.mubr.msk.f32.gmra.mrb[2].mxu0 %vm603_vm0, %v569_v24 }
  0x3e   : > { %3990 = vmatprep.mubr.msk.f32.mxu0 %vm603_vm0, %v570_v25 }
  0x41   : > { %3991 = vmatmul.mubr.msk.f32.gmra.mrb[4].mxu0 %vm603_vm0, %v571_v26 }
  0x42   : > { %3993 = vmatprep.mubr.msk.f32.mxu0 %vm603_vm0, %v572_v27 }
  0x45   : > { %3994 = vmatmul.mubr.msk.f32.gmra.mrb[6].mxu0 %vm603_vm0, %v573_v28 }
  0x46   : > { %3996 = vmatprep.mubr.msk.f32.mxu0 %vm603_vm0, %v574_v29 }
  0x49   : > { %3997 = vmatmul.mubr.msk.f32.gmra.mrb[8].mxu0 %vm603_vm0, %v575_v30 }
  0x4a   : > { %3999 = vmatprep.mubr.msk.f32.mxu0 %vm603_vm0, %v576_v31 }
  0x4d   : > { %4000 = vmatmul.mubr.msk.f32.gmra.mrb[10].mxu0 %vm603_vm0, %v577_v32 }
  0x4e   : > { %4002 = vmatprep.mubr.msk.f32.mxu0 %vm603_vm0, %v578_v33 }
  0x51   : > { %4003 = vmatmul.mubr.msk.f32.gmra.mrb[12].mxu0 %vm603_vm0, %v579_v34  ;;  %v5180_v34 = vld [vmem:[%s6021_s6] sm:$0xff] }
  0x52   : > { %4005 = vmatprep.mubr.msk.f32.mxu0 %vm603_vm0, %v580_v35 }
  0x55   : > { %4006 = vmatmul.mubr.msk.f32.gmra.mrb[14].mxu0 %vm603_vm0, %v581_v36 }
 0x10c   : > { %v3986_v38 = vpop.f32.mrb[0].mxu0 }
 0x10d   : > { %v722_v39 = vpop.f32.mrb[1].mxu0  ;;  %v5076_v40 = vadd.f32 %v3986_v38, %v5073_v37  ;;  %v1290_v38 = vsel %vm1289_vm5, %v5180_v34, 0.0 }
 0x10e   : > { %v5079_v41 = vadd.f32 %v5073_v37, %v722_v39 }
 0x10f   : > { %v802_v45 = vmax.f32 %v5076_v40, 0.0 }
 0x110   : > { %v801_v42 = vmax.f32 %v5079_v41, 0.0  ;;  %v3989_v43 = vpop.f32.mrb[2].mxu0 }
 0x111   : > { %v732_v44 = vpop.f32.mrb[3].mxu0  ;;  %v5084_v46 = vadd.f32 %v3989_v43, %v5073_v37  ;;  %v823_v56 = vsel %vm819_vm4, %v802_v45, 0.0 }
 0x112   : > { %v5087_v47 = vadd.f32 %v5073_v37, %v732_v44  ;;  %v820_v48 = vsel %vm819_vm4, %v801_v42, 0.0 }
 0x113   : > { %821 = vadd.xlane.f32.xlu0 %v820_v48  ;;  %v804_v53 = vmax.f32 %v5084_v46, 0.0 }
 0x114   : > { %v803_v49 = vmax.f32 %v5087_v47, 0.0  ;;  %v3992_v50 = vpop.f32.mrb[4].mxu0 }
 0x115   : > { %v5094_v51 = vadd.f32 %v3992_v50, %v5073_v37  ;;  %v742_v52 = vpop.f32.mrb[5].mxu0  ;;  %v829_v63 = vsel %vm819_vm4, %v804_v53, 0.0 }
 0x116   : > { %v5098_v54 = vadd.f32 %v5073_v37, %v742_v52  ;;  %v826_v55 = vsel %vm819_vm4, %v803_v49, 0.0 }
 0x117   : > { %827 = vadd.xlane.f32.xlu1 %v826_v55  ;;  %824 = vadd.xlane.f32.xlu0 %v823_v56  ;;  %v806_v59 = vmax.f32 %v5094_v51, 0.0 }
 0x118   : > { %v805_v57 = vmax.f32 %v5098_v54, 0.0  ;;  %v3995_v58 = vpop.f32.mrb[6].mxu0 }
 0x119   : > { %v752_v60 = vpop.f32.mrb[7].mxu0  ;;  %v5109_v61 = vadd.f32 %v3995_v58, %v5073_v37  ;;  %v835_v4 = vsel %vm819_vm4, %v806_v59, 0.0 }
 0x11a   : > { %v5112_v62 = vadd.f32 %v5073_v37, %v752_v60  ;;  %v832_v0 = vsel %vm819_vm4, %v805_v57, 0.0 }
 0x11b   : > { %830 = vadd.xlane.f32.xlu1 %v829_v63  ;;  %833 = vadd.xlane.f32.xlu0 %v832_v0  ;;  %v808_v5 = vmax.f32 %v5109_v61, 0.0 }
 0x11c   : > { %v807_v1 = vmax.f32 %v5112_v62, 0.0  ;;  %v3998_v2 = vpop.f32.mrb[8].mxu0 }
 0x11d   : > { %v762_v3 = vpop.f32.mrb[9].mxu0  ;;  %v5126_v6 = vadd.f32 %v3998_v2, %v5073_v37  ;;  %v841_v15 = vsel %vm819_vm4, %v808_v5, 0.0 }
 0x11e   : > { %v5129_v7 = vadd.f32 %v5073_v37, %v762_v3  ;;  %v838_v8 = vsel %vm819_vm4, %v807_v1, 0.0 }
 0x11f   : > { %836 = vadd.xlane.f32.xlu1 %v835_v4  ;;  %839 = vadd.xlane.f32.xlu0 %v838_v8  ;;  %v810_v13 = vmax.f32 %v5126_v6, 0.0 }
 0x120   : > { %v809_v9 = vmax.f32 %v5129_v7, 0.0  ;;  %v4001_v10 = vpop.f32.mrb[10].mxu0 }
 0x121   : > { %v5136_v11 = vadd.f32 %v4001_v10, %v5073_v37  ;;  %v772_v12 = vpop.f32.mrb[11].mxu0  ;;  %v847_v23 = vsel %vm819_vm4, %v810_v13, 0.0 }
 0x122   : > { %v5140_v14 = vadd.f32 %v5073_v37, %v772_v12  ;;  %v844_v16 = vsel %vm819_vm4, %v809_v9, 0.0 }
 0x123   : > { %842 = vadd.xlane.f32.xlu1 %v841_v15  ;;  %845 = vadd.xlane.f32.xlu0 %v844_v16  ;;  %v812_v19 = vmax.f32 %v5136_v11, 0.0 }
 0x124   : > { %v811_v17 = vmax.f32 %v5140_v14, 0.0  ;;  %v4004_v18 = vpop.f32.mrb[12].mxu0 }
 0x125   : > { %v782_v20 = vpop.f32.mrb[13].mxu0  ;;  %v5151_v21 = vadd.f32 %v4004_v18, %v5073_v37  ;;  %v853_v28 = vsel %vm819_vm4, %v812_v19, 0.0 }
 0x126   : > { %v5154_v22 = vadd.f32 %v5073_v37, %v782_v20  ;;  %v850_v24 = vsel %vm819_vm4, %v811_v17, 0.0 }
 0x127   : > { %848 = vadd.xlane.f32.xlu1 %v847_v23  ;;  %851 = vadd.xlane.f32.xlu0 %v850_v24  ;;  %v814_v29 = vmax.f32 %v5151_v21, 0.0 }
 0x128   : > { %v813_v25 = vmax.f32 %v5154_v22, 0.0  ;;  %v4007_v26 = vpop.f32.mrb[14].mxu0 }
 0x129   : > { %v792_v27 = vpop.f32.mrb[15].mxu0  ;;  %v5168_v30 = vadd.f32 %v4007_v26, %v5073_v37  ;;  %v859_v36 = vsel %vm819_vm4, %v814_v29, 0.0 }
 0x12a   : > { %v5171_v31 = vadd.f32 %v5073_v37, %v792_v27  ;;  %v856_v32 = vsel %vm819_vm4, %v813_v25, 0.0 }
 0x12b   : > { %854 = vadd.xlane.f32.xlu1 %v853_v28  ;;  %857 = vadd.xlane.f32.xlu0 %v856_v32  ;;  %v816_v35 = vmax.f32 %v5168_v30, 0.0 }
 0x12c   : > { %v815_v33 = vmax.f32 %v5171_v31, 0.0 }
 0x12d   : > { %v865_v39 = vsel %vm819_vm4, %v816_v35, 0.0 }
 0x12e   : > { %v862_v37 = vsel %vm819_vm4, %v815_v33, 0.0 }
 0x12f   : > { %860 = vadd.xlane.f32.xlu1 %v859_v36  ;;  %863 = vadd.xlane.f32.xlu0 %v862_v37 }
 0x133   : > { %866 = vadd.xlane.f32.xlu1 %v865_v39  ;;  %1291 = vadd.xlane.f32.xlu0 %v1290_v38 }
 0x1a0   : > { %v822_v43 = vpop.xlane.xlu0 %821 }
 0x1a1   : > { %v869_v44 = vmul.f32 0.125, %v822_v43 }
 0x1a3   : > { %v5196_v48 = vsub.f32 %v801_v42, %v869_v44 }
 0x1a4   : > { %v828_v50 = vpop.xlane.xlu1 %827  ;;  %v825_v52 = vpop.xlane.xlu0 %824 }
 0x1a5   : > { %v871_v55 = vmul.f32 0.125, %v828_v50  ;;  %v870_v56 = vmul.f32 0.125, %v825_v52  ;;  %v901_v58 = vmul.f32 %v5196_v48, %v5196_v48 }
 0x1a7   : > { %v5202_v60 = vsub.f32 %v803_v49, %v871_v55  ;;  %v5206_v63 = vsub.f32 %v802_v45, %v870_v56  ;;  %v917_v0 = vsel %vm819_vm4, %v901_v58, 0.0 }
 0x1a8   : > { %v831_v41 = vpop.xlane.xlu1 %830  ;;  %918 = vadd.xlane.f32.xlu1 %v917_v0  ;;  %v834_v42 = vpop.xlane.xlu0 %833 }
 0x1a9   : > { %v872_v2 = vmul.f32 0.125, %v831_v41  ;;  %v873_v3 = vmul.f32 0.125, %v834_v42  ;;  %v903_v4 = vmul.f32 %v5202_v60, %v5202_v60  ;;  %v902_v8 = vmul.f32 %v5206_v63, %v5206_v63 }
 0x1ab   : > { %v5215_v47 = vsub.f32 %v804_v53, %v872_v2  ;;  %v5219_v40 = vsub.f32 %v805_v57, %v873_v3  ;;  %v923_v45 = vsel %vm819_vm4, %v903_v4, 0.0  ;;  %v920_v49 = vsel %vm819_vm4, %v902_v8, 0.0 }
 0x1ac   : > { %v837_v10 = vpop.xlane.xlu1 %836  ;;  %924 = vadd.xlane.f32.xlu1 %v923_v45  ;;  %921 = vadd.xlane.f32.xlu0 %v920_v49  ;;  %v840_v12 = vpop.xlane.xlu0 %839 }
 0x1ad   : > { %v874_v15 = vmul.f32 0.125, %v837_v10  ;;  %v875_v16 = vmul.f32 0.125, %v840_v12  ;;  %v904_v18 = vmul.f32 %v5215_v47, %v5215_v47  ;;  %v905_v46 = vmul.f32 %v5219_v40, %v5219_v40 }
 0x1af   : > { %v5229_v53 = vsub.f32 %v806_v59, %v874_v15  ;;  %v5233_v54 = vsub.f32 %v807_v1, %v875_v16  ;;  %v926_v57 = vsel %vm819_vm4, %v904_v18, 0.0  ;;  %v929_v20 = vsel %vm819_vm4, %v905_v46, 0.0 }
 0x1b0   : > { %v843_v23 = vpop.xlane.xlu1 %842  ;;  %927 = vadd.xlane.f32.xlu0 %v926_v57  ;;  %930 = vadd.xlane.f32.xlu1 %v929_v20  ;;  %v846_v24 = vpop.xlane.xlu0 %845  ;;  %v4845_v20 = vmov 0.0|0.0  }
 0x1b1   : > { %v876_v26 = vmul.f32 0.125, %v843_v23  ;;  %v877_v27 = vmul.f32 0.125, %v846_v24  ;;  %v906_v28 = vmul.f32 %v5229_v53, %v5229_v53  ;;  %v907_v51 = vmul.f32 %v5233_v54, %v5233_v54  ;;  %4402 = vmatprep.subr.bf16.mxu0 %v4845_v20 }
 0x1b2   : > { %v4847_v23 = vmov 0.0  }
 0x1b3   : > { %v5243_v59 = vsub.f32 %v808_v5, %v876_v26  ;;  %v5247_v62 = vsub.f32 %v809_v9, %v877_v27  ;;  %v932_v1 = vsel %vm819_vm4, %v906_v28, 0.0  ;;  %v935_v32 = vsel %vm819_vm4, %v907_v51, 0.0  ;;  %4061 = vmatprep.mubr.msk.f32.mxu0 %vm4846_vm6, %v4847_v23 }
 0x1b4   : > { %v849_v36 = vpop.xlane.xlu1 %848  ;;  %933 = vadd.xlane.f32.xlu0 %v932_v1  ;;  %936 = vadd.xlane.f32.xlu1 %v935_v32  ;;  %v852_v37 = vpop.xlane.xlu0 %851 }
 0x1b5   : > { %v878_v38 = vmul.f32 0.125, %v849_v36  ;;  %v879_v39 = vmul.f32 0.125, %v852_v37  ;;  %v908_v43 = vmul.f32 %v5243_v59, %v5243_v59  ;;  %v909_v61 = vmul.f32 %v5247_v62, %v5247_v62 }
 0x1b7   : > { %v5257_v5 = vsub.f32 %v810_v13, %v878_v38  ;;  %v5261_v7 = vsub.f32 %v811_v17, %v879_v39  ;;  %v938_v9 = vsel %vm819_vm4, %v908_v43, 0.0  ;;  %v941_v44 = vsel %vm819_vm4, %v909_v61, 0.0 }
 0x1b8   : > { %v855_v50 = vpop.xlane.xlu1 %854  ;;  %939 = vadd.xlane.f32.xlu0 %v938_v9  ;;  %942 = vadd.xlane.f32.xlu1 %v941_v44  ;;  %v858_v52 = vpop.xlane.xlu0 %857 }
 0x1b9   : > { %v880_v55 = vmul.f32 0.125, %v855_v50  ;;  %v881_v56 = vmul.f32 0.125, %v858_v52  ;;  %v910_v58 = vmul.f32 %v5257_v5, %v5257_v5  ;;  %v911_v6 = vmul.f32 %v5261_v7, %v5261_v7 }
 0x1bb   : > { %v5271_v13 = vsub.f32 %v812_v19, %v880_v55  ;;  %v5275_v14 = vsub.f32 %v813_v25, %v881_v56  ;;  %v944_v17 = vsel %vm819_vm4, %v910_v58, 0.0  ;;  %v947_v0 = vsel %vm819_vm4, %v911_v6, 0.0 }
 0x1bc   : > { %v861_v41 = vpop.xlane.xlu1 %860  ;;  %945 = vadd.xlane.f32.xlu0 %v944_v17  ;;  %948 = vadd.xlane.f32.xlu1 %v947_v0  ;;  %v864_v42 = vpop.xlane.xlu0 %863  ;;  %v5322_v0 = vld [vmem:[%s6018_s3] ss:$0 sm:$0xff] }
 0x1bd   : > { %v882_v2 = vmul.f32 0.125, %v861_v41  ;;  %v883_v3 = vmul.f32 0.125, %v864_v42  ;;  %v912_v4 = vmul.f32 %v5271_v13, %v5271_v13  ;;  %v913_v11 = vmul.f32 %v5275_v14, %v5275_v14 }
 0x1bf   : > { %v5285_v19 = vsub.f32 %v814_v29, %v882_v2  ;;  %v5289_v22 = vsub.f32 %v815_v33, %v883_v3  ;;  %v950_v25 = vsel %vm819_vm4, %v912_v4, 0.0  ;;  %v953_v8 = vsel %vm819_vm4, %v913_v11, 0.0  ;;  %v5328_v11 = vld [vmem:[%s6019_s4] ss:$0 sm:$0xff] }
 0x1c0   : > { %v867_v45 = vpop.xlane.xlu1 %866  ;;  %951 = vadd.xlane.f32.xlu0 %v950_v25  ;;  %954 = vadd.xlane.f32.xlu1 %v953_v8  ;;  %v1292_v49 = vpop.xlane.xlu0 %1291 }
 0x1c1   : > { %v884_v10 = vmul.f32 0.125, %v867_v45  ;;  %v1294_v12 = vmul.f32 0.03125, %v1292_v49  ;;  %v914_v15 = vmul.f32 %v5285_v19, %v5285_v19  ;;  %v915_v21 = vmul.f32 %v5289_v22, %v5289_v22 }
 0x1c3   : > { %v5299_v29 = vsub.f32 %v816_v35, %v884_v10  ;;  %v5302_v31 = vsub.f32 %v5180_v34, %v1294_v12  ;;  %v956_v33 = vsel %vm819_vm4, %v914_v15, 0.0  ;;  %v959_v16 = vsel %vm819_vm4, %v915_v21, 0.0  ;;  %v1073_v35 = vld [vmem:[%s6020_s5] sm:$0xff] }
 0x1c4   : > { %957 = vadd.xlane.f32.xlu0 %v956_v33  ;;  %960 = vadd.xlane.f32.xlu1 %v959_v16 }
 0x1c5   : > { %v916_v18 = vmul.f32 %v5299_v29, %v5299_v29  ;;  %v1296_v46 = vmul.f32 %v5302_v31, %v5302_v31  ;;  %4008 = vmatprep.subr.mxu1 %v1073_v35 }
 0x1c6   : > { %4009 = vmatpush3.msra.mxu1 %v1073_v35 }
 0x1c7   : > { %v962_v57 = vsel %vm819_vm4, %v916_v18, 0.0  ;;  %v1297_v30 = vsel %vm1289_vm5, %v1296_v46, 0.0  ;;  %4396 = vmatprep.subr.bf16.mxu1 %v4845_v20  ;;  %v1318_v46 = vld [vmem:[%s6024_s9] sm:$0xff] }
 0x1c8   : > { %963 = vadd.xlane.f32.xlu0 %v962_v57  ;;  %1298 = vadd.xlane.f32.xlu1 %v1297_v30  ;;  %v1319_v57 = vld [vmem:[%s6024_s9 + $0x8] sm:$0xff] }
 0x235   : > { %v919_v24 = vpop.xlane.xlu1 %918 }
 0x236   : > { %v965_v26 = vmul.f32 0.125, %v919_v24 }
 0x238   : > { %v981_v27 = vadd.f32 1e-05, %v965_v26 }
 0x239   : > { %v925_v28 = vpop.xlane.xlu1 %924  ;;  %v922_v51 = vpop.xlane.xlu0 %921 }
 0x23a   : > { %4690 = vrsqrt.f32 %v981_v27  ;;  %v967_v1 = vmul.f32 0.125, %v925_v28  ;;  %v966_v32 = vmul.f32 0.125, %v922_v51 }
 0x23c   : > { %v983_v36 = vadd.f32 1e-05, %v967_v1  ;;  %v982_v37 = vadd.f32 1e-05, %v966_v32  ;;  %v5344_v1 = vpack.c.bf16 %v1319_v57, %v1318_v46 }
 0x23d   : > { %v931_v38 = vpop.xlane.xlu1 %930  ;;  %v928_v39 = vpop.xlane.xlu0 %927 }
 0x23e   : > { %4692 = vrsqrt.f32 %v983_v36  ;;  %v969_v43 = vmul.f32 0.125, %v931_v38  ;;  %v968_v61 = vmul.f32 0.125, %v928_v39  ;;  %v1320_v36 = vld [vmem:[%s6024_s9 + $0x10] sm:$0xff] }
 0x23f   : > { %4694 = vrsqrt.f32 %v982_v37  ;;  %v1321_v37 = vld [vmem:[%s6024_s9 + $0x18] sm:$0xff] }
 0x240   : > { %v985_v9 = vadd.f32 1e-05, %v969_v43  ;;  %v984_v44 = vadd.f32 1e-05, %v968_v61 }
 0x241   : > { %v937_v50 = vpop.xlane.xlu1 %936  ;;  %v934_v52 = vpop.xlane.xlu0 %933 }
 0x242   : > { %4696 = vrsqrt.f32 %v985_v9  ;;  %v971_v55 = vmul.f32 0.125, %v937_v50  ;;  %v970_v56 = vmul.f32 0.125, %v934_v52  ;;  %v5357_v52 = vpack.c.bf16 %v1321_v37, %v1320_v36 }
 0x243   : > { %4698 = vrsqrt.f32 %v984_v44 }
 0x244   : > { %v4691_v58 = vpop.eup %4690  ;;  %v987_v6 = vadd.f32 1e-05, %v971_v55  ;;  %v986_v17 = vadd.f32 1e-05, %v970_v56 }
 0x245   : > { %v943_v41 = vpop.xlane.xlu1 %942  ;;  %v940_v42 = vpop.xlane.xlu0 %939  ;;  %v1013_v2 = vmul.f32 %v4691_v58, %v5196_v48 }
 0x246   : > { %4700 = vrsqrt.f32 %v987_v6  ;;  %v973_v3 = vmul.f32 0.125, %v943_v41  ;;  %v972_v4 = vmul.f32 0.125, %v940_v42 }
 0x247   : > { %4702 = vrsqrt.f32 %v986_v17  ;;  %v1035_v25 = vmul.f32 %v5322_v0, %v1013_v2 }
 0x248   : > { %v4693_v8 = vpop.eup %4692  ;;  %v989_v45 = vadd.f32 1e-05, %v973_v3  ;;  %v988_v49 = vadd.f32 1e-05, %v972_v4 }
 0x249   : > { %v4695_v10 = vpop.eup %4694  ;;  %v949_v12 = vpop.xlane.xlu1 %948  ;;  %v1057_v21 = vadd.f32 %v5328_v11, %v1035_v25  ;;  %v1015_v48 = vmul.f32 %v4693_v8, %v5202_v60 }
 0x24a   : > { %v946_v15 = vpop.xlane.xlu0 %945  ;;  %4704 = vrsqrt.f32 %v989_v45  ;;  %v975_v33 = vmul.f32 0.125, %v949_v12  ;;  %v1014_v18 = vmul.f32 %v4695_v10, %v5206_v63 }
 0x24b   : > { %v974_v16 = vmul.f32 0.125, %v946_v15  ;;  %4706 = vrsqrt.f32 %v988_v49  ;;  %4010 = vmatprep.mubr.msk.f32.mxu1 %vm819_vm4, %v1057_v21  ;;  %v1037_v30 = vmul.f32 %v5322_v0, %v1015_v48 }
 0x24c   : > { %v4697_v35 = vpop.eup %4696  ;;  %v991_v60 = vadd.f32 1e-05, %v975_v33  ;;  %v1036_v26 = vmul.f32 %v5322_v0, %v1014_v18 }
 0x24d   : > { %v990_v24 = vadd.f32 1e-05, %v974_v16  ;;  %v4699_v27 = vpop.eup %4698  ;;  %v955_v63 = vpop.xlane.xlu1 %954  ;;  %v1059_v51 = vadd.f32 %v5328_v11, %v1037_v30  ;;  %v1017_v32 = vmul.f32 %v4697_v35, %v5219_v40 }
 0x24e   : > { %v952_v28 = vpop.xlane.xlu0 %951  ;;  %4708 = vrsqrt.f32 %v991_v60  ;;  %v977_v38 = vmul.f32 0.125, %v955_v63  ;;  %v1058_v43 = vadd.f32 %v5328_v11, %v1036_v26  ;;  %v1016_v61 = vmul.f32 %v4699_v27, %v5215_v47 }
 0x24f   : > { %v976_v39 = vmul.f32 0.125, %v952_v28  ;;  %4710 = vrsqrt.f32 %v990_v24  ;;  %v1039_v9 = vmul.f32 %v5322_v0, %v1017_v32 }
 0x250   : > { %v4701_v44 = vpop.eup %4700  ;;  %v993_v40 = vadd.f32 1e-05, %v977_v38  ;;  %4011 = vmatmul.mubr.msk.f32.vlgmr.msra.gmra.mrb[0].mxu1 %vm819_vm4, %v1058_v43  ;;  %v1038_v6 = vmul.f32 %v5322_v0, %v1016_v61 }
 0x251   : > { %v992_v50 = vadd.f32 1e-05, %v976_v39  ;;  %v4703_v55 = vpop.eup %4702  ;;  %4013 = vmatprep.mubr.msk.f32.mxu1 %vm819_vm4, %v1059_v51  ;;  %4398 = vmatpush3.bf16.msra.mxu1 %v5344_v1  ;;  %v961_v56 = vpop.xlane.xlu1 %960  ;;  %v1061_v47 = vadd.f32 %v5328_v11, %v1039_v9  ;;  %v1019_v17 = vmul.f32 %v4701_v44, %v5233_v54 }
 0x252   : > { %v958_v58 = vpop.xlane.xlu0 %957  ;;  %4712 = vrsqrt.f32 %v993_v40  ;;  %v979_v41 = vmul.f32 0.125, %v961_v56  ;;  %v1018_v2 = vmul.f32 %v4703_v55, %v5229_v53  ;;  %4399 = vmatprep.subr.bf16.mxu1 %v4845_v20  ;;  %v1060_v3 = vadd.f32 %v5328_v11, %v1038_v6 }
 0x253   : > { %v978_v42 = vmul.f32 0.125, %v958_v58  ;;  %4714 = vrsqrt.f32 %v992_v50  ;;  %v1041_v4 = vmul.f32 %v5322_v0, %v1019_v17 }
 0x254   : > { %v4705_v25 = vpop.eup %4704  ;;  %v995_v8 = vadd.f32 1e-05, %v979_v41  ;;  %v1040_v49 = vmul.f32 %v5322_v0, %v1018_v2  ;;  %4014 = vmatmul.mubr.msk.f32.gmra.mrb[2].mxu1 %vm819_vm4, %v1060_v3 }
 0x255   : > { %v994_v45 = vadd.f32 1e-05, %v978_v42  ;;  %v4707_v10 = vpop.eup %4706  ;;  %v1299_v54 = vpop.xlane.xlu1 %1298  ;;  %v1063_v15 = vadd.f32 %v5328_v11, %v1041_v4  ;;  %v1021_v53 = vmul.f32 %v4705_v25, %v5247_v62  ;;  %4016 = vmatprep.mubr.msk.f32.mxu1 %vm819_vm4, %v1061_v47  ;;  %4401 = vmatpush3.bf16.msra.mxu1 %v5357_v52 }
 0x256   : > { %v964_v12 = vpop.xlane.xlu0 %963  ;;  %4716 = vrsqrt.f32 %v995_v8  ;;  %v1300_v21 = vmul.f32 0.03125, %v1299_v54  ;;  %v1062_v33 = vadd.f32 %v5328_v11, %v1040_v49  ;;  %v1020_v16 = vmul.f32 %v4707_v10, %v5243_v59  ;;  %4418 = vmatprep.subr.bf16.mxu1 %v4845_v20 }
 0x257   : > { %v980_v48 = vmul.f32 0.125, %v964_v12  ;;  %4718 = vrsqrt.f32 %v994_v45  ;;  %v1043_v18 = vmul.f32 %v5322_v0, %v1021_v53 }
 0x258   : > { %v4709_v46 = vpop.eup %4708  ;;  %v1301_v57 = vadd.f32 1e-05, %v1300_v21  ;;  %4017 = vmatmul.mubr.msk.f32.gmra.mrb[4].mxu1 %vm819_vm4, %v1062_v33  ;;  %v1042_v35 = vmul.f32 %v5322_v0, %v1020_v16 }
 0x259   : > { %v996_v30 = vadd.f32 1e-05, %v980_v48  ;;  %v4711_v62 = vpop.eup %4710  ;;  %v1023_v60 = vmul.f32 %v4709_v46, %v5261_v7  ;;  %4019 = vmatprep.mubr.msk.f32.mxu1 %vm819_vm4, %v1063_v15  ;;  %v1065_v24 = vadd.f32 %v5328_v11, %v1043_v18 }
 0x25a   : > { %4720 = vrsqrt.f32 %v1301_v57  ;;  %v1022_v59 = vmul.f32 %v4711_v62, %v5257_v5  ;;  %v1064_v26 = vadd.f32 %v5328_v11, %v1042_v35 }
 0x25b   : > { %4722 = vrsqrt.f32 %v996_v30  ;;  %v1045_v27 = vmul.f32 %v5322_v0, %v1023_v60 }
 0x25c   : > { %v4713_v63 = vpop.eup %4712  ;;  %v1044_v28 = vmul.f32 %v5322_v0, %v1022_v59  ;;  %4020 = vmatmul.mubr.msk.f32.gmra.mrb[6].mxu1 %vm819_vm4, %v1064_v26 }
 0x25d   : > { %v4715_v51 = vpop.eup %4714  ;;  %v1025_v7 = vmul.f32 %v4713_v63, %v5275_v14  ;;  %4022 = vmatprep.mubr.msk.f32.mxu1 %vm819_vm4, %v1065_v24  ;;  %v1067_v36 = vadd.f32 %v5328_v11, %v1045_v27 }
 0x25e   : > { %v1066_v32 = vadd.f32 %v5328_v11, %v1044_v28  ;;  %v1024_v5 = vmul.f32 %v4715_v51, %v5271_v13 }
 0x25f   : > { %v1047_v37 = vmul.f32 %v5322_v0, %v1025_v7 }
 0x260   : > { %v4717_v38 = vpop.eup %4716  ;;  %v1046_v39 = vmul.f32 %v5322_v0, %v1024_v5  ;;  %4023 = vmatmul.mubr.msk.f32.gmra.mrb[8].mxu1 %vm819_vm4, %v1066_v32 }
 0x261   : > { %v4719_v43 = vpop.eup %4718  ;;  %v1027_v61 = vmul.f32 %v4717_v38, %v5289_v22  ;;  %4025 = vmatprep.mubr.msk.f32.mxu1 %vm819_vm4, %v1067_v36  ;;  %v1069_v9 = vadd.f32 %v5328_v11, %v1047_v37 }
 0x262   : > { %v1068_v14 = vadd.f32 %v5328_v11, %v1046_v39  ;;  %v1026_v44 = vmul.f32 %v4719_v43, %v5285_v19  ;;  %v5412_v19 = vld [vmem:[%s6022_s7] ss:$0 sm:$0xff] }
 0x263   : > { %v1049_v13 = vmul.f32 %v5322_v0, %v1027_v61 }
 0x264   : > { %v4721_v40 = vpop.eup %4720  ;;  %v1048_v50 = vmul.f32 %v5322_v0, %v1026_v44  ;;  %4026 = vmatmul.mubr.msk.f32.gmra.mrb[10].mxu1 %vm819_vm4, %v1068_v14 }
 0x265   : > { %v4723_v55 = vpop.eup %4722  ;;  %4028 = vmatprep.mubr.msk.f32.mxu1 %vm819_vm4, %v1069_v9  ;;  %v1071_v56 = vadd.f32 %v5328_v11, %v1049_v13  ;;  %v1303_v6 = vmul.f32 %v4721_v40, %v5302_v31 }
 0x266   : > { %v1070_v22 = vadd.f32 %v5328_v11, %v1048_v50  ;;  %v1028_v58 = vmul.f32 %v4723_v55, %v5299_v29  ;;  %v5422_v29 = vld [vmem:[%s6023_s8] ss:$0 sm:$0xff] }
 0x267   : > { %v1310_v41 = vmul.f32 %v5412_v19, %v1303_v6 }
 0x268   : > { %v1050_v47 = vmul.f32 %v5322_v0, %v1028_v58  ;;  %4029 = vmatmul.mubr.msk.f32.gmra.mrb[12].mxu1 %vm819_vm4, %v1070_v22 }
 0x269   : > { %4031 = vmatprep.mubr.msk.f32.mxu1 %vm819_vm4, %v1071_v56  ;;  %v1317_v31 = vadd.f32 %v5422_v29, %v1310_v41 }
 0x26a   : > { %v1072_v17 = vadd.f32 %v5328_v11, %v1050_v47 }
 0x26c   : > { %4032 = vmatmul.mubr.msk.f32.gmra.mrb[14].mxu1 %vm819_vm4, %v1072_v17 }
 0x26d   : > { %4042 = vmatprep.mubr.msk.f32.mxu1 %vm4846_vm6, %v4847_v23 }
 0x270   : > { %4043 = vmatmul.mubr.msk.f32.vlgmr.msra.gmra.mrb[16].mxu1 %vm1289_vm5, %v1317_v31 }
 0x271   : > { %4080 = vmatprep.mubr.msk.f32.mxu1 %vm4846_vm6, %v4847_v23 }
 0x323   : > { %v4012_v0 = vpop.f32.mrb[0].mxu1 }
 0x324   : > { %v1188_v11 = vpop.f32.mrb[1].mxu1 }
 0x325   : > { %v4650_v2 = vpack.i.bf16 %v4012_v0, %v1188_v11  ;;  %v5437_v3 = vpack.c.bf16 %v4012_v0, %v1188_v11 }
 0x327   : > { %4651 = vrot.lane.b32.xlu1 %v4650_v2, %s4848_s29  ;;  %4405 = vmatpush3.bf16.xpose.msk.msra.mxu0 %vm5433_vm7, %v5437_v3  ;;  %v5443_v4 = vpop.f32.mrb[2].mxu1 }
 0x328   : > { %4406 = vmatprep.subr.bf16.mxu0 %v4845_v20  ;;  %v5446_v25 = vpop.f32.mrb[3].mxu1 }
 0x329   : > { %v4655_v8 = vpack.i.bf16 %v5443_v4, %v5446_v25  ;;  %v5452_v45 = vpack.c.bf16 %v5443_v4, %v5446_v25 }
 0x32b   : > { %v4018_v49 = vpop.f32.mrb[4].mxu1 }
 0x32c   : > { %v1208_v10 = vpop.f32.mrb[5].mxu1 }
 0x32d   : > { %v4660_v54 = vpack.i.bf16 %v4018_v49, %v1208_v10  ;;  %v5454_v12 = vpack.c.bf16 %v4018_v49, %v1208_v10 }
 0x32f   : > { %4409 = vmatpush3.bf16.xpose.msk.msra.mxu0 %vm5433_vm7, %v5452_v45  ;;  %4661 = vrot.lane.b32.xlu1 %v4660_v54, %s4848_s29  ;;  %v4021_v15 = vpop.f32.mrb[6].mxu1 }
 0x330   : > { %4410 = vmatprep.subr.bf16.mxu0 %v4845_v20  ;;  %v1218_v53 = vpop.f32.mrb[7].mxu1 }
 0x331   : > { %v4665_v21 = vpack.i.bf16 %v4021_v15, %v1218_v53  ;;  %v5461_v48 = vpack.c.bf16 %v4021_v15, %v1218_v53 }
 0x333   : > { %4666 = vrot.lane.b32.xlu1 %v4665_v21, %s4848_s29  ;;  %v5464_v33 = vpop.f32.mrb[8].mxu1 }
 0x334   : > { %v5466_v16 = vpop.f32.mrb[9].mxu1 }
 0x335   : > { %v4670_v18 = vpack.i.bf16 %v5464_v33, %v5466_v16  ;;  %v5472_v46 = vpack.c.bf16 %v5464_v33, %v5466_v16 }
 0x337   : > { %4413 = vmatpush3.bf16.xpose.msk.msra.mxu0 %vm5433_vm7, %v5454_v12  ;;  %v5477_v57 = vpop.f32.mrb[10].mxu1 }
 0x338   : > { %4414 = vmatprep.subr.bf16.mxu0 %v4845_v20  ;;  %v5480_v30 = vpop.f32.mrb[11].mxu1 }
 0x339   : > { %v4675_v62 = vpack.i.bf16 %v5477_v57, %v5480_v30  ;;  %v5486_v35 = vpack.c.bf16 %v5477_v57, %v5480_v30 }
 0x33b   : > { %v5488_v60 = vpop.f32.mrb[12].mxu1 }
 0x33c   : > { %v5490_v24 = vpop.f32.mrb[13].mxu1 }
 0x33d   : > { %v4680_v59 = vpack.i.bf16 %v5488_v60, %v5490_v24  ;;  %v5496_v26 = vpack.c.bf16 %v5488_v60, %v5490_v24 }
 0x33f   : > { %4417 = vmatpush3.bf16.xpose.msk.msra.mxu0 %vm5433_vm7, %v5461_v48  ;;  %v5501_v27 = vpop.f32.mrb[14].mxu1 }
 0x340   : > { %4448 = vmatprep.subr.bf16.mxu0 %v4845_v20  ;;  %v5504_v63 = vpop.f32.mrb[15].mxu1 }
 0x341   : > { %v4685_v28 = vpack.i.bf16 %v5501_v27, %v5504_v63  ;;  %v5510_v51 = vpack.c.bf16 %v5501_v27, %v5504_v63 }
 0x343   : > { %v1391_v7 = vpop.f32.mrb[16].mxu1 }
 0x344   : > { %v1395_v32 = vmul.f32 0.17677669, %v1391_v7  ;;  %v4044_v36 = vpop.f32.mrb[17].mxu1 }
 0x346   : > { %4062 = vmatmul.mubr.msk.f32.vlgmr.msra.gmra.mrb[16].mxu0 %vm1289_vm5, %v1395_v32 }
 0x347   : > { %4450 = vmatpush3.bf16.msra.mxu0 %v5344_v1  ;;  %4121 = vmatprep.mubr.msk.f32.mxu0 %vm4846_vm6, %v4847_v23 }
 0x348   : > { %4451 = vmatprep.subr.bf16.mxu0 %v4845_v20 }
 0x34b   : > { %4453 = vmatpush3.bf16.msra.mxu0 %v5357_v52 }
 0x34c   : > { %4454 = vmatprep.subr.bf16.mxu0 %v4845_v20 }
 0x399   : > { %v4652_v5 = vpop.permute.xlu1 %4651 }
 0x39a   : > { %v4654_v37 = vunpack.i.h.bf16 %v4652_v5  ;;  %v4653_v38 = vunpack.i.l.bf16 %v4652_v5 }
 0x39c   : > { %v5519_v39 = vpack.c.bf16 %v4654_v37, %v4653_v38 }
 0x39e   : > { %4420 = vmatpush3.bf16.msra.mxu1 %v5519_v39 }
 0x39f   : > { %4421 = vmatprep.subr.bf16.mxu1 %v4845_v20 }
 0x3a1   : > { %v4662_v53 = vpop.permute.xlu1 %4661 }
 0x3a2   : > { %v4664_v36 = vunpack.i.h.bf16 %v4662_v53  ;;  %v4663_v5 = vunpack.i.l.bf16 %v4662_v53 }
 0x3a5   : > { %v4667_v38 = vpop.permute.xlu1 %4666 }
 0x3a6   : > { %v4668_v4 = vunpack.i.l.bf16 %v4667_v38 }
 0x419   : > { %v1489_v43 = vpop.f32.mrb[16].mxu0 }
 0x41a   : > { %v1494_v61 = vsel %vm1493_vm8, %v1489_v43, -inf  ;;  %v4063_v14 = vpop.f32.mrb[17].mxu0 }
 0x41b   : > { %v1495_v9 = vrot.slane %v1494_v61, 4 }
 0x41d   : > { %v1496_v44 = vmax.f32 %v1494_v61, %v1495_v9  ;;  %v4669_v61 = vunpack.i.h.bf16 %v4667_v38  ;;  %v1760_v38 = vld [vmem:[%s6029_s14 + $0x18] sm:$0xff] }
 0x41f   : > { %v1497_v13 = vrot.slane %v1496_v44, 2 }
 0x421   : > { %v1498_v40 = vmax.f32 %v1496_v44, %v1497_v13 }
 0x423   : > { %v1499_v50 = vrot.slane %v1498_v40, 1 }
 0x425   : > { %v1500_v55 = vmax.f32 %v1498_v40, %v1499_v50 }
 0x427   : > { %v1501_v22 = vsub.f32 %v1489_v43, %v1500_v55  ;;  %v5534_v43 = vpack.c.bf16 %v4664_v36, %v4663_v5  ;;  %v1759_v5 = vld [vmem:[%s6029_s14 + $0x10] sm:$0xff] }
 0x429   : > { %v1502_v56 = vmul.f32 1.442695, %v1501_v22 }
 0x42b   : > { %4724 = vpow2.f32 %v1502_v56 }
 0x435   : > { %v4725_v58 = vpop.eup %4724 }
 0x436   : > { %v1504_v6 = vsel %vm1493_vm8, %v4725_v58, 0.0 }
 0x437   : > { %v1505_v47 = vrot.slane %v1504_v6, 4 }
 0x439   : > { %v1506_v17 = vadd.f32 %v1505_v47, %v1504_v6  ;;  %v1646_v6 = vld [vmem:[%s6027_s12] sm:$0xff] }
 0x43b   : > { %v1507_v41 = vrot.slane %v1506_v17, 2 }
 0x43d   : > { %v1508_v31 = vadd.f32 %v1507_v41, %v1506_v17  ;;  %v1648_v17 = vld [vmem:[%s6027_s12 + $0x10] sm:$0xff]  ;;  %v1649_v41 = vld [vmem:[%s6027_s12 + $0x18] sm:$0xff] }
 0x43f   : > { %v1509_v0 = vrot.slane %v1508_v31, 1 }
 0x441   : > { %v1510_v11 = vadd.f32 %v1509_v0, %v1508_v31  ;;  %v5568_v31 = vpack.c.bf16 %v1649_v41, %v1648_v17 }
 0x443   : > { %4726 = vrcp.f32 %v1510_v11 }
 0x44d   : > { %v4727_v2 = vpop.eup %4726 }
 0x44e   : > { %v1512_v49 = vmul.f32 %v4727_v2, %v4725_v58 }
 0x450   : > { %v1513_v10 = vadd.f32 1e-08, %v1512_v49 }
 0x452   : > { %v1514_v54 = vsel %vm1493_vm8, %v1513_v10, 0.0 }
 0x453   : > { %1515 = vadd.xlane.f32.xlu0 %v1514_v54 }
 0x469   : > { %4656 = vrot.lane.b32.xlu0 %v4655_v8, %s4848_s29  ;;  %v5538_v8 = vpack.c.bf16 %v4669_v61, %v4668_v4  ;;  %v5603_v61 = vpack.c.bf16 %v1760_v38, %v1759_v5  ;;  %v1761_v4 = vld [vmem:[%s6029_s14 + $0x20] sm:$0xff] }
 0x4e0   : > { %v1516_v15 = vpop.xlane.xlu0 %1515 }
 0x4e1   : > { %4728 = vrcp.f32 %v1516_v15  ;;  %v5580_v15 = vld [vmem:[%s6026_s11] ss:$0 sm:$0xff] }
 0x4e4   : > { %v4657_v21 = vpop.permute.xlu0 %4656 }
 0x4e5   : > { %v4659_v7 = vunpack.i.h.bf16 %v4657_v21  ;;  %v4658_v32 = vunpack.i.l.bf16 %v4657_v21 }
 0x4e7   : > { %v5530_v37 = vpack.c.bf16 %v4659_v7, %v4658_v32  ;;  %v1757_v7 = vld [vmem:[%s6029_s14] sm:$0xff]  ;;  %v1758_v32 = vld [vmem:[%s6029_s14 + $0x8] sm:$0xff] }
 0x4e8   : > { %v5593_v36 = vpack.c.bf16 %v1758_v32, %v1757_v7 }
 0x4e9   : > { %4423 = vmatpush3.bf16.msra.mxu1 %v5530_v37 }
 0x4ea   : > { %4424 = vmatprep.subr.bf16.mxu1 %v4845_v20 }
 0x4eb   : > { %v4729_v25 = vpop.eup %4728 }
 0x4ec   : > { %v1518_v14 = vmul.f32 %v4729_v25, %v1513_v10  ;;  %v5575_v10 = vld [vmem:[%s6025_s10] ss:$0 sm:$0xff]  ;;  %v1762_v25 = vld [vmem:[%s6029_s14 + $0x28] sm:$0xff] }
 0x4ed   : > { %4426 = vmatpush3.bf16.msra.mxu1 %v5534_v43 }
 0x4ee   : > { %4427 = vmatprep.subr.bf16.mxu1 %v4845_v20 }
 0x4f1   : > { %4429 = vmatpush3.bf16.msra.mxu1 %v5538_v8 }
 0x4f2   : > { %4430 = vmatprep.subr.bf16.mxu1 %v4845_v20 }
 0x4f4   : > { %4081 = vmatmul.mubr.msk.f32.vlgmr.msra.gmra.mrb[18].mxu1 %vm1493_vm8, %v1518_v14  ;;  %v5613_v14 = vpack.c.bf16 %v1762_v25, %v1761_v4 }
 0x4f5   : > { %4091 = vmatprep.mubr.msk.f32.mxu1 %vm4846_vm6, %v4847_v23 }
 0x5c7   : > { %v1612_v9 = vpop.f32.mrb[18].mxu1 }
 0x5c8   : > { %v5546_v44 = vadd.f32 %v1612_v9, %v5180_v34  ;;  %v4082_v13 = vpop.f32.mrb[19].mxu1  ;;  %v1647_v34 = vld [vmem:[%s6027_s12 + $0x8] sm:$0xff]  ;;  %v1763_v9 = vld [vmem:[%s6029_s14 + $0x30] sm:$0xff] }
 0x5c9   : > { %v5558_v47 = vpack.c.bf16 %v1647_v34, %v1646_v6  ;;  %v1764_v13 = vld [vmem:[%s6029_s14 + $0x38] sm:$0xff] }
 0x5ca   : > { %v1619_v40 = vsel %vm1289_vm5, %v5546_v44, 0.0 }
 0x5cb   : > { %1620 = vadd.xlane.f32.xlu1 %v1619_v40  ;;  %4432 = vmatpush3.bf16.msra.mxu1 %v5558_v47  ;;  %v5623_v40 = vpack.c.bf16 %v1764_v13, %v1763_v9 }
 0x5cc   : > { %4433 = vmatprep.subr.bf16.mxu1 %v4845_v20 }
 0x5cf   : > { %4435 = vmatpush3.bf16.msra.mxu1 %v5568_v31 }
 0x5d0   : > { %4436 = vmatprep.subr.bf16.mxu1 %v4845_v20 }
 0x658   : > { %v1621_v50 = vpop.xlane.xlu1 %1620 }
 0x659   : > { %v1622_v55 = vmul.f32 0.03125, %v1621_v50  ;;  %v5630_v50 = vld [vmem:[%s6028_s13] ss:$0 sm:$0xff] }
 0x65b   : > { %v1623_v22 = vsub.f32 %v5546_v44, %v1622_v55 }
 0x65d   : > { %v1624_v56 = vmul.f32 %v1623_v22, %v1623_v22 }
 0x65f   : > { %v1625_v58 = vsel %vm1289_vm5, %v1624_v56, 0.0 }
 0x660   : > { %1626 = vadd.xlane.f32.xlu0 %v1625_v58 }
 0x6ed   : > { %v1627_v0 = vpop.xlane.xlu0 %1626 }
 0x6ee   : > { %v1628_v11 = vmul.f32 0.03125, %v1627_v0 }
 0x6f0   : > { %v1629_v2 = vadd.f32 1e-05, %v1628_v11 }
 0x6f2   : > { %4730 = vrsqrt.f32 %v1629_v2 }
 0x6fc   : > { %v4731_v49 = vpop.eup %4730 }
 0x6fd   : > { %v1631_v54 = vmul.f32 %v4731_v49, %v1623_v22 }
 0x6ff   : > { %v1638_v53 = vmul.f32 %v5575_v10, %v1631_v54 }
 0x701   : > { %v1645_v21 = vadd.f32 %v5580_v15, %v1638_v53 }
 0x703   : > { %4092 = vmatmul.mubr.msk.f32.vlgmr.msra.gmra.mrb[20].mxu1 %vm1289_vm5, %v1645_v21 }
 0x704   : > { %4110 = vmatprep.mubr.msk.f32.mxu1 %vm4846_vm6, %v4847_v23  ;;  %4438 = vmatpush3.bf16.msra.mxu1 %v5593_v36 }
 0x705   : > { %4439 = vmatprep.subr.bf16.mxu1 %v4845_v20 }
 0x708   : > { %4441 = vmatpush3.bf16.msra.mxu1 %v5603_v61 }
 0x709   : > { %4442 = vmatprep.subr.bf16.mxu1 %v4845_v20 }
 0x70c   : > { %4444 = vmatpush3.bf16.msra.mxu1 %v5613_v14 }
 0x70d   : > { %4445 = vmatprep.subr.bf16.mxu1 %v4845_v20 }
 0x710   : > { %4447 = vmatpush3.bf16.msra.mxu1 %v5623_v40 }
 0x711   : > { %4470 = vmatprep.subr.bf16.mxu1 %v4845_v20 }
 0x7d6   : > { %v1726_v55 = vpop.f32.mrb[20].mxu1 }
 0x7d7   : > { %v1727_v22 = vadd.f32 %v5630_v50, %v1726_v55  ;;  %v4093_v56 = vpop.f32.mrb[21].mxu1 }
 0x7d9   : > { %v1731_v58 = vmul.f32 0.70710677, %v1727_v22 }
 0x7db   : > { %v1732_v6 = vand.u32 2147483647, %v1731_v58  ;;  %vm1752_vm9 = vcmp.ge.f32.partialorder %v1731_v58, 0.0 }
 0x7dd   : > { %v1733_v34 = vmul.f32 0.3275911, %v1732_v6  ;;  %v1746_v41 = vsub.f32 0.0, %v1732_v6 }
 0x7df   : > { %v1734_v17 = vadd.f32 1.0, %v1733_v34  ;;  %v1747_v11 = vmul.f32 %v1746_v41, %v1732_v6  ;;  %v1730_v34 = vmul.f32 0.5, %v1727_v22 }
 0x7e1   : > { %4732 = vrcp.f32 %v1734_v17  ;;  %v1748_v54 = vmul.f32 1.442695, %v1747_v11 }
 0x7e3   : > { %4734 = vpow2.f32 %v1748_v54 }
 0x7eb   : > { %v4733_v0 = vpop.eup %4732 }
 0x7ec   : > { %v1737_v2 = vmul.f32 1.0614054, %v4733_v0 }
 0x7ed   : > { %v4735_v25 = vpop.eup %4734 }
 0x7ee   : > { %v1738_v49 = vadd.f32 -1.4531521, %v1737_v2 }
 0x7f0   : > { %v1739_v53 = vmul.f32 %v4733_v0, %v1738_v49 }
 0x7f2   : > { %v1740_v21 = vadd.f32 1.4214138, %v1739_v53 }
 0x7f4   : > { %v1741_v7 = vmul.f32 %v4733_v0, %v1740_v21 }
 0x7f6   : > { %v1742_v32 = vadd.f32 -0.28449672, %v1741_v7 }
 0x7f8   : > { %v1743_v5 = vmul.f32 %v4733_v0, %v1742_v32 }
 0x7fa   : > { %v1744_v38 = vadd.f32 0.2548296, %v1743_v5 }
 0x7fc   : > { %v1745_v4 = vmul.f32 %v4733_v0, %v1744_v38 }
 0x7fe   : > { %v1750_v9 = vmul.f32 %v4735_v25, %v1745_v4 }
 0x800   : > { %v1751_v13 = vsub.f32 1.0, %v1750_v9 }
 0x802   : > { %v1753_v55 = vsub.f32 0.0, %v1751_v13 }
 0x804   : > { %v1754_v56 = vsel %vm1752_vm9, %v1751_v13, %v1753_v55 }
 0x805   : > { %v1755_v17 = vadd.f32 1.0, %v1754_v56 }
 0x807   : > { %v1756_v6 = vmul.f32 %v1755_v17, %v1730_v34 }
 0x809   : > { %4111 = vmatmul.mubr.msk.f32.vlgmr.msra.gmra.mrb[22].mxu1 %vm1493_vm8, %v1756_v6 }
 0x80a   : > { %4472 = vmatpush3.bf16.msra.mxu1 %v5519_v39  ;;  %4159 = vmatprep.mubr.msk.f32.mxu1 %vm4846_vm6, %v4847_v23  ;;  %v5647_v39 = vld [vmem:[%s6030_s15] ss:$0 sm:$0xff] }
 0x80b   : > { %4473 = vmatprep.subr.bf16.mxu1 %v4845_v20 }
 0x80e   : > { %4475 = vmatpush3.bf16.msra.mxu1 %v5530_v37 }
 0x80f   : > { %4476 = vmatprep.subr.bf16.mxu1 %v4845_v20 }
 0x812   : > { %4478 = vmatpush3.bf16.msra.mxu1 %v5534_v43 }
 0x813   : > { %4479 = vmatprep.subr.bf16.mxu1 %v4845_v20 }
 0x816   : > { %4481 = vmatpush3.bf16.msra.mxu1 %v5538_v8 }
 0x817   : > { %4482 = vmatprep.subr.bf16.mxu1 %v4845_v20 }
 0x8dc   : > { %v1841_v22 = vpop.f32.mrb[22].mxu1 }
 0x8dd   : > { %v1842_v58 = vadd.f32 %v5647_v39, %v1841_v22  ;;  %v4112_v41 = vpop.f32.mrb[23].mxu1 }
 0x8df   : > { %v5651_v37 = vadd.f32 %v1842_v58, %v5546_v44 }
 0x8e1   : > { %v1846_v43 = vsel %vm1289_vm5, %v5651_v37, 0.0 }
 0x8e2   : > { %1847 = vadd.xlane.f32.xlu0 %v1846_v43 }
 0x96f   : > { %v1848_v0 = vpop.xlane.xlu0 %1847 }
 0x970   : > { %v1849_v8 = vmul.f32 0.03125, %v1848_v0 }
 0x972   : > { %v1850_v11 = vsub.f32 %v5651_v37, %v1849_v8 }
 0x974   : > { %v1851_v2 = vmul.f32 %v1850_v11, %v1850_v11 }
 0x976   : > { %v1852_v49 = vsel %vm1289_vm5, %v1851_v2, 0.0 }
 0x977   : > { %1853 = vadd.xlane.f32.xlu0 %v1852_v49 }
 0xa04   : > { %v1854_v54 = vpop.xlane.xlu0 %1853 }
 0xa05   : > { %v1855_v53 = vmul.f32 0.03125, %v1854_v54 }
 0xa07   : > { %v1856_v21 = vadd.f32 1e-05, %v1855_v53 }
 0xa09   : > { %4736 = vrsqrt.f32 %v1856_v21 }
 0xa13   : > { %v4737_v7 = vpop.eup %4736 }
 0xa14   : > { %v1858_v32 = vmul.f32 %v4737_v7, %v1850_v11 }
 0xa16   : > { %v1859_v44 = vmul.f32 %v5412_v19, %v1858_v32 }
 0xa18   : > { %v1860_v5 = vadd.f32 %v5422_v29, %v1859_v44 }
 0xa1a   : > { %4122 = vmatmul.mubr.msk.f32.vlgmr.msra.gmra.mrb[18].mxu0 %vm1289_vm5, %v1860_v5 }
 0xa1b   : > { %4457 = vmatpush3.bf16.xpose.msk.msra.mxu0 %vm5433_vm7, %v5437_v3  ;;  %4140 = vmatprep.mubr.msk.f32.mxu0 %vm4846_vm6, %v4847_v23 }
 0xa1c   : > { %4458 = vmatprep.subr.bf16.mxu0 %v4845_v20 }
 0xa23   : > { %4461 = vmatpush3.bf16.xpose.msk.msra.mxu0 %vm5433_vm7, %v5452_v45 }
 0xa24   : > { %4462 = vmatprep.subr.bf16.mxu0 %v4845_v20 }
 0xa2b   : > { %4465 = vmatpush3.bf16.xpose.msk.msra.mxu0 %vm5433_vm7, %v5454_v12 }
 0xa2c   : > { %4466 = vmatprep.subr.bf16.mxu0 %v4845_v20 }
 0xa33   : > { %4469 = vmatpush3.bf16.xpose.msk.msra.mxu0 %vm5433_vm7, %v5461_v48 }
 0xaed   : > { %v1930_v3 = vpop.f32.mrb[18].mxu0 }
 0xaee   : > { %v1934_v38 = vmul.f32 0.17677669, %v1930_v3  ;;  %v4123_v4 = vpop.f32.mrb[19].mxu0 }
 0xaef   : > { %v5701_v4 = vld [vmem:[%s6021_s6] sm:$0xff] }
 0xaf0   : > { %4141 = vmatmul.mubr.msk.f32.vlgmr.msra.gmra.mrb[20].mxu0 %vm1289_vm5, %v1934_v38 }
 0xbc3   : > { %v2004_v25 = vpop.f32.mrb[20].mxu0 }
 0xbc4   : > { %v2008_v45 = vsel %vm1493_vm8, %v2004_v25, -inf  ;;  %v4142_v9 = vpop.f32.mrb[21].mxu0 }
 0xbc5   : > { %v2009_v13 = vrot.slane %v2008_v45, 4 }
 0xbc7   : > { %v2010_v55 = vmax.f32 %v2008_v45, %v2009_v13  ;;  %v2404_v45 = vsel %vm1289_vm5, %v5701_v4, 0.0 }
 0xbc9   : > { %v2011_v56 = vrot.slane %v2010_v55, 2 }
 0xbcb   : > { %v2012_v34 = vmax.f32 %v2010_v55, %v2011_v56 }
 0xbcd   : > { %v2013_v12 = vrot.slane %v2012_v34, 1 }
 0xbcf   : > { %v2014_v17 = vmax.f32 %v2012_v34, %v2013_v12 }
 0xbd1   : > { %v2015_v6 = vsub.f32 %v2004_v25, %v2014_v17 }
 0xbd3   : > { %v2016_v22 = vmul.f32 1.442695, %v2015_v6 }
 0xbd5   : > { %4738 = vpow2.f32 %v2016_v22 }
 0xbdf   : > { %v4739_v58 = vpop.eup %4738 }
 0xbe0   : > { %v2018_v48 = vsel %vm1493_vm8, %v4739_v58, 0.0 }
 0xbe1   : > { %v2019_v41 = vrot.slane %v2018_v48, 4 }
 0xbe3   : > { %v2020_v43 = vadd.f32 %v2019_v41, %v2018_v48 }
 0xbe5   : > { %v2021_v0 = vrot.slane %v2020_v43, 2 }
 0xbe7   : > { %v2022_v8 = vadd.f32 %v2021_v0, %v2020_v43 }
 0xbe9   : > { %v2023_v11 = vrot.slane %v2022_v8, 1 }
 0xbeb   : > { %v2024_v2 = vadd.f32 %v2023_v11, %v2022_v8 }
 0xbed   : > { %4740 = vrcp.f32 %v2024_v2 }
 0xbf7   : > { %v4741_v49 = vpop.eup %4740 }
 0xbf8   : > { %v2026_v54 = vmul.f32 %v4741_v49, %v4739_v58 }
 0xbfa   : > { %v2027_v53 = vadd.f32 1e-08, %v2026_v54 }
 0xbfc   : > { %v2028_v21 = vsel %vm1493_vm8, %v2027_v53, 0.0 }
 0xbfd   : > { %2029 = vadd.xlane.f32.xlu1 %v2028_v21 }
 0xc8a   : > { %v2030_v7 = vpop.xlane.xlu1 %2029 }
 0xc8b   : > { %4742 = vrcp.f32 %v2030_v7 }
 0xc95   : > { %v4743_v32 = vpop.eup %4742 }
 0xc96   : > { %v2032_v44 = vmul.f32 %v4743_v32, %v2027_v53 }
 0xc98   : > { %4160 = vmatmul.mubr.msk.f32.vlgmr.msra.gmra.mrb[24].mxu1 %vm1493_vm8, %v2032_v44  ;;  %2400 = vst.msk [vmem:[%s5685_s30] sm:$0xff] %vm1493_vm8, %v2032_v44 }
 0xc99   : > { %4484 = vmatpush3.bf16.msra.mxu1 %v5558_v47  ;;  %4170 = vmatprep.mubr.msk.f32.mxu1 %vm4846_vm6, %v4847_v23 }
 0xc9a   : > { %4485 = vmatprep.subr.bf16.mxu1 %v4845_v20 }
 0xc9d   : > { %4487 = vmatpush3.bf16.msra.mxu1 %v5568_v31 }
 0xc9e   : > { %4488 = vmatprep.subr.bf16.mxu1 %v4845_v20 }
 0xd6b   : > { %v2102_v5 = vpop.f32.mrb[24].mxu1 }
 0xd6c   : > { %v5696_v3 = vadd.f32 %v2102_v5, %v5651_v37  ;;  %v4161_v38 = vpop.f32.mrb[25].mxu1 }
 0xd6e   : > { %v2107_v25 = vsel %vm1289_vm5, %v5696_v3, 0.0 }
 0xd6f   : > { %2108 = vadd.xlane.f32.xlu0 %v2107_v25 }
 0xd73   : > { %2405 = vadd.xlane.f32.xlu0 %v2404_v45 }
 0xdfc   : > { %v2109_v9 = vpop.xlane.xlu0 %2108 }
 0xdfd   : > { %v2110_v13 = vmul.f32 0.03125, %v2109_v9 }
 0xdff   : > { %v2111_v55 = vsub.f32 %v5696_v3, %v2110_v13 }
 0xe00   : > { %v2406_v37 = vpop.xlane.xlu0 %2405 }
 0xe01   : > { %v2407_v56 = vmul.f32 0.03125, %v2406_v37  ;;  %v2112_v34 = vmul.f32 %v2111_v55, %v2111_v55 }
 0xe03   : > { %v5709_v12 = vsub.f32 %v5701_v4, %v2407_v56  ;;  %v2113_v17 = vsel %vm1289_vm5, %v2112_v34, 0.0 }
 0xe04   : > { %2114 = vadd.xlane.f32.xlu1 %v2113_v17 }
 0xe05   : > { %v2409_v6 = vmul.f32 %v5709_v12, %v5709_v12 }
 0xe07   : > { %v2410_v22 = vsel %vm1289_vm5, %v2409_v6, 0.0 }
 0xe08   : > { %2411 = vadd.xlane.f32.xlu1 %v2410_v22 }
 0xe19   : > { %4671 = vrot.lane.b32.xlu1 %v4670_v18, %s4848_s29 }
 0xe1d   : > { %4681 = vrot.lane.b32.xlu1 %v4680_v59, %s4848_s29 }
 0xe21   : > { %4686 = vrot.lane.b32.xlu1 %v4685_v28, %s4848_s29 }
 0xe91   : > { %v2115_v58 = vpop.xlane.xlu1 %2114 }
 0xe92   : > { %v2116_v48 = vmul.f32 0.03125, %v2115_v58 }
 0xe94   : > { %v2117_v41 = vadd.f32 1e-05, %v2116_v48 }
 0xe95   : > { %v2412_v25 = vpop.xlane.xlu1 %2411 }
 0xe96   : > { %4744 = vrsqrt.f32 %v2117_v41 }
 0xe99   : > { %v4672_v37 = vpop.permute.xlu1 %4671 }
 0xe9a   : > { %v4674_v34 = vunpack.i.h.bf16 %v4672_v37  ;;  %v4673_v17 = vunpack.i.l.bf16 %v4672_v37 }
 0xe9c   : > { %v5741_v41 = vpack.c.bf16 %v4674_v34, %v4673_v17 }
 0xea0   : > { %v4745_v43 = vpop.eup %4744 }
 0xea1   : > { %v2119_v0 = vmul.f32 %v4745_v43, %v2111_v55  ;;  %v1267_v43 = vlaneseq }
 0xea3   : > { %v2120_v8 = vmul.f32 %v5575_v10, %v2119_v0  ;;  %v1268_v0 = vshrl.u32 %v1267_v43, 7 }
 0xea5   : > { %v2121_v33 = vadd.f32 %v5580_v15, %v2120_v8  ;;  %v1273_v8 = vand.u32 127, %v1267_v43 }
 0xea7   : > { %4171 = vmatmul.mubr.msk.f32.vlgmr.msra.gmra.mrb[26].mxu1 %vm1289_vm5, %v2121_v33  ;;  %v1269_v33 = vadd.s32 8, %v1268_v0  ;;  %vm1274_vm11 = vcmp.eq.s32.totalorder %v1268_v0, %v1273_v8 }
 0xea8   : > { %4490 = vmatpush3.bf16.msra.mxu1 %v5593_v36  ;;  %4189 = vmatprep.mubr.msk.f32.mxu1 %vm4846_vm6, %v4847_v23 }
 0xea9   : > { %4491 = vmatprep.subr.bf16.mxu1 %v4845_v20  ;;  %vm1275_vm12 = vcmp.eq.s32.totalorder %v1269_v33, %v1273_v8 }
 0xeac   : > { %4493 = vmatpush3.bf16.msra.mxu1 %v5603_v61 }
 0xead   : > { %4494 = vmatprep.subr.bf16.mxu1 %v4845_v20 }
 0xeb0   : > { %4496 = vmatpush3.bf16.msra.mxu1 %v5613_v14 }
 0xeb1   : > { %4497 = vmatprep.subr.bf16.mxu1 %v4845_v20 }
 0xeb4   : > { %4499 = vmatpush3.bf16.msra.mxu1 %v5623_v40 }
 0xeb5   : > { %4522 = vmatprep.subr.bf16.mxu1 %v4845_v20 }
 0xf7a   : > { %v2191_v16 = vpop.f32.mrb[26].mxu1 }
 0xf7b   : > { %v2192_v18 = vadd.f32 %v5630_v50, %v2191_v16  ;;  %v4172_v60 = vpop.f32.mrb[27].mxu1  ;;  %v5749_v16 = vsel %vm1274_vm11, 1.0, %v4847_v23 }
 0xf7c   : > { %4194 = vmatprep.mubr.msk.f32.mxu0 %vm1289_vm5, %v5749_v16  ;;  %v1271_v60 = vadd.s32 24, %v1268_v0 }
 0xf7d   : > { %v2196_v24 = vmul.f32 0.70710677, %v2192_v18  ;;  %v2195_v22 = vmul.f32 0.5, %v2192_v18  ;;  %v1270_v18 = vadd.s32 16, %v1268_v0 }
 0xf7e   : > { %vm1277_vm14 = vcmp.eq.s32.totalorder %v1271_v60, %v1273_v8 }
 0xf7f   : > { %v2197_v59 = vand.u32 2147483647, %v2196_v24  ;;  %vm2217_vm10 = vcmp.ge.f32.partialorder %v2196_v24, 0.0  ;;  %vm1276_vm13 = vcmp.eq.s32.totalorder %v1270_v18, %v1273_v8  ;;  %v2413_v24 = vmul.f32 0.03125, %v2412_v25 }
 0xf81   : > { %v2198_v27 = vmul.f32 0.3275911, %v2197_v59  ;;  %v2211_v28 = vsub.f32 0.0, %v2197_v59 }
 0xf83   : > { %v2199_v63 = vadd.f32 1.0, %v2198_v27  ;;  %v2212_v2 = vmul.f32 %v2211_v28, %v2197_v59  ;;  %v2414_v59 = vadd.f32 1e-05, %v2413_v24 }
 0xf85   : > { %4746 = vrcp.f32 %v2199_v63  ;;  %v2213_v53 = vmul.f32 1.442695, %v2212_v2 }
 0xf87   : > { %4748 = vpow2.f32 %v2213_v53  ;;  %v5764_v53 = vsel %vm1276_vm13, 1.0, %v4847_v23 }
 0xf88   : > { %4750 = vrsqrt.f32 %v2414_v59 }
 0xf8f   : > { %v4747_v11 = vpop.eup %4746 }
 0xf90   : > { %v2202_v49 = vmul.f32 1.0614054, %v4747_v11 }
 0xf91   : > { %v4749_v9 = vpop.eup %4748 }
 0xf92   : > { %v2203_v54 = vadd.f32 -1.4531521, %v2202_v49  ;;  %v4751_v2 = vpop.eup %4750  ;;  %v5759_v49 = vsel %vm1275_vm12, 1.0, %v4847_v23 }
 0xf94   : > { %v2204_v21 = vmul.f32 %v4747_v11, %v2203_v54  ;;  %v2416_v54 = vmul.f32 %v4751_v2, %v5709_v12 }
 0xf96   : > { %v2205_v7 = vadd.f32 1.4214138, %v2204_v21  ;;  %v2423_v21 = vmul.f32 %v5412_v19, %v2416_v54 }
 0xf98   : > { %v2206_v32 = vmul.f32 %v4747_v11, %v2205_v7  ;;  %v2430_v12 = vadd.f32 %v5422_v29, %v2423_v21 }
 0xf9a   : > { %v2207_v44 = vadd.f32 -0.28449672, %v2206_v32 }
 0xf9c   : > { %v2208_v5 = vmul.f32 %v4747_v11, %v2207_v44 }
 0xf9e   : > { %v2209_v38 = vadd.f32 0.2548296, %v2208_v5 }
 0xfa0   : > { %v2210_v45 = vmul.f32 %v4747_v11, %v2209_v38 }
 0xfa2   : > { %v2215_v13 = vmul.f32 %v4749_v9, %v2210_v45 }
 0xfa4   : > { %v2216_v55 = vsub.f32 1.0, %v2215_v13 }
 0xfa6   : > { %v2218_v56 = vsub.f32 0.0, %v2216_v55 }
 0xfa8   : > { %v2219_v6 = vsel %vm2217_vm10, %v2216_v55, %v2218_v56 }
 0xfa9   : > { %v2220_v58 = vadd.f32 1.0, %v2219_v6 }
 0xfab   : > { %v2221_v48 = vmul.f32 %v2220_v58, %v2195_v22 }
 0xfad   : > { %4190 = vmatmul.mubr.msk.f32.vlgmr.msra.gmra.mrb[28].mxu1 %vm1493_vm8, %v2221_v48 }
 0xfae   : > { %4524 = vmatpush3.bf16.msra.mxu1 %v5741_v41  ;;  %4246 = vmatprep.mubr.msk.f32.mxu1 %vm4846_vm6, %v4847_v23 }
 0xfaf   : > { %4525 = vmatprep.subr.bf16.mxu1 %v4845_v20 }
0x1080   : > { %v2291_v27 = vpop.f32.mrb[28].mxu1 }
0x1081   : > { %v2292_v63 = vadd.f32 %v5647_v39, %v2291_v27  ;;  %v4191_v28 = vpop.f32.mrb[29].mxu1 }
0x1083   : > { %v2295_v11 = vadd.f32 %v2292_v63, %v5696_v3  ;;  %v5773_v3 = vsel %vm1277_vm14, 1.0, %v4847_v23  ;;  %v4682_v63 = vpop.permute.xlu1 %4681 }
0x1084   : > { %v4684_v54 = vunpack.i.h.bf16 %v4682_v63  ;;  %v4683_v21 = vunpack.i.l.bf16 %v4682_v63 }
0x1085   : > { %4192 = vmatprep.subr.msk.mxu0 %vm1289_vm5, %v2295_v11 }
0x1086   : > { %4193 = vmatpush3.xpose.msk.msra.mxu0 %vm1289_vm5, %v2295_v11 }
0x1087   : > { %4500 = vmatprep.subr.bf16.mxu0 %v4845_v20 }
0x1089   : > { %4195 = vmatmul.mubr.msk.f32.vlgmr.msra.gmra.mrb[22].mxu0 %vm1289_vm5, %v5759_v49 }
0x108a   : > { %4502 = vmatpush3.bf16.msra.mxu0 %v5344_v1  ;;  %4197 = vmatprep.mubr.msk.f32.mxu0 %vm1289_vm5, %v5764_v53 }
0x108b   : > { %4503 = vmatprep.subr.bf16.mxu0 %v4845_v20 }
0x108d   : > { %4198 = vmatmul.mubr.msk.f32.gmra.mrb[24].mxu0 %vm1289_vm5, %v5773_v3 }
0x108e   : > { %4505 = vmatpush3.bf16.msra.mxu0 %v5357_v52  ;;  %4208 = vmatprep.mubr.msk.f32.mxu0 %vm4846_vm6, %v4847_v23 }
0x108f   : > { %4506 = vmatprep.subr.bf16.mxu0 %v4845_v20 }
0x1091   : > { %4209 = vmatmul.mubr.msk.f32.vlgmr.msra.gmra.mrb[26].mxu0 %vm1289_vm5, %v2430_v12 }
0x1092   : > { %4227 = vmatprep.mubr.msk.f32.mxu0 %vm4846_vm6, %v4847_v23 }
0x1097   : > { %4509 = vmatpush3.bf16.xpose.msk.msra.mxu0 %vm5433_vm7, %v5472_v46 }
0x1098   : > { %4510 = vmatprep.subr.bf16.mxu0 %v4845_v20 }
0x109f   : > { %4513 = vmatpush3.bf16.xpose.msk.msra.mxu0 %vm5433_vm7, %v5486_v35 }
0x10a0   : > { %4514 = vmatprep.subr.bf16.mxu0 %v4845_v20 }
0x10a7   : > { %4517 = vmatpush3.bf16.xpose.msk.msra.mxu0 %vm5433_vm7, %v5496_v26 }
0x10a8   : > { %4518 = vmatprep.subr.bf16.mxu0 %v4845_v20 }
0x10af   : > { %4521 = vmatpush3.bf16.xpose.msk.msra.mxu0 %vm5433_vm7, %v5510_v51 }
0x10b0   : > { %4552 = vmatprep.subr.bf16.mxu0 %v4845_v20 }
0x115c   : > { %v4196_v19 = vpop.f32.mrb[22].mxu0 }
0x115d   : > { %2397 = vst.msk [vmem:[%s5807_s27 + $0x8] sm:$0xff] %vm819_vm4, %v4196_v19  ;;  %v2377_v29 = vpop.f32.mrb[23].mxu0  ;;  %v4687_v19 = vpop.permute.xlu1 %4686 }
0x115e   : > { %2396 = vst.msk [vmem:[%s5807_s27] sm:$0xff] %vm819_vm4, %v2377_v29  ;;  %v5835_v29 = vpack.c.bf16 %v4684_v54, %v4683_v21  ;;  %v4688_v57 = vunpack.i.l.bf16 %v4687_v19 }
0x1160   : > { %v4199_v7 = vpop.f32.mrb[24].mxu0 }
0x1161   : > { %2399 = vst.msk [vmem:[%s5807_s27 + $0x18] sm:$0xff] %vm819_vm4, %v4199_v7  ;;  %v2387_v32 = vpop.f32.mrb[25].mxu0  ;;  %v4689_v7 = vunpack.i.h.bf16 %v4687_v19 }
0x1162   : > { %2398 = vst.msk [vmem:[%s5807_s27 + $0x10] sm:$0xff] %vm819_vm4, %v2387_v32 }
0x1164   : > { %v2504_v44 = vpop.f32.mrb[26].mxu0 }
0x1165   : > { %v2508_v5 = vmul.f32 0.17677669, %v2504_v44  ;;  %v4210_v38 = vpop.f32.mrb[27].mxu0 }
0x1167   : > { %4228 = vmatmul.mubr.msk.f32.vlgmr.msra.gmra.mrb[28].mxu0 %vm1289_vm5, %v2508_v5 }
0x1168   : > { %4554 = vmatpush3.bf16.msra.mxu0 %v5344_v1  ;;  %4287 = vmatprep.mubr.msk.f32.mxu0 %vm4846_vm6, %v4847_v23 }
0x1169   : > { %4555 = vmatprep.subr.bf16.mxu0 %v4845_v20 }
0x116c   : > { %4557 = vmatpush3.bf16.msra.mxu0 %v5357_v52 }
0x116d   : > { %4558 = vmatprep.subr.bf16.mxu0 %v4845_v20 }
0x123a   : > { %v2602_v25 = vpop.f32.mrb[28].mxu0 }
0x123b   : > { %v2606_v45 = vsel %vm1493_vm8, %v2602_v25, -inf  ;;  %v4229_v9 = vpop.f32.mrb[29].mxu0 }
0x123c   : > { %v2607_v13 = vrot.slane %v2606_v45, 4 }
0x123e   : > { %v2608_v55 = vmax.f32 %v2606_v45, %v2607_v13 }
0x1240   : > { %v2609_v37 = vrot.slane %v2608_v55, 2 }
0x1242   : > { %v2610_v56 = vmax.f32 %v2608_v55, %v2609_v37 }
0x1244   : > { %v2611_v34 = vrot.slane %v2610_v56, 1 }
0x1246   : > { %v2612_v17 = vmax.f32 %v2610_v56, %v2611_v34 }
0x1248   : > { %v2613_v1 = vsub.f32 %v2602_v25, %v2612_v17 }
0x124a   : > { %v2614_v6 = vmul.f32 1.442695, %v2613_v1 }
0x124c   : > { %4752 = vpow2.f32 %v2614_v6 }
0x1256   : > { %v4753_v22 = vpop.eup %4752 }
0x1257   : > { %v2616_v58 = vsel %vm1493_vm8, %v4753_v22, 0.0 }
0x1258   : > { %v2617_v48 = vrot.slane %v2616_v58, 4 }
0x125a   : > { %v2618_v52 = vadd.f32 %v2617_v48, %v2616_v58 }
0x125c   : > { %v2619_v43 = vrot.slane %v2618_v52, 2 }
0x125e   : > { %v2620_v0 = vadd.f32 %v2619_v43, %v2618_v52 }
0x1260   : > { %v2621_v8 = vrot.slane %v2620_v0, 1 }
0x1262   : > { %v2622_v33 = vadd.f32 %v2621_v8, %v2620_v0 }
0x1264   : > { %4754 = vrcp.f32 %v2622_v33 }
0x126e   : > { %v4755_v18 = vpop.eup %4754 }
0x126f   : > { %v2624_v60 = vmul.f32 %v4755_v18, %v4753_v22 }
0x1271   : > { %v2625_v24 = vadd.f32 1e-08, %v2624_v60 }
0x1273   : > { %v2626_v59 = vsel %vm1493_vm8, %v2625_v24, 0.0 }
0x1274   : > { %2627 = vadd.xlane.f32.xlu0 %v2626_v59 }
0x128a   : > { %4676 = vrot.lane.b32.xlu0 %v4675_v62, %s4848_s29  ;;  %v5839_v62 = vpack.c.bf16 %v4689_v7, %v4688_v57  ;;  %s5960_s29 = scalar_lea.hbm %s6032_s17, %s3750_s21 }
0x1301   : > { %v2628_v27 = vpop.xlane.xlu0 %2627 }
0x1302   : > { %4756 = vrcp.f32 %v2628_v27 }
0x1305   : > { %v4677_v28 = vpop.permute.xlu0 %4676 }
0x1306   : > { %v4679_v11 = vunpack.i.h.bf16 %v4677_v28  ;;  %v4678_v2 = vunpack.i.l.bf16 %v4677_v28 }
0x1308   : > { %v5831_v12 = vpack.c.bf16 %v4679_v11, %v4678_v2 }
0x130a   : > { %4527 = vmatpush3.bf16.msra.mxu1 %v5831_v12 }
0x130b   : > { %4528 = vmatprep.subr.bf16.mxu1 %v4845_v20 }
0x130c   : > { %v4757_v30 = vpop.eup %4756 }
0x130d   : > { %v2630_v32 = vmul.f32 %v4757_v30, %v2625_v24 }
0x130e   : > { %4530 = vmatpush3.bf16.msra.mxu1 %v5835_v29 }
0x130f   : > { %4531 = vmatprep.subr.bf16.mxu1 %v4845_v20 }
0x1312   : > { %4533 = vmatpush3.bf16.msra.mxu1 %v5839_v62 }
0x1313   : > { %4534 = vmatprep.subr.bf16.mxu1 %v4845_v20 }
0x1315   : > { %4247 = vmatmul.mubr.msk.f32.vlgmr.msra.gmra.mrb[30].mxu1 %vm1493_vm8, %v2630_v32 }
0x1316   : > { %4536 = vmatpush3.bf16.msra.mxu1 %v5558_v47  ;;  %4257 = vmatprep.mubr.msk.f32.mxu1 %vm4846_vm6, %v4847_v23 }
0x1317   : > { %4537 = vmatprep.subr.bf16.mxu1 %v4845_v20 }
0x131a   : > { %4539 = vmatpush3.bf16.msra.mxu1 %v5568_v31 }
0x131b   : > { %4540 = vmatprep.subr.bf16.mxu1 %v4845_v20 }
0x13e8   : > { %v2724_v44 = vpop.f32.mrb[30].mxu1 }
0x13e9   : > { %v5851_v5 = vadd.f32 %v2724_v44, %v5701_v4  ;;  %v4248_v38 = vpop.f32.mrb[31].mxu1 }
0x13eb   : > { %v2731_v25 = vsel %vm1289_vm5, %v5851_v5, 0.0 }
0x13ec   : > { %2732 = vadd.xlane.f32.xlu1 %v2731_v25 }
0x1479   : > { %v2733_v45 = vpop.xlane.xlu1 %2732 }
0x147a   : > { %v2734_v9 = vmul.f32 0.03125, %v2733_v45 }
0x147c   : > { %v2735_v13 = vsub.f32 %v5851_v5, %v2734_v9 }
0x147e   : > { %v2736_v55 = vmul.f32 %v2735_v13, %v2735_v13 }
0x1480   : > { %v2737_v37 = vsel %vm1289_vm5, %v2736_v55, 0.0 }
0x1481   : > { %2738 = vadd.xlane.f32.xlu0 %v2737_v37 }
0x150e   : > { %v2739_v56 = vpop.xlane.xlu0 %2738 }
0x150f   : > { %v2740_v34 = vmul.f32 0.03125, %v2739_v56 }
0x1511   : > { %v2741_v17 = vadd.f32 1e-05, %v2740_v34 }
0x1513   : > { %4758 = vrsqrt.f32 %v2741_v17 }
0x151d   : > { %v4759_v1 = vpop.eup %4758 }
0x151e   : > { %v2743_v4 = vmul.f32 %v4759_v1, %v2735_v13 }
0x1520   : > { %v2750_v6 = vmul.f32 %v5575_v10, %v2743_v4 }
0x1522   : > { %v2757_v22 = vadd.f32 %v5580_v15, %v2750_v6 }
0x1524   : > { %4258 = vmatmul.mubr.msk.f32.vlgmr.msra.gmra.mrb[32].mxu1 %vm1289_vm5, %v2757_v22 }
0x1525   : > { %4542 = vmatpush3.bf16.msra.mxu1 %v5593_v36  ;;  %4276 = vmatprep.mubr.msk.f32.mxu1 %vm4846_vm6, %v4847_v23 }
0x1526   : > { %4543 = vmatprep.subr.bf16.mxu1 %v4845_v20 }
0x1529   : > { %4545 = vmatpush3.bf16.msra.mxu1 %v5603_v61 }
0x152a   : > { %4546 = vmatprep.subr.bf16.mxu1 %v4845_v20 }
0x152d   : > { %4548 = vmatpush3.bf16.msra.mxu1 %v5613_v14 }
0x152e   : > { %4549 = vmatprep.subr.bf16.mxu1 %v4845_v20 }
0x1531   : > { %4551 = vmatpush3.bf16.msra.mxu1 %v5623_v40 }
0x1532   : > { %4574 = vmatprep.subr.bf16.mxu1 %v4845_v20 }
0x15f7   : > { %v2838_v58 = vpop.f32.mrb[32].mxu1 }
0x15f8   : > { %v2839_v48 = vadd.f32 %v5630_v50, %v2838_v58  ;;  %v4259_v52 = vpop.f32.mrb[33].mxu1 }
0x15f9   : > { %v4779_v52 = vld [vmem:[%s6023_s8] ss:$0 sm:$0xff] }
0x15fa   : > { %v2843_v43 = vmul.f32 0.70710677, %v2839_v48  ;;  %v2842_v25 = vmul.f32 0.5, %v2839_v48 }
0x15fc   : > { %v2844_v0 = vand.u32 2147483647, %v2843_v43  ;;  %vm2864_vm15 = vcmp.ge.f32.partialorder %v2843_v43, 0.0 }
0x15fe   : > { %v2845_v8 = vmul.f32 0.3275911, %v2844_v0  ;;  %v2858_v18 = vsub.f32 0.0, %v2844_v0 }
0x1600   : > { %v2846_v33 = vadd.f32 1.0, %v2845_v8  ;;  %v2859_v24 = vmul.f32 %v2858_v18, %v2844_v0 }
0x1602   : > { %4760 = vrcp.f32 %v2846_v33  ;;  %v2860_v63 = vmul.f32 1.442695, %v2859_v24 }
0x1604   : > { %4762 = vpow2.f32 %v2860_v63 }
0x160c   : > { %v4761_v60 = vpop.eup %4760 }
0x160d   : > { %v2849_v59 = vmul.f32 1.0614054, %v4761_v60 }
0x160e   : > { %v4763_v57 = vpop.eup %4762 }
0x160f   : > { %v2850_v27 = vadd.f32 -1.4531521, %v2849_v59 }
0x1611   : > { %v2851_v28 = vmul.f32 %v4761_v60, %v2850_v27 }
0x1613   : > { %v2852_v11 = vadd.f32 1.4214138, %v2851_v28 }
0x1615   : > { %v2853_v2 = vmul.f32 %v4761_v60, %v2852_v11 }
0x1617   : > { %v2854_v54 = vadd.f32 -0.28449672, %v2853_v2 }
0x1619   : > { %v2855_v21 = vmul.f32 %v4761_v60, %v2854_v54 }
0x161b   : > { %v2856_v19 = vadd.f32 0.2548296, %v2855_v21 }
0x161d   : > { %v2857_v7 = vmul.f32 %v4761_v60, %v2856_v19 }
0x161f   : > { %v2862_v30 = vmul.f32 %v4763_v57, %v2857_v7 }
0x1621   : > { %v2863_v32 = vsub.f32 1.0, %v2862_v30 }
0x1623   : > { %v2865_v44 = vsub.f32 0.0, %v2863_v32 }
0x1625   : > { %v2866_v38 = vsel %vm2864_vm15, %v2863_v32, %v2865_v44 }
0x1626   : > { %v2867_v45 = vadd.f32 1.0, %v2866_v38 }
0x1628   : > { %v2868_v9 = vmul.f32 %v2867_v45, %v2842_v25 }
0x162a   : > { %4277 = vmatmul.mubr.msk.f32.vlgmr.msra.gmra.mrb[34].mxu1 %vm1493_vm8, %v2868_v9 }
0x162b   : > { %4576 = vmatpush3.bf16.msra.mxu1 %v5741_v41  ;;  %4325 = vmatprep.mubr.msk.f32.mxu1 %vm4846_vm6, %v4847_v23 }
0x162c   : > { %4577 = vmatprep.subr.bf16.mxu1 %v4845_v20 }
0x162f   : > { %4579 = vmatpush3.bf16.msra.mxu1 %v5831_v12 }
0x1630   : > { %4580 = vmatprep.subr.bf16.mxu1 %v4845_v20 }
0x1633   : > { %4582 = vmatpush3.bf16.msra.mxu1 %v5835_v29 }
0x1634   : > { %4583 = vmatprep.subr.bf16.mxu1 %v4845_v20 }
0x1637   : > { %4585 = vmatpush3.bf16.msra.mxu1 %v5839_v62 }
0x1638   : > { %4586 = vmatprep.subr.bf16.mxu1 %v4845_v20 }
0x16fd   : > { %v2953_v13 = vpop.f32.mrb[34].mxu1 }
0x16fe   : > { %v2954_v41 = vadd.f32 %v5647_v39, %v2953_v13  ;;  %v4278_v55 = vpop.f32.mrb[35].mxu1 }
0x1700   : > { %v5884_v37 = vadd.f32 %v2954_v41, %v5851_v5  ;;  %v4778_v5 = vld [vmem:[%s6022_s7] ss:$0 sm:$0xff] }
0x1702   : > { %v2958_v12 = vsel %vm1289_vm5, %v5884_v37, 0.0 }
0x1703   : > { %2959 = vadd.xlane.f32.xlu0 %v2958_v12 }
0x1790   : > { %v2960_v56 = vpop.xlane.xlu0 %2959 }
0x1791   : > { %v2961_v34 = vmul.f32 0.03125, %v2960_v56 }
0x1793   : > { %v2962_v29 = vsub.f32 %v5884_v37, %v2961_v34 }
0x1795   : > { %v2963_v17 = vmul.f32 %v2962_v29, %v2962_v29 }
0x1797   : > { %v2964_v62 = vsel %vm1289_vm5, %v2963_v17, 0.0 }
0x1798   : > { %2965 = vadd.xlane.f32.xlu0 %v2964_v62 }
0x1825   : > { %v2966_v1 = vpop.xlane.xlu0 %2965 }
0x1826   : > { %v2967_v4 = vmul.f32 0.03125, %v2966_v1 }
0x1828   : > { %v2968_v6 = vadd.f32 1e-05, %v2967_v4 }
0x182a   : > { %4764 = vrsqrt.f32 %v2968_v6 }
0x1834   : > { %v4765_v22 = vpop.eup %4764 }
0x1835   : > { %v2970_v58 = vmul.f32 %v4765_v22, %v2962_v29 }
0x1837   : > { %v2971_v48 = vmul.f32 %v4778_v5, %v2970_v58 }
0x1839   : > { %v2972_v43 = vadd.f32 %v4779_v52, %v2971_v48 }
0x183b   : > { %4288 = vmatmul.mubr.msk.f32.vlgmr.msra.gmra.mrb[30].mxu0 %vm1289_vm5, %v2972_v43 }
0x183c   : > { %4561 = vmatpush3.bf16.xpose.msk.msra.mxu0 %vm5433_vm7, %v5472_v46  ;;  %4306 = vmatprep.mubr.msk.f32.mxu0 %vm4846_vm6, %v4847_v23 }
0x183d   : > { %4562 = vmatprep.subr.bf16.mxu0 %v4845_v20 }
0x1844   : > { %4565 = vmatpush3.bf16.xpose.msk.msra.mxu0 %vm5433_vm7, %v5486_v35 }
0x1845   : > { %4566 = vmatprep.subr.bf16.mxu0 %v4845_v20 }
0x184c   : > { %4569 = vmatpush3.bf16.xpose.msk.msra.mxu0 %vm5433_vm7, %v5496_v26 }
0x184d   : > { %4570 = vmatprep.subr.bf16.mxu0 %v4845_v20 }
0x1854   : > { %4573 = vmatpush3.bf16.xpose.msk.msra.mxu0 %vm5433_vm7, %v5510_v51 }
0x190e   : > { %v3042_v46 = vpop.f32.mrb[30].mxu0 }
0x190f   : > { %v3046_v0 = vmul.f32 0.17677669, %v3042_v46  ;;  %v4289_v8 = vpop.f32.mrb[31].mxu0 }
0x1911   : > { %4307 = vmatmul.mubr.msk.f32.vlgmr.msra.gmra.mrb[32].mxu0 %vm1289_vm5, %v3046_v0 }
0x1912   : > { %4360 = vmatprep.mubr.msk.f32.mxu0 %vm1289_vm5, %v5749_v16 }
0x19e4   : > { %v3116_v35 = vpop.f32.mrb[32].mxu0 }
0x19e5   : > { %v3120_v33 = vsel %vm1493_vm8, %v3116_v35, -inf  ;;  %v4308_v18 = vpop.f32.mrb[33].mxu0 }
0x19e6   : > { %v3121_v60 = vrot.slane %v3120_v33, 4 }
0x19e8   : > { %v3122_v26 = vmax.f32 %v3120_v33, %v3121_v60 }
0x19ea   : > { %v3123_v24 = vrot.slane %v3122_v26, 2 }
0x19ec   : > { %v3124_v59 = vmax.f32 %v3122_v26, %v3123_v24 }
0x19ee   : > { %v3125_v27 = vrot.slane %v3124_v59, 1 }
0x19f0   : > { %v3126_v63 = vmax.f32 %v3124_v59, %v3125_v27 }
0x19f2   : > { %v3127_v42 = vsub.f32 %v3116_v35, %v3126_v63 }
0x19f4   : > { %v3128_v51 = vmul.f32 1.442695, %v3127_v42 }
0x19f6   : > { %4766 = vpow2.f32 %v3128_v51 }
0x1a00   : > { %v4767_v28 = vpop.eup %4766 }
0x1a01   : > { %v3130_v11 = vsel %vm1493_vm8, %v4767_v28, 0.0 }
0x1a02   : > { %v3131_v2 = vrot.slane %v3130_v11, 4 }
0x1a04   : > { %v3132_v54 = vadd.f32 %v3131_v2, %v3130_v11 }
0x1a06   : > { %v3133_v16 = vrot.slane %v3132_v54, 2 }
0x1a08   : > { %v3134_v21 = vadd.f32 %v3133_v16, %v3132_v54 }
0x1a0a   : > { %v3135_v19 = vrot.slane %v3134_v21, 1 }
0x1a0c   : > { %v3136_v7 = vadd.f32 %v3135_v19, %v3134_v21 }
0x1a0e   : > { %4768 = vrcp.f32 %v3136_v7 }
0x1a18   : > { %v4769_v57 = vpop.eup %4768 }
0x1a19   : > { %v3138_v30 = vmul.f32 %v4769_v57, %v4767_v28 }
0x1a1b   : > { %v3139_v32 = vadd.f32 1e-08, %v3138_v30 }
0x1a1d   : > { %v3140_v44 = vsel %vm1493_vm8, %v3139_v32, 0.0 }
0x1a1e   : > { %3141 = vadd.xlane.f32.xlu1 %v3140_v44 }
0x1aab   : > { %v3142_v38 = vpop.xlane.xlu1 %3141 }
0x1aac   : > { %4770 = vrcp.f32 %v3142_v38 }
0x1ab6   : > { %v4771_v25 = vpop.eup %4770 }
0x1ab7   : > { %v3144_v45 = vmul.f32 %v4771_v25, %v3139_v32 }
0x1ab9   : > { %4326 = vmatmul.mubr.msk.f32.vlgmr.msra.gmra.mrb[36].mxu1 %vm1493_vm8, %v3144_v45  ;;  %3743 = vst.msk [vmem:[%s5685_s30 + $0x8] sm:$0xff] %vm1493_vm8, %v3144_v45  ;;  %s4784_s30 = sshll.u32 %s4849_s28, 4  ;;  %s4785_s30 = int_to_ptr.vmem [resolvable:$false] %s4784_s30 }
0x1aba   : > { %4588 = vmatpush3.bf16.msra.mxu1 %v5558_v47  ;;  %4336 = vmatprep.mubr.msk.f32.mxu1 %vm4846_vm6, %v4847_v23  ;;  %s4786_s18 = scalar_lea.vmem %s4785_s30, 512  ;;  %p4787_p1 = scmp.lt.s32.totalorder %s5962_s26, %s4785_s30 }
0x1abb   : > { %4589 = vmatprep.subr.bf16.mxu1 %v4845_v20  ;;  %p4788_p2 = scmp.lt.s32.totalorder %s4786_s18, %s4780_s24 }
0x1abd   : > { %p4789_p3 = por %p4788_p2, %p4787_p1 }
0x1abe   : > { %4591 = vmatpush3.bf16.msra.mxu1 %v5568_v31 }
0x1abf   : > { %4592 = vmatprep.subr.bf16.mxu1 %v4845_v20  ;;  %p4790_p4 = pnand %p4789_p3, %p4783_p0 }
0x1b8c   : > { %v3214_v9 = vpop.f32.mrb[36].mxu1 }
0x1b8d   : > { %v3218_v13 = vadd.f32 %v3214_v9, %v5884_v37  ;;  %v4327_v41 = vpop.f32.mrb[37].mxu1 }
0x1b8f   : > { %v3219_v55 = vsel %vm1289_vm5, %v3218_v13, 0.0 }
0x1b90   : > { %3220 = vadd.xlane.f32.xlu0 %v3219_v55 }
0x1c1d   : > { %v3221_v12 = vpop.xlane.xlu0 %3220 }
0x1c1e   : > { %v3222_v56 = vmul.f32 0.03125, %v3221_v12 }
0x1c20   : > { %v3223_v34 = vsub.f32 %v3218_v13, %v3222_v56 }
0x1c22   : > { %v3224_v47 = vmul.f32 %v3223_v34, %v3223_v34 }
0x1c24   : > { %v3225_v29 = vsel %vm1289_vm5, %v3224_v47, 0.0 }
0x1c25   : > { %3226 = vadd.xlane.f32.xlu1 %v3225_v29 }
0x1cb2   : > { %v3227_v17 = vpop.xlane.xlu1 %3226 }
0x1cb3   : > { %v3228_v62 = vmul.f32 0.03125, %v3227_v17 }
0x1cb5   : > { %v3229_v1 = vadd.f32 1e-05, %v3228_v62 }
0x1cb7   : > { %4772 = vrsqrt.f32 %v3229_v1 }
0x1cc1   : > { %v4773_v31 = vpop.eup %4772 }
0x1cc2   : > { %v3231_v4 = vmul.f32 %v4773_v31, %v3223_v34 }
0x1cc4   : > { %v3232_v6 = vmul.f32 %v5575_v10, %v3231_v4 }
0x1cc6   : > { %v3233_v37 = vadd.f32 %v5580_v15, %v3232_v6 }
0x1cc8   : > { %4337 = vmatmul.mubr.msk.f32.vlgmr.msra.gmra.mrb[38].mxu1 %vm1289_vm5, %v3233_v37 }
0x1cc9   : > { %4594 = vmatpush3.bf16.msra.mxu1 %v5593_v36  ;;  %4355 = vmatprep.mubr.msk.f32.mxu1 %vm4846_vm6, %v4847_v23 }
0x1cca   : > { %4595 = vmatprep.subr.bf16.mxu1 %v4845_v20 }
0x1ccd   : > { %4597 = vmatpush3.bf16.msra.mxu1 %v5603_v61 }
0x1cce   : > { %4598 = vmatprep.subr.bf16.mxu1 %v4845_v20 }
0x1cd1   : > { %4600 = vmatpush3.bf16.msra.mxu1 %v5613_v14 }
0x1cd2   : > { %4601 = vmatprep.subr.bf16.mxu1 %v4845_v20 }
0x1cd5   : > { %4603 = vmatpush3.bf16.msra.mxu1 %v5623_v40 }
0x1d9b   : > { %v3303_v10 = vpop.f32.mrb[38].mxu1 }
0x1d9c   : > { %v3304_v15 = vadd.f32 %v5630_v50, %v3303_v10  ;;  %v4338_v22 = vpop.f32.mrb[39].mxu1 }
0x1d9e   : > { %v3308_v36 = vmul.f32 0.70710677, %v3304_v15  ;;  %v3307_v27 = vmul.f32 0.5, %v3304_v15 }
0x1da0   : > { %v3309_v58 = vand.u32 2147483647, %v3308_v36  ;;  %vm3329_vm0 = vcmp.ge.f32.partialorder %v3308_v36, 0.0 }
0x1da2   : > { %v3310_v5 = vmul.f32 0.3275911, %v3309_v58  ;;  %v3323_v48 = vsub.f32 0.0, %v3309_v58 }
0x1da4   : > { %v3311_v23 = vadd.f32 1.0, %v3310_v5  ;;  %v3324_v61 = vmul.f32 %v3323_v48, %v3309_v58 }
0x1da6   : > { %4774 = vrcp.f32 %v3311_v23  ;;  %v3325_v0 = vmul.f32 1.442695, %v3324_v61 }
0x1da8   : > { %4776 = vpow2.f32 %v3325_v0 }
0x1db0   : > { %v4775_v52 = vpop.eup %4774 }
0x1db1   : > { %v3314_v43 = vmul.f32 1.0614054, %v4775_v52 }
0x1db2   : > { %v4777_v18 = vpop.eup %4776 }
0x1db3   : > { %v3315_v46 = vadd.f32 -1.4531521, %v3314_v43 }
0x1db5   : > { %v3316_v14 = vmul.f32 %v4775_v52, %v3315_v46 }
0x1db7   : > { %v3317_v8 = vadd.f32 1.4214138, %v3316_v14 }
0x1db9   : > { %v3318_v20 = vmul.f32 %v4775_v52, %v3317_v8 }
0x1dbb   : > { %v3319_v40 = vadd.f32 -0.28449672, %v3318_v20 }
0x1dbd   : > { %v3320_v35 = vmul.f32 %v4775_v52, %v3319_v40 }
0x1dbf   : > { %v3321_v33 = vadd.f32 0.2548296, %v3320_v35 }
0x1dc1   : > { %v3322_v50 = vmul.f32 %v4775_v52, %v3321_v33 }
0x1dc3   : > { %v3327_v60 = vmul.f32 %v4777_v18, %v3322_v50 }
0x1dc5   : > { %v3328_v26 = vsub.f32 1.0, %v3327_v60 }
0x1dc7   : > { %v3330_v24 = vsub.f32 0.0, %v3328_v26 }
0x1dc9   : > { %v3331_v59 = vsel %vm3329_vm0, %v3328_v26, %v3330_v24 }
0x1dca   : > { %v3332_v63 = vadd.f32 1.0, %v3331_v59 }
0x1dcc   : > { %v3333_v42 = vmul.f32 %v3332_v63, %v3307_v27 }
0x1dce   : > { %4356 = vmatmul.mubr.msk.f32.vlgmr.msra.gmra.mrb[40].mxu1 %vm1493_vm8, %v3333_v42 }
0x1ea1   : > { %v3403_v51 = vpop.f32.mrb[40].mxu1 }
0x1ea2   : > { %v3404_v28 = vadd.f32 %v5647_v39, %v3403_v51  ;;  %v4357_v11 = vpop.f32.mrb[41].mxu1 }
0x1ea4   : > { %v3407_v2 = vadd.f32 %v3404_v28, %v3218_v13 }
0x1ea6   : > { %4358 = vmatprep.subr.msk.mxu0 %vm1289_vm5, %v3407_v2 }
0x1ea7   : > { %4359 = vmatpush3.xpose.msk.msra.mxu0 %vm1289_vm5, %v3407_v2 }
0x1eaa   : > { %4361 = vmatmul.mubr.msk.f32.vlgmr.msra.gmra.mrb[34].mxu0 %vm1289_vm5, %v5759_v49 }
0x1eab   : > { %4363 = vmatprep.mubr.msk.f32.mxu0 %vm1289_vm5, %v5764_v53 }
0x1eae   : > { %4364 = vmatmul.mubr.msk.f32.gmra.mrb[36].mxu0 %vm1289_vm5, %v5773_v3 }
0x1eaf   : > { %4793 = shalt.err (!%p4790_p4)
}
0x1eb0   : > { %s4794_s19 = scalar_lea.hbm %s5960_s29, 256  ;;  %s4798_s0 = scalar_lea.hbm %s6032_s17, 512 }
0x1eb1   : > { %p4795_p7 = scmp.ne.s32.totalorder %s5960_s29, %s4794_s19  ;;  %p4799_p10 = scmp.lt.u32.totalorder %s5960_s29, %s6032_s17 }
0x1eb2   : > { %p4800_p11 = scmp.lt.u32.totalorder %s4798_s0, %s4794_s19  ;;  %p4802_p13 = scmp.lt.u32.totalorder %s4794_s19, %s5960_s29 }
0x1eb3   : > { %p4796_p8 = pnand %p4795_p7, %p4980_p5 }
0x1eb4   : > { %p4801_p12 = por %p4800_p11, %p4799_p10 }
0x1eb5   : > { %p4797_p9 = pneg %p4796_p8 }
0x1eb6   : > { %p4803_p0 = por %p4802_p13, %p4801_p12 }
0x1eb8   : > { %p4804_p1 = pnand %p4803_p0, %p4797_p9 }
0x1eba   : > { %4807 = shalt.err (!%p4804_p1)
}
0x1ebb   : > { %s4850_s24 = smov 128   ;;  %s4851_s18 = smov 8  }
0x1ebc   : > { %4604 = dma.vmem_to_hbm [thread:$0]  (%p4980_p5), %s5962_s26, 256, %s5960_s29, %s5966_s20, %s4850_s24, %s4850_s24, %s4851_s18  }
0x1f7d   : > { %v4362_v39 = vpop.f32.mrb[34].mxu0 }
0x1f7e   : > { %3740 = vst.msk [vmem:[%s5807_s27 + $0x28] sm:$0xff] %vm819_vm4, %v4362_v39  ;;  %v3477_v49 = vpop.f32.mrb[35].mxu0 }
0x1f7f   : > { %3739 = vst.msk [vmem:[%s5807_s27 + $0x20] sm:$0xff] %vm819_vm4, %v3477_v49 }
0x1f81   : > { %v4365_v53 = vpop.f32.mrb[36].mxu0 }
0x1f82   : > { %3742 = vst.msk [vmem:[%s5807_s27 + $0x38] sm:$0xff] %vm819_vm4, %v4365_v53  ;;  %v3487_v3 = vpop.f32.mrb[37].mxu0 }
0x1f83   : > { %3741 = vst.msk [vmem:[%s5807_s27 + $0x30] sm:$0xff] %vm819_vm4, %v3487_v3 }
0x1f84 PF: > { %s6054_s19 = sld [smem:[#allocation7_spill]]  ;;  %s6055_s21 = sld [smem:[#allocation5_spill]] }
0x1f8a   : > { %p4610_p2 = scmp.ge.s32.totalorder %s6054_s19, 2  ;;  %s3551_s0 = sand.u32 1, %s6055_s21  }
0x1f8b   : > { %s3552_s1 = scalar_lea.sflag [#allocation3], %s3551_s0 }
0x1f8c   : > { %p4607_p5 = pnand %p4610_p2, %p4984_p6 }
0x1f8e   : > { %4825 = dma.done.wait (!%p4607_p5), %s3552_s1, 256  }
0x1f8f   : > { %4827 = vsyncadd (!%p4607_p5), %s3552_s1, 4294967040  ;;  %s6057_s27 = sld [smem:[#allocation8_spill]]  ;;  %s6058_s26 = sld [smem:[#allocation6_spill]] }
0x1f90   : > { %s6059_s29 = sld [smem:[#allocation9_spill]]  ;;  %s6060_s24 = smov %s4834_s25 }
0x1f95   : > { %p28_p3 = scmp.ge.s32.totalorder %s6057_s27, 4   ;;  %s6061_s25 = smov %s6058_s26 }
0x1f96   : > { %s6062_s26 = smov %s6059_s29 }
0x1f97   :  { %30 = sbr.rel (!%p28_p3) target bundleno = 6 (0x6), region = 133 }
0x1f9e   :  { %3557 = vsyncpa [#allocation3], 1 }
0x1f9f   :  { %3559 = vsyncpa [#allocation3 + $0x1], 1 }

</bundles_post_ra>
